<compile_context>
chip_gen: v6e
topology: v6e:2x2x1
jax: 0.10.0
libtpu: 0.0.40
codegen_flags: <defaults>
</compile_context>

<pallas_src>
import jax
import jax.numpy as jnp
from jax.experimental import pallas as pl
from jax.experimental.pallas import tpu as pltpu

_H1, _H2, _H3, _HOUT = 5, 4, 3, 1  # hidden sizes fixed by the PyTorch module


def _round_up(x, m):
    return ((x + m - 1) // m) * m


def mlp_kernel(x_ref, p_ref, o_ref):
    # x_ref: [tb, F]   (natural layout, batch on sublanes in VMEM)
    # p_ref: [4, 2, 8, 128]  packed params: p[l, 0] = W_l, p[l, 1] = b_l (col 0)
    # o_ref: [1, tb]   lane-dense output slab (batch on lanes)
    f = x_ref.shape[-1]
    x = x_ref[...]

    w1 = p_ref[0, 0][:_H1, :f]
    b1 = p_ref[0, 1][:_H1, :1]
    w2 = p_ref[1, 0][:_H2, :_H1]
    b2 = p_ref[1, 1][:_H2, :1]
    w3 = p_ref[2, 0][:_H3, :_H2]
    b3 = p_ref[2, 1][:_H3, :1]
    w4 = p_ref[3, 0][:_HOUT, :_H3]
    b4 = p_ref[3, 1][:_HOUT, :1]

    hp = jax.lax.Precision.HIGHEST
    # Layer 1: contract the feature axis of both operands (q·k^T pattern) so x
    # needs no pre-transposed copy; result is [5, tb] with batch on lanes.
    h = jnp.tanh(
        jax.lax.dot_general(w1, x, (((1,), (1,)), ((), ())),
                            precision=hp,
                            preferred_element_type=jnp.float32) + b1)
    # fc2 + tanh -> [4, tb]
    h = jnp.tanh(
        jnp.dot(w2, h, precision=hp, preferred_element_type=jnp.float32) + b2)
    # fc3 + tanh -> [3, tb]
    h = jnp.tanh(
        jnp.dot(w3, h, precision=hp, preferred_element_type=jnp.float32) + b3)
    # fc4 + sigmoid -> [1, tb]  (lane-dense store)
    z = jnp.dot(w4, h, precision=hp, preferred_element_type=jnp.float32) + b4
    o_ref[...] = jax.nn.sigmoid(z)


def pack_params(params, input_features):
    """Pack W1..W4 / b1..b4 into one [4, 2, 8, 128] f32 slab (built once)."""
    dims = ((input_features, _H1), (_H1, _H2), (_H2, _H3), (_H3, _HOUT))
    slab = jnp.zeros((4, 2, 8, 128), jnp.float32)
    for l, (fin, fout) in enumerate(dims):
        w = params[f"w{l + 1}"].astype(jnp.float32)          # [fout, fin]
        b = params[f"b{l + 1}"].astype(jnp.float32).reshape(fout, 1)
        slab = slab.at[l, 0, :fout, :fin].set(w)
        slab = slab.at[l, 1, :fout, :1].set(b)
    return slab


def mlp_forward(x, packed_params, *, batch_tile=4096):
    """x: [B, F] float32; packed_params: [4, 2, 8, 128] from pack_params.

    Returns [B, 1] float32 (sigmoid output), matching the PyTorch module.
    """
    x = x.astype(jnp.float32)
    B, F = x.shape
    assert F <= 128, "packed-param slab supports input_features <= 128"
    assert packed_params.shape == (4, 2, 8, 128)

    # Tile choice: one big grid step for small batches (no per-step overhead,
    # no pointless cross-core sharding); large lane-dense tiles (multiple of
    # 512, default 4096) otherwise so the ~0.35 us/step overhead amortizes.
    if B <= batch_tile:
        tb = max(_round_up(B, 256), 256)
    else:
        tb = _round_up(batch_tile, 512)
    Bp = _round_up(B, tb)
    if Bp != B:
        x = jnp.pad(x, ((0, Bp - B), (0, 0)))

    out_t = pl.pallas_call(
        mlp_kernel,
        out_shape=jax.ShapeDtypeStruct((1, Bp), jnp.float32),
        grid_spec=pltpu.PrefetchScalarGridSpec(
            num_scalar_prefetch=0,
            grid=(Bp // tb,),
            in_specs=[
                # x tile in natural layout; last dim equals the full F.
                pl.BlockSpec((tb, F), lambda i: (i, 0)),
                # single packed parameter slab, same block every step.
                pl.BlockSpec((4, 2, 8, 128), lambda i: (0, 0, 0, 0)),
            ],
            out_specs=pl.BlockSpec((1, tb), lambda i: (0, i)),  # lane-dense
        ),
        compiler_params=pltpu.CompilerParams(
            dimension_semantics=("parallel",)),
    )(x, packed_params)

    # Strip batch padding (before the final transpose) and return [B, 1].
    return out_t[:, :B].T


def init_params(key, input_features):
    """Deterministic init mimicking nn.Linear (uniform +-1/sqrt(fan_in)).

    Weights in PyTorch layout [out, in]; biases as [out].
    """
    dims = [(input_features, _H1), (_H1, _H2), (_H2, _H3), (_H3, _HOUT)]
    params = {}
    for idx, (fan_in, fan_out) in enumerate(dims, start=1):
        key, kw, kb = jax.random.split(key, 3)
        bound = 1.0 / jnp.sqrt(jnp.float32(fan_in))
        params[f"w{idx}"] = jax.random.uniform(
            kw, (fan_out, fan_in), jnp.float32, minval=-bound, maxval=bound)
        params[f"b{idx}"] = jax.random.uniform(
            kb, (fan_out,), jnp.float32, minval=-bound, maxval=bound)
    return params


def reference_forward(x, params):
    hp = jax.lax.Precision.HIGHEST
    h = jnp.tanh(jnp.dot(x, params["w1"].T, precision=hp) + params["b1"])
    h = jnp.tanh(jnp.dot(h, params["w2"].T, precision=hp) + params["b2"])
    h = jnp.tanh(jnp.dot(h, params["w3"].T, precision=hp) + params["b3"])
    return jax.nn.sigmoid(jnp.dot(h, params["w4"].T, precision=hp)
                          + params["b4"])


if __name__ == "__main__":
    F = 8        # Diabetes dataset: 8 input features
    B = 1000     # not a multiple of the tile -> exercises the padding path
    key = jax.random.PRNGKey(0)
    key, kx = jax.random.split(key)
    x = jax.random.normal(kx, (B, F), jnp.float32)

    params = init_params(key, F)
    packed = pack_params(params, F)

    out = mlp_forward(x, packed)
    out = jax.block_until_ready(out)

    ref = reference_forward(x, params)
    assert out.shape == (B, 1)
    max_err = float(jnp.max(jnp.abs(out - ref)))
    assert jnp.allclose(out, ref, atol=1e-4, rtol=1e-4), max_err

    print("KERNEL_OK")
</pallas_src>

<mosaic_0001>
module attributes {stable_mosaic.version = 11 : i64} {
  func.func @mlp_kernel(%arg0: i32, %arg1: memref<1024x8xf32, #tpu.memory_space<vmem>>, %arg2: memref<4x2x8x128xf32, #tpu.memory_space<vmem>>, %arg3: memref<1x1024xf32, #tpu.memory_space<vmem>>) attributes {dimension_semantics = [#tpu.dimension_semantics<parallel>], iteration_bounds = array<i64: 1>, scalar_prefetch = 0 : i64, scratch_operands = 0 : i64, tpu.core_type = #tpu.core_type<tc>, window_params = [{transform_indices = @transform_0, window_bounds = array<i64: 1024, 8>}, {pipeline_mode = #tpu.pipeline_mode<synchronous>, transform_indices = @transform_1, window_bounds = array<i64: 4, 2, 8, 128>}, {transform_indices = @transform_2, window_bounds = array<i64: 1, 1024>}]} {
    %c0 = arith.constant 0 : index
    %c0_0 = arith.constant 0 : index
    %0 = vector.load %arg1[%c0, %c0_0] : memref<1024x8xf32, #tpu.memory_space<vmem>>, vector<1024x8xf32>
    %c0_1 = arith.constant 0 : index
    %c0_2 = arith.constant 0 : index
    %c0_3 = arith.constant 0 : index
    %c0_4 = arith.constant 0 : index
    %1 = vector.load %arg2[%c0_1, %c0_2, %c0_3, %c0_4] : memref<4x2x8x128xf32, #tpu.memory_space<vmem>>, vector<1x1x8x128xf32>
    %2 = vector.shape_cast %1 : vector<1x1x8x128xf32> to vector<8x128xf32>
    %3 = vector.extract_strided_slice %2 {offsets = [0, 0], sizes = [5, 8], strides = [1, 1]} : vector<8x128xf32> to vector<5x8xf32>
    %c0_5 = arith.constant 0 : index
    %c1 = arith.constant 1 : index
    %c0_6 = arith.constant 0 : index
    %c0_7 = arith.constant 0 : index
    %4 = vector.load %arg2[%c0_5, %c1, %c0_6, %c0_7] : memref<4x2x8x128xf32, #tpu.memory_space<vmem>>, vector<1x1x8x128xf32>
    %5 = vector.shape_cast %4 : vector<1x1x8x128xf32> to vector<8x128xf32>
    %6 = vector.extract_strided_slice %5 {offsets = [0, 0], sizes = [5, 1], strides = [1, 1]} : vector<8x128xf32> to vector<5x1xf32>
    %c1_8 = arith.constant 1 : index
    %c0_9 = arith.constant 0 : index
    %c0_10 = arith.constant 0 : index
    %c0_11 = arith.constant 0 : index
    %7 = vector.load %arg2[%c1_8, %c0_9, %c0_10, %c0_11] : memref<4x2x8x128xf32, #tpu.memory_space<vmem>>, vector<1x1x8x128xf32>
    %8 = vector.shape_cast %7 : vector<1x1x8x128xf32> to vector<8x128xf32>
    %9 = vector.extract_strided_slice %8 {offsets = [0, 0], sizes = [4, 5], strides = [1, 1]} : vector<8x128xf32> to vector<4x5xf32>
    %c1_12 = arith.constant 1 : index
    %c1_13 = arith.constant 1 : index
    %c0_14 = arith.constant 0 : index
    %c0_15 = arith.constant 0 : index
    %10 = vector.load %arg2[%c1_12, %c1_13, %c0_14, %c0_15] : memref<4x2x8x128xf32, #tpu.memory_space<vmem>>, vector<1x1x8x128xf32>
    %11 = vector.shape_cast %10 : vector<1x1x8x128xf32> to vector<8x128xf32>
    %12 = vector.extract_strided_slice %11 {offsets = [0, 0], sizes = [4, 1], strides = [1, 1]} : vector<8x128xf32> to vector<4x1xf32>
    %c2 = arith.constant 2 : index
    %c0_16 = arith.constant 0 : index
    %c0_17 = arith.constant 0 : index
    %c0_18 = arith.constant 0 : index
    %13 = vector.load %arg2[%c2, %c0_16, %c0_17, %c0_18] : memref<4x2x8x128xf32, #tpu.memory_space<vmem>>, vector<1x1x8x128xf32>
    %14 = vector.shape_cast %13 : vector<1x1x8x128xf32> to vector<8x128xf32>
    %15 = vector.extract_strided_slice %14 {offsets = [0, 0], sizes = [3, 4], strides = [1, 1]} : vector<8x128xf32> to vector<3x4xf32>
    %c2_19 = arith.constant 2 : index
    %c1_20 = arith.constant 1 : index
    %c0_21 = arith.constant 0 : index
    %c0_22 = arith.constant 0 : index
    %16 = vector.load %arg2[%c2_19, %c1_20, %c0_21, %c0_22] : memref<4x2x8x128xf32, #tpu.memory_space<vmem>>, vector<1x1x8x128xf32>
    %17 = vector.shape_cast %16 : vector<1x1x8x128xf32> to vector<8x128xf32>
    %18 = vector.extract_strided_slice %17 {offsets = [0, 0], sizes = [3, 1], strides = [1, 1]} : vector<8x128xf32> to vector<3x1xf32>
    %c3 = arith.constant 3 : index
    %c0_23 = arith.constant 0 : index
    %c0_24 = arith.constant 0 : index
    %c0_25 = arith.constant 0 : index
    %19 = vector.load %arg2[%c3, %c0_23, %c0_24, %c0_25] : memref<4x2x8x128xf32, #tpu.memory_space<vmem>>, vector<1x1x8x128xf32>
    %20 = vector.shape_cast %19 : vector<1x1x8x128xf32> to vector<8x128xf32>
    %21 = vector.extract_strided_slice %20 {offsets = [0, 0], sizes = [1, 3], strides = [1, 1]} : vector<8x128xf32> to vector<1x3xf32>
    %c3_26 = arith.constant 3 : index
    %c1_27 = arith.constant 1 : index
    %c0_28 = arith.constant 0 : index
    %c0_29 = arith.constant 0 : index
    %22 = vector.load %arg2[%c3_26, %c1_27, %c0_28, %c0_29] : memref<4x2x8x128xf32, #tpu.memory_space<vmem>>, vector<1x1x8x128xf32>
    %23 = vector.shape_cast %22 : vector<1x1x8x128xf32> to vector<8x128xf32>
    %24 = vector.extract_strided_slice %23 {offsets = [0, 0], sizes = [1, 1], strides = [1, 1]} : vector<8x128xf32> to vector<1x1xf32>
    %cst = arith.constant dense<0.000000e+00> : vector<5x1024xf32>
    %25 = tpu.matmul %3, %0, %cst {dimension_numbers = #tpu.dot_dimension_numbers<[1], [1], [0], [0], [0, 0, 1, 0], [], []>, precision = #tpu.contract_precision<fp32>} : vector<5x8xf32>, vector<1024x8xf32>, vector<5x1024xf32> -> vector<5x1024xf32>
    %26 = vector.broadcast %6 : vector<5x1xf32> to vector<5x1024xf32>
    %27 = arith.addf %25, %26 : vector<5x1024xf32>
    %28 = math.tanh %27 : vector<5x1024xf32>
    %cst_30 = arith.constant dense<0.000000e+00> : vector<4x1024xf32>
    %29 = tpu.matmul %9, %28, %cst_30 {dimension_numbers = #tpu.dot_dimension_numbers<[1], [0], [0], [1], [0, 0, 1, 1], [], []>, precision = #tpu.contract_precision<fp32>} : vector<4x5xf32>, vector<5x1024xf32>, vector<4x1024xf32> -> vector<4x1024xf32>
    %30 = vector.broadcast %12 : vector<4x1xf32> to vector<4x1024xf32>
    %31 = arith.addf %29, %30 : vector<4x1024xf32>
    %32 = math.tanh %31 : vector<4x1024xf32>
    %cst_31 = arith.constant dense<0.000000e+00> : vector<3x1024xf32>
    %33 = tpu.matmul %15, %32, %cst_31 {dimension_numbers = #tpu.dot_dimension_numbers<[1], [0], [0], [1], [0, 0, 1, 1], [], []>, precision = #tpu.contract_precision<fp32>} : vector<3x4xf32>, vector<4x1024xf32>, vector<3x1024xf32> -> vector<3x1024xf32>
    %34 = vector.broadcast %18 : vector<3x1xf32> to vector<3x1024xf32>
    %35 = arith.addf %33, %34 : vector<3x1024xf32>
    %36 = math.tanh %35 : vector<3x1024xf32>
    %cst_32 = arith.constant dense<0.000000e+00> : vector<1x1024xf32>
    %37 = tpu.matmul %21, %36, %cst_32 {dimension_numbers = #tpu.dot_dimension_numbers<[1], [0], [0], [1], [0, 0, 1, 1], [], []>, precision = #tpu.contract_precision<fp32>} : vector<1x3xf32>, vector<3x1024xf32>, vector<1x1024xf32> -> vector<1x1024xf32>
    %38 = vector.broadcast %24 : vector<1x1xf32> to vector<1x1024xf32>
    %39 = arith.addf %37, %38 : vector<1x1024xf32>
    %40 = arith.negf %39 : vector<1x1024xf32>
    %41 = math.exp %40 : vector<1x1024xf32>
    %cst_33 = arith.constant 1.000000e+00 : f32
    %42 = vector.broadcast %cst_33 : f32 to vector<1x1024xf32>
    %43 = arith.addf %42, %41 : vector<1x1024xf32>
    %44 = arith.divf %42, %43 : vector<1x1024xf32>
    %c0_34 = arith.constant 0 : index
    %c0_35 = arith.constant 0 : index
    %45 = vector.load %arg3[%c0_34, %c0_35] : memref<1x1024xf32, #tpu.memory_space<vmem>>, vector<1x1024xf32>
    tpu.vector_store %arg3[%c0_34, %c0_35], %44 {strides = array<i32>} : memref<1x1024xf32, #tpu.memory_space<vmem>>, vector<1x1024xf32>,
    return
  }
  func.func @transform_0(%arg0: i32) -> (i32, i32) {
    %c0_i32 = arith.constant 0 : i32
    %c0_i32_0 = arith.constant 0 : i32
    return %arg0, %c0_i32 : i32, i32
  }
  func.func @transform_1(%arg0: i32) -> (i32, i32, i32, i32) {
    %c0_i32 = arith.constant 0 : i32
    %c0_i32_0 = arith.constant 0 : i32
    %c0_i32_1 = arith.constant 0 : i32
    %c0_i32_2 = arith.constant 0 : i32
    %c0_i32_3 = arith.constant 0 : i32
    return %c0_i32, %c0_i32_0, %c0_i32_1, %c0_i32_2 : i32, i32, i32, i32
  }
  func.func @transform_2(%arg0: i32) -> (i32, i32) {
    %c0_i32 = arith.constant 0 : i32
    %c0_i32_0 = arith.constant 0 : i32
    return %c0_i32, %arg0 : i32, i32
  }
}

</mosaic_0001>

<bundles_post_ra>
// kernel: tpu_custom_call.1
= control target key start
LH: loop header
LB: loop body
LE: loop exit
PB: predicated region body
PF: predicated region fallthrough
CT: control target
= control target key end

     0   :  { %vm160_vm0 = vcmask 64512   ;;  %s13564_s0 = inlined_call_operand.vmem [shape: f32[1024,8], index: 0, kind: input, shape index: {}]   ;;  %s13565_s1 = inlined_call_operand.vmem [shape: f32[4,2,8,128], index: 1, kind: input, shape index: {}]   ;;  %s13566_s2 = inlined_call_operand.hbm [shape: f32[1,1024], index: 2, kind: output, shape index: {}]  }
   0x1   :  { %v43_v0 = vld [vmem:[%s13564_s0 + $0xf8] sm:$0xff]  ;;  %v42_v2 = vld [vmem:[%s13564_s0 + $0xf0] sm:$0xff]  ;;  %v41_v7 = vld [vmem:[%s13564_s0 + $0xe8] sm:$0xff] }
   0x2   :  { %v27_v1 = vld [vmem:[%s13564_s0 + $0x78] sm:$0xff]  ;;  %v258_v3 = vsel %vm160_vm0, %v43_v0, 0  ;;  %v255_v5 = vsel %vm160_vm0, %v42_v2, 0  ;;  %v26_v6 = vld [vmem:[%s13564_s0 + $0x70] sm:$0xff]  ;;  %v25_v8 = vld [vmem:[%s13564_s0 + $0x68] sm:$0xff]  ;;  %v252_v16 = vsel %vm160_vm0, %v41_v7, 0 }
   0x3   :  { %v210_v4 = vsel %vm160_vm0, %v27_v1, 0  ;;  %v10774_v9 = vand.u32 4294901760, %v258_v3  ;;  %v10778_v11 = vand.u32 4294901760, %v255_v5  ;;  %v207_v12 = vsel %vm160_vm0, %v26_v6, 0  ;;  %v40_v13 = vld [vmem:[%s13564_s0 + $0xe0] sm:$0xff]  ;;  %v39_v19 = vld [vmem:[%s13564_s0 + $0xd8] sm:$0xff] }
   0x4   :  { %v10776_v10 = vand.u32 4294901760, %v210_v4  ;;  %v24_v14 = vld [vmem:[%s13564_s0 + $0x60] sm:$0xff]  ;;  %v10787_v15 = vand.u32 4294901760, %v207_v12  ;;  %v204_v17 = vsel %vm160_vm0, %v25_v8, 0  ;;  %v249_v18 = vsel %vm160_vm0, %v40_v13, 0  ;;  %v23_v27 = vld [vmem:[%s13564_s0 + $0x58] sm:$0xff] }
   0x5   :  { %9810 = vmatprep.subr.mxu0 %v10774_v9  ;;  %v10796_v20 = vand.u32 4294901760, %v252_v16  ;;  %v10799_v21 = vsub.f32 %v258_v3, %v10774_v9  ;;  %v10801_v22 = vand.u32 4294901760, %v204_v17  ;;  %v10808_v24 = vsub.f32 %v255_v5, %v10778_v11  ;;  %v38_v36 = vld [vmem:[%s13564_s0 + $0xd0] sm:$0xff]  ;;  %v37_v50 = vld [vmem:[%s13564_s0 + $0xc8] sm:$0xff]  ;;  %v36_v60 = vld [vmem:[%s13564_s0 + $0xc0] sm:$0xff] }
   0x6   :  { %v10804_v23 = vsub.f32 %v210_v4, %v10776_v10  ;;  %9811 = vmatpush3.xpose.msra.mxu0 %v10776_v10  ;;  %v201_v25 = vsel %vm160_vm0, %v24_v14, 0  ;;  %v10812_v26 = vsub.f32 %v207_v12, %v10787_v15  ;;  %v10820_v30 = vand.u32 4294901760, %v249_v18  ;;  %v22_v45 = vld [vmem:[%s13564_s0 + $0x50] sm:$0xff]  ;;  %v21_v59 = vld [vmem:[%s13564_s0 + $0x48] sm:$0xff] }
   0x7   :  { %9812 = vmatprep.subr.mxu0 %v10778_v11  ;;  %v13583_v28 = vand.u32 4294901760, %v10799_v21  ;;  %v246_v31 = vsel %vm160_vm0, %v39_v19, 0  ;;  %v13580_v32 = vand.u32 4294901760, %v10808_v24  ;;  %v10824_v33 = vand.u32 4294901760, %v201_v25 }
   0x8   :  { %v13582_v29 = vand.u32 4294901760, %v10804_v23  ;;  %v13578_v34 = vand.u32 4294901760, %v10812_v26  ;;  %v10828_v35 = vsub.f32 %v252_v16, %v10796_v20  ;;  %v198_v39 = vsel %vm160_vm0, %v23_v27, 0 }
   0x9   :  { %v772_v37 = vsub.f32 %v10799_v21, %v13583_v28  ;;  %v10841_v40 = vsub.f32 %v204_v17, %v10801_v22  ;;  %v779_v41 = vsub.f32 %v10808_v24, %v13580_v32  ;;  %v10850_v43 = vand.u32 4294901760, %v246_v31 }
   0xa   :  { %v660_v38 = vsub.f32 %v10804_v23, %v13582_v29  ;;  %9813 = vmatpush3.xpose.msra.mxu0 %v10787_v15  ;;  %v667_v42 = vsub.f32 %v10812_v26, %v13578_v34  ;;  %v13577_v44 = vand.u32 4294901760, %v10828_v35  ;;  %v243_v49 = vsel %vm160_vm0, %v38_v36, 0 }
   0xb   :  { %9814 = vmatprep.subr.mxu0 %v10796_v20  ;;  %v773_v46 = vand.u32 4294901760, %v772_v37  ;;  %v13576_v48 = vand.u32 4294901760, %v10841_v40  ;;  %v780_v51 = vand.u32 4294901760, %v779_v41  ;;  %v10865_v54 = vand.u32 4294901760, %v198_v39 }
   0xc   :  { %v661_v47 = vand.u32 4294901760, %v660_v38  ;;  %v668_v52 = vand.u32 4294901760, %v667_v42  ;;  %v786_v53 = vsub.f32 %v10828_v35, %v13577_v44  ;;  %v10871_v56 = vsub.f32 %v249_v18, %v10820_v30 }
   0xd   :  { %9844 = vmatprep.subr.mxu1 %v773_v46  ;;  %v674_v55 = vsub.f32 %v10841_v40, %v13576_v48  ;;  %v195_v57 = vsel %vm160_vm0, %v22_v45, 0  ;;  %v10875_v58 = vsub.f32 %v201_v25, %v10824_v33 }
   0xe   :  { %7 = vsyncpa [#allocation3], 0  ;;  %9815 = vmatpush3.xpose.msra.mxu0 %v10801_v22  ;;  %9845 = vmatpush3.xpose.msra.mxu1 %v661_v47  ;;  %v787_v61 = vand.u32 4294901760, %v786_v53  ;;  %v10884_v62 = vand.u32 4294901760, %v243_v49  ;;  %v240_v63 = vsel %vm160_vm0, %v37_v50, 0  ;;  %v10888_v0 = vsub.f32 %v246_v31, %v10850_v43  ;;  %v20_v5 = vld [vmem:[%s13564_s0 + $0x40] sm:$0xff] }
   0xf   :  { %9816 = vmatprep.subr.mxu0 %v10820_v30  ;;  %9846 = vmatprep.subr.mxu1 %v780_v51  ;;  %v675_v1 = vand.u32 4294901760, %v674_v55  ;;  %v13574_v2 = vand.u32 4294901760, %v10871_v56  ;;  %v10892_v3 = vand.u32 4294901760, %v195_v57  ;;  %v13573_v4 = vand.u32 4294901760, %v10875_v58  ;;  %v35_v18 = vld [vmem:[%s13564_s0 + $0xb8] sm:$0xff]  ;;  %v34_v46 = vld [vmem:[%s13564_s0 + $0xb0] sm:$0xff] }
  0x10   :  { %v13571_v6 = vand.u32 4294901760, %v10888_v0  ;;  %v192_v7 = vsel %vm160_vm0, %v21_v59, 0  ;;  %v10901_v8 = vsub.f32 %v198_v39, %v10865_v54  ;;  %v237_v12 = vsel %vm160_vm0, %v36_v60, 0  ;;  %v19_v39 = vld [vmem:[%s13564_s0 + $0x38] sm:$0xff]  ;;  %v18_v59 = vld [vmem:[%s13564_s0 + $0x30] sm:$0xff] }
  0x11   :  { %v793_v13 = vsub.f32 %v10871_v56, %v13574_v2  ;;  %v681_v14 = vsub.f32 %v10875_v58, %v13573_v4  ;;  %v10910_v16 = vand.u32 4294901760, %v240_v63  ;;  %v10912_v17 = vand.u32 4294901760, %v192_v7 }
  0x12   :  { %9817 = vmatpush3.xpose.msra.mxu0 %v10824_v33  ;;  %9847 = vmatpush3.xpose.msra.mxu1 %v668_v52  ;;  %v800_v19 = vsub.f32 %v10888_v0, %v13571_v6  ;;  %v13570_v25 = vand.u32 4294901760, %v10901_v8  ;;  %v10923_v27 = vsub.f32 %v243_v49, %v10884_v62  ;;  %v189_v31 = vsel %vm160_vm0, %v20_v5, 0  ;;  %v33_v5 = vld [vmem:[%s13564_s0 + $0xa8] sm:$0xff] }
  0x13   :  { %9818 = vmatprep.subr.mxu0 %v10850_v43  ;;  %9848 = vmatprep.subr.mxu1 %v787_v61  ;;  %v794_v36 = vand.u32 4294901760, %v793_v13  ;;  %v10927_v37 = vand.u32 4294901760, %v237_v12  ;;  %v10930_v38 = vsub.f32 %v195_v57, %v10892_v3  ;;  %v682_v41 = vand.u32 4294901760, %v681_v14 }
  0x14   :  { %v13568_v42 = vand.u32 4294901760, %v10923_v27  ;;  %v234_v45 = vsel %vm160_vm0, %v35_v18, 0  ;;  %v688_v47 = vsub.f32 %v10901_v8, %v13570_v25  ;;  %v10943_v49 = vand.u32 4294901760, %v189_v31 }
  0x15   :  { %13818 = vst [vmem:[#allocation5_spill] sm:$0xff] %v10927_v37  ;;  %v13567_v50 = vand.u32 4294901760, %v10930_v38  ;;  %v10947_v51 = vsub.f32 %v240_v63, %v10910_v16  ;;  %v801_v52 = vand.u32 4294901760, %v800_v19  ;;  %v10950_v53 = vand.u32 4294901760, %v234_v45 }
  0x16   :  { %13819 = vst [vmem:[#allocation6_spill] sm:$0xff] %v10943_v49  ;;  %9819 = vmatpush3.xpose.msra.mxu0 %v10865_v54  ;;  %9849 = vmatpush3.xpose.msra.mxu1 %v675_v1  ;;  %v186_v55 = vsel %vm160_vm0, %v19_v39, 0  ;;  %v10954_v57 = vsub.f32 %v192_v7, %v10912_v17  ;;  %v807_v60 = vsub.f32 %v10923_v27, %v13568_v42  ;;  %v231_v63 = vsel %vm160_vm0, %v34_v46, 0  ;;  %v17_v46 = vld [vmem:[%s13564_s0 + $0x28] sm:$0xff] }
  0x17   :  { %13820 = vst [vmem:[#allocation7_spill] sm:$0xff] %v10950_v53  ;;  %9820 = vmatprep.subr.mxu0 %v10884_v62  ;;  %9850 = vmatprep.subr.mxu1 %v794_v36  ;;  %v13569_v61 = vand.u32 4294901760, %v10947_v51  ;;  %v10966_v1 = vsub.f32 %v237_v12, %v10927_v37  ;;  %v689_v7 = vand.u32 4294901760, %v688_v47  ;;  %v695_v13 = vsub.f32 %v10930_v38, %v13567_v50 }
  0x18   :  { %v13572_v14 = vand.u32 4294901760, %v10954_v57  ;;  %v183_v18 = vsel %vm160_vm0, %v18_v59, 0  ;;  %v10977_v19 = vand.u32 4294901760, %v186_v55  ;;  %v10979_v12 = vand.u32 4294901760, %v231_v63 }
  0x19   :  { %v10982_v36 = vsub.f32 %v189_v31, %v10943_v49  ;;  %v228_v39 = vsel %vm160_vm0, %v33_v5, 0  ;;  %v808_v47 = vand.u32 4294901760, %v807_v60  ;;  %v13575_v59 = vand.u32 4294901760, %v10966_v1  ;;  %v32_v31 = vld [vmem:[%s13564_s0 + $0xa0] sm:$0xff] }
  0x1a   :  { %9821 = vmatpush3.xpose.msra.mxu0 %v10892_v3  ;;  %9851 = vmatpush3.xpose.msra.mxu1 %v682_v41  ;;  %13821 = vst [vmem:[#allocation8_spill] sm:$0xff] %v10977_v19  ;;  %13822 = vst [vmem:[#allocation9_spill] sm:$0xff] %v10979_v12  ;;  %v814_v41 = vsub.f32 %v10947_v51, %v13569_v61  ;;  %v10994_v50 = vsub.f32 %v234_v45, %v10950_v53  ;;  %v10999_v5 = vand.u32 4294901760, %v183_v18  ;;  %vm3981_vm1 = vcmask 39936  }
  0x1b   :  { %9822 = vmatprep.subr.mxu0 %v10910_v16  ;;  %9852 = vmatprep.subr.mxu1 %v801_v52  ;;  %v696_v42 = vand.u32 4294901760, %v695_v13  ;;  %v702_v52 = vsub.f32 %v10954_v57, %v13572_v14  ;;  %v11004_v60 = vand.u32 4294901760, %v228_v39  ;;  %v180_v61 = vsel %vm160_vm0, %v17_v46, 0 }
  0x1c   :  { %13823 = vst [vmem:[#allocation10_spill] sm:$0xff] %v10999_v5  ;;  %v13579_v45 = vand.u32 4294901760, %v10982_v36  ;;  %v11010_v25 = vsub.f32 %v186_v55, %v10977_v19  ;;  %v225_v6 = vsel %vm160_vm0, %v32_v31, 0  ;;  %v11014_v13 = vsub.f32 %v231_v63, %v10979_v12  ;;  %v16_v55 = vld [vmem:[%s13564_s0 + $0x20] sm:$0xff] }
  0x1d   :  { %13824 = vst [vmem:[#allocation11_spill] sm:$0xff] %v11004_v60  ;;  %v815_v14 = vand.u32 4294901760, %v814_v41  ;;  %v821_v46 = vsub.f32 %v10966_v1, %v13575_v59  ;;  %v11024_v4 = vand.u32 4294901760, %v180_v61  ;;  %v11027_v31 = vsub.f32 %v183_v18, %v10999_v5 }
  0x1e   :  { %9823 = vmatpush3.xpose.msra.mxu0 %v10912_v17  ;;  %9853 = vmatpush3.xpose.msra.mxu1 %v689_v7  ;;  %v13581_v7 = vand.u32 4294901760, %v10994_v50  ;;  %v703_v63 = vand.u32 4294901760, %v702_v52  ;;  %v11029_v2 = vand.u32 4294901760, %v225_v6  ;;  %v11035_v41 = vsub.f32 %v228_v39, %v11004_v60 }
  0x1f   :  { %9824 = vmatprep.subr.mxu0 %v10927_v37  ;;  %9854 = vmatprep.subr.mxu1 %v808_v47  ;;  %13825 = vst [vmem:[#allocation12_spill] sm:$0xff] %v11024_v4  ;;  %13826 = vst [vmem:[#allocation13_spill] sm:$0xff] %v11027_v31  ;;  %v31_v47 = vld [vmem:[%s13564_s0 + $0x98] sm:$0xff]  ;;  %v709_v59 = vsub.f32 %v10982_v36, %v13579_v45  ;;  %v13584_v18 = vand.u32 4294901760, %v11010_v25  ;;  %v13585_v52 = vand.u32 4294901760, %v11014_v13  ;;  %v177_v48 = vsel %vm160_vm0, %v16_v55, 0 }
  0x20   :  { %13827 = vst [vmem:[#allocation14_spill] sm:$0xff] %v11029_v2  ;;  %13828 = vst [vmem:[#allocation15_spill] sm:$0xff] %v11035_v41  ;;  %v822_v44 = vand.u32 4294901760, %v821_v46  ;;  %v828_v39 = vsub.f32 %v10994_v50, %v13581_v7  ;;  %v222_v34 = vsel %vm160_vm0, %v31_v47, 0  ;;  %v15_v45 = vld [vmem:[%s13564_s0 + $0x18] sm:$0xff]  ;;  %v11054_v32 = vsub.f32 %v180_v61, %v11024_v4  ;;  %v30_v46 = vld [vmem:[%s13564_s0 + $0x90] sm:$0xff] }
  0x21   :  { %v11056_v55 = vand.u32 4294901760, %v177_v48  ;;  %v11063_v7 = vsub.f32 %v225_v6, %v11029_v2  ;;  %v710_v47 = vand.u32 4294901760, %v709_v59  ;;  %v716_v61 = vsub.f32 %v11010_v25, %v13584_v18 }
  0x22   :  { %9825 = vmatpush3.xpose.msra.mxu0 %v10943_v49  ;;  %9855 = vmatpush3.xpose.msra.mxu1 %v696_v42  ;;  %v13588_v42 = vand.u32 4294901760, %v11027_v31  ;;  %13829 = vst [vmem:[#allocation16_spill] sm:$0xff] %v11054_v32  ;;  %v835_v29 = vsub.f32 %v11014_v13, %v13585_v52  ;;  %v829_v28 = vand.u32 4294901760, %v828_v39  ;;  %v174_v6 = vsel %vm160_vm0, %v15_v45, 0  ;;  %v14_v52 = vld [vmem:[%s13564_s0 + $0x10] sm:$0xff] }
  0x23   :  { %9826 = vmatprep.subr.mxu0 %v10950_v53  ;;  %9856 = vmatprep.subr.mxu1 %v815_v14  ;;  %13830 = vst [vmem:[#allocation17_spill] sm:$0xff] %v11056_v55  ;;  %13831 = vst [vmem:[#allocation18_spill] sm:$0xff] %v11063_v7  ;;  %v11073_v14 = vand.u32 4294901760, %v222_v34  ;;  %v219_v18 = vsel %vm160_vm0, %v30_v46, 0  ;;  %v13833_v39 = vand.u32 4294901760, %v11035_v41  ;;  %v140_v46 = vld [vmem:[%s13565_s1] sm:$0xff] }
  0x24   :  { %v723_v59 = vsub.f32 %v11027_v31, %v13588_v42  ;;  %v11092_v42 = vsub.f32 %v177_v48, %v11056_v55  ;;  %v11098_v53 = vand.u32 4294901760, %v174_v6  ;;  %vm3985_vm2 = vcmask 1044480  }
  0x25   :  { %13832 = vst [vmem:[#allocation19_spill] sm:$0xff] %v11073_v14  ;;  %v842_v45 = vsub.f32 %v11035_v41, %v13833_v39  ;;  %v11101_v39 = vand.u32 4294901760, %v219_v18  ;;  %v11106_v41 = vsub.f32 %v222_v34, %v11073_v14  ;;  %vm5883_vm3 = vcmask 31744  }
  0x26   :  { %9827 = vmatpush3.xpose.msra.mxu0 %v10977_v19  ;;  %9857 = vmatpush3.xpose.msra.mxu1 %v703_v63  ;;  %13834 = vst [vmem:[#allocation20_spill] sm:$0xff] %v11092_v42  ;;  %v717_v63 = vand.u32 4294901760, %v716_v61  ;;  %v836_v19 = vand.u32 4294901760, %v835_v29  ;;  %v724_v61 = vand.u32 4294901760, %v723_v59  ;;  %v13836_v29 = vand.u32 4294901760, %v11054_v32 }
  0x27   :  { %9828 = vmatprep.subr.mxu0 %v10979_v12  ;;  %9858 = vmatprep.subr.mxu1 %v822_v44  ;;  %v29_v44 = vld [vmem:[%s13564_s0 + $0x88] sm:$0xff]  ;;  %13835 = vst [vmem:[#allocation21_spill] sm:$0xff] %v11101_v39  ;;  %v171_v12 = vsel %vm160_vm0, %v14_v52, 0  ;;  %v162_v52 = vsel %vm160_vm0, %v140_v46, 0  ;;  %v11131_v46 = vsub.f32 %v174_v6, %v11098_v53  ;;  %v11137_v49 = vsub.f32 %v219_v18, %v11101_v39 }
  0x28   :  { %v216_v48 = vsel %vm160_vm0, %v29_v44, 0  ;;  %v13837_v44 = vand.u32 4294901760, %v11063_v7  ;;  %v11122_v31 = vand.u32 4294901760, %v162_v52  ;;  %v11125_v59 = vand.u32 4294901760, %v171_v12 }
  0x29   :  { %vm5887_vm4 = vcmask 1043456   ;;  %vm7785_vm5 = vcmask 23552   ;;  %vm7789_vm6 = vcmask 1042432  }
  0x2a   :  { %9829 = vmatpush3.xpose.msra.mxu0 %v10999_v5  ;;  %9859 = vmatpush3.xpose.msra.mxu1 %v710_v47  ;;  %v13_v47 = vld [vmem:[%s13564_s0 + $0x8] sm:$0xff]  ;;  %v730_v5 = vsub.f32 %v11054_v32, %v13836_v29  ;;  %v849_v34 = vsub.f32 %v11063_v7, %v13837_v44  ;;  %v11127_v29 = vand.u32 4294901760, %v216_v48  ;;  %v13840_v7 = vand.u32 4294901760, %v11106_v41 }
  0x2b   :  { %9830 = vmatprep.subr.mxu0 %v11004_v60  ;;  %9860 = vmatprep.subr.mxu1 %v829_v28  ;;  %v28_v28 = vld [vmem:[%s13564_s0 + $0x80] sm:$0xff]  ;;  %v843_v60 = vand.u32 4294901760, %v842_v45  ;;  %v168_v32 = vsel %vm160_vm0, %v13_v47, 0 }
  0x2c   :  { %13838 = vst [vmem:[#allocation22_spill] sm:$0xff] %v11127_v29  ;;  %v213_v44 = vsel %vm160_vm0, %v28_v28, 0  ;;  %v731_v47 = vand.u32 4294901760, %v730_v5  ;;  %9876 = vmatprep.mubr.f32.mxu1 %v11122_v31  ;;  %v850_v6 = vand.u32 4294901760, %v849_v34  ;;  %v10734_v28 = vmov 0  }
  0x2d   :  { %10630 = vset.pattern.permute.xlu0 %v10734_v28  ;;  %10631 = vset.pattern.permute.xlu1 %v10734_v28  ;;  %v11159_v34 = vand.u32 4294901760, %v213_v44  ;;  %v856_v37 = vsub.f32 %v11106_v41, %v13840_v7  ;;  %v11173_v5 = vsub.f32 %v216_v48, %v11127_v29 }
  0x2e   :  { %9831 = vmatpush3.xpose.msra.mxu0 %v11024_v4  ;;  %9861 = vmatpush3.xpose.msra.mxu1 %v717_v63  ;;  %v12_v63 = vld [vmem:[%s13564_s0] sm:$0xff]  ;;  %v11143_v4 = vsub.f32 %v162_v52, %v11122_v31  ;;  %v9795_v52 = vld [vmem:[%s13565_s1 + $0x8] sm:$0xff] }
  0x2f   :  { %9832 = vmatprep.subr.mxu0 %v11029_v2  ;;  %9862 = vmatprep.subr.mxu1 %v836_v19  ;;  %v13839_v19 = vand.u32 4294901760, %v11092_v42  ;;  %v11149_v2 = vand.u32 4294901760, %v168_v32  ;;  %v857_v48 = vand.u32 4294901760, %v856_v37 }
  0x30   :  { %v11152_v18 = vand.u32 4294901760, %v11143_v4  ;;  %157 = vperm.xlu0 %10630, %v9795_v52  }
  0x31   :  { %v737_v45 = vsub.f32 %v11092_v42, %v13839_v19  ;;  %v165_v19 = vsel %vm160_vm0, %v12_v63, 0  ;;  %v11163_v42 = vsub.f32 %v171_v12, %v11125_v59  ;;  %v13842_v12 = vand.u32 4294901760, %v11131_v46 }
  0x32   :  { %9833 = vmatpush3.xpose.msra.mxu0 %v11056_v55  ;;  %9863 = vmatpush3.xpose.msra.mxu1 %v724_v61  ;;  %v648_v61 = vsub.f32 %v11143_v4, %v11152_v18  ;;  %v11181_v7 = vand.u32 4294901760, %v165_v19 }
  0x33   :  { %9834 = vmatprep.subr.mxu0 %v11073_v14  ;;  %9864 = vmatprep.subr.mxu1 %v843_v60  ;;  %v738_v63 = vand.u32 4294901760, %v737_v45  ;;  %v744_v60 = vsub.f32 %v11131_v46, %v13842_v12  ;;  %v13619_v28 = vand.u32 4294901760, %v11163_v42  ;;  %v11185_v14 = vsub.f32 %v168_v32, %v11149_v2 }
  0x34   :  { %v11175_v55 = vand.u32 4294901760, %v648_v61  ;;  %v13844_v45 = vand.u32 4294901760, %v11137_v49  ;;  %v11193_v61 = vsub.f32 %v213_v44, %v11159_v34  ;;  %v11202_v12 = vsub.f32 %v165_v19, %v11181_v7 }
  0x35   :  { %13843 = vst [vmem:[#allocation24_spill] sm:$0xff] %v11185_v14  ;;  %v745_v32 = vand.u32 4294901760, %v744_v60  ;;  %v13623_v37 = vand.u32 4294901760, %v11185_v14 }
  0x36   :  { %13841 = vst [vmem:[#allocation23_spill] sm:$0xff] %v11175_v55  ;;  %9835 = vmatpush3.xpose.msra.mxu0 %v11098_v53  ;;  %9865 = vmatpush3.xpose.msra.mxu1 %v731_v47  ;;  %v863_v52 = vsub.f32 %v11137_v49, %v13844_v45  ;;  %v13620_v47 = vand.u32 4294901760, %v11173_v5  ;;  %v13621_v19 = vand.u32 4294901760, %v11202_v12 }
  0x37   :  { %9836 = vmatprep.subr.mxu0 %v11101_v39  ;;  %9866 = vmatprep.subr.mxu1 %v850_v6  ;;  %v751_v6 = vsub.f32 %v11163_v42, %v13619_v28  ;;  %v758_v28 = vsub.f32 %v11185_v14, %v13623_v37  ;;  %v13856_v37 = vld [vmem:[#allocation11_spill] sm:$0xff] }
  0x38   :  { %9842 = vmatprep.mubr.f32.mxu0 %v11175_v55  ;;  %v864_v44 = vand.u32 4294901760, %v863_v52  ;;  %v870_v45 = vsub.f32 %v11173_v5, %v13620_v47 }
  0x39   :  { %v752_v60 = vand.u32 4294901760, %v751_v6  ;;  %v759_v47 = vand.u32 4294901760, %v758_v28  ;;  %v13845_v28 = vld [vmem:[#allocation5_spill] sm:$0xff] }
  0x3a   :  { %9837 = vmatpush3.xpose.msra.mxu0 %v11125_v59  ;;  %9867 = vmatpush3.xpose.msra.mxu1 %v738_v63  ;;  %v13622_v63 = vand.u32 4294901760, %v11193_v61 }
  0x3b   :  { %9838 = vmatprep.subr.mxu0 %v11127_v29  ;;  %9868 = vmatprep.subr.mxu1 %v857_v48  ;;  %v871_v48 = vand.u32 4294901760, %v870_v45  ;;  %v13847_v45 = vld [vmem:[#allocation6_spill] sm:$0xff] }
  0x3c   :  { %v877_v52 = vsub.f32 %v11193_v61, %v13622_v63  ;;  %v13855_v63 = vld [vmem:[#allocation10_spill] sm:$0xff] }
  0x3e   :  { %9839 = vmatpush3.xpose.msra.mxu0 %v11149_v2  ;;  %9869 = vmatpush3.xpose.msra.mxu1 %v745_v32  ;;  %v765_v32 = vsub.f32 %v11202_v12, %v13621_v19  ;;  %v878_v6 = vand.u32 4294901760, %v877_v52  ;;  %v13850_v52 = vld [vmem:[#allocation16_spill] sm:$0xff] }
  0x3f   :  { %9840 = vmatprep.subr.mxu0 %v11159_v34  ;;  %9870 = vmatprep.subr.mxu1 %v864_v44  ;;  %v13854_v19 = vld [vmem:[#allocation20_spill] sm:$0xff] }
  0x40   :  { %v766_v44 = vand.u32 4294901760, %v765_v32  ;;  %v13851_v32 = vld [vmem:[#allocation8_spill] sm:$0xff] }
  0x42   :  { %9841 = vmatpush3.xpose.msra.mxu0 %v11181_v7  ;;  %9871 = vmatpush3.xpose.msra.mxu1 %v752_v60  ;;  %v13848_v60 = vld [vmem:[#allocation15_spill] sm:$0xff] }
  0x43   :  { %9872 = vmatprep.subr.mxu1 %v871_v48  ;;  %9878 = vmatprep.subr.mxu0 %v10799_v21  ;;  %v13849_v48 = vld [vmem:[#allocation7_spill] sm:$0xff] }
  0x45   :  { %9843 = vmatmul.mubr.f32.vlgmr.msra.gmra.mxu0 %v11175_v55  ;;  %v13857_v55 = vld [vmem:[#allocation12_spill] sm:$0xff] }
  0x46   :  { %9873 = vmatpush3.xpose.msra.mxu1 %v759_v47  ;;  %9879 = vmatpush3.xpose.msra.mxu0 %v10804_v23  ;;  %v13846_v47 = vld [vmem:[#allocation13_spill] sm:$0xff] }
  0x47   :  { %9874 = vmatprep.subr.mxu1 %v878_v6  ;;  %9880 = vmatprep.subr.mxu0 %v10808_v24  ;;  %v13852_v6 = vld [vmem:[#allocation18_spill] sm:$0xff] }
  0x48   :  { %9910 = vmatprep.mubr.f32.mxu0 %v11143_v4 }
  0x4a   :  { %9875 = vmatpush3.xpose.msra.mxu1 %v766_v44  ;;  %9881 = vmatpush3.xpose.msra.mxu0 %v10812_v26  ;;  %v13853_v44 = vld [vmem:[#allocation9_spill] sm:$0xff] }
  0x4b   :  { %9882 = vmatprep.subr.mxu0 %v10828_v35  ;;  %9912 = vmatprep.subr.mxu1 %v10774_v9 }
  0x4d   :  { %9877 = vmatmul.mubr.f32.vlgmr.msra.gmra.mxu1 %v11122_v31 }
  0x4e   :  { %9883 = vmatpush3.xpose.msra.mxu0 %v10841_v40  ;;  %9913 = vmatpush3.xpose.msra.mxu1 %v10776_v10 }
  0x4f   :  { %9884 = vmatprep.subr.mxu0 %v10871_v56  ;;  %9914 = vmatprep.subr.mxu1 %v10778_v11 }
  0x50   :  { %9944 = vmatprep.mubr.f32.mxu1 %v11152_v18 }
  0x52   :  { %9885 = vmatpush3.xpose.msra.mxu0 %v10875_v58  ;;  %9915 = vmatpush3.xpose.msra.mxu1 %v10787_v15 }
  0x53   :  { %9886 = vmatprep.subr.mxu0 %v10888_v0  ;;  %9916 = vmatprep.subr.mxu1 %v10796_v20 }
  0x56   :  { %9887 = vmatpush3.xpose.msra.mxu0 %v10901_v8  ;;  %9917 = vmatpush3.xpose.msra.mxu1 %v10801_v22 }
  0x57   :  { %9888 = vmatprep.subr.mxu0 %v10923_v27  ;;  %9918 = vmatprep.subr.mxu1 %v10820_v30 }
  0x5a   :  { %9889 = vmatpush3.xpose.msra.mxu0 %v10930_v38  ;;  %9919 = vmatpush3.xpose.msra.mxu1 %v10824_v33 }
  0x5b   :  { %9890 = vmatprep.subr.mxu0 %v10947_v51  ;;  %9920 = vmatprep.subr.mxu1 %v10850_v43 }
  0x5e   :  { %9891 = vmatpush3.xpose.msra.mxu0 %v10954_v57  ;;  %9921 = vmatpush3.xpose.msra.mxu1 %v10865_v54 }
  0x5f   :  { %9892 = vmatprep.subr.mxu0 %v10966_v1  ;;  %9922 = vmatprep.subr.mxu1 %v10884_v62 }
  0x62   :  { %9893 = vmatpush3.xpose.msra.mxu0 %v10982_v36  ;;  %9923 = vmatpush3.xpose.msra.mxu1 %v10892_v3 }
  0x63   :  { %9894 = vmatprep.subr.mxu0 %v10994_v50  ;;  %9924 = vmatprep.subr.mxu1 %v10910_v16 }
  0x66   :  { %9895 = vmatpush3.xpose.msra.mxu0 %v11010_v25  ;;  %9925 = vmatpush3.xpose.msra.mxu1 %v10912_v17 }
  0x67   :  { %9896 = vmatprep.subr.mxu0 %v11014_v13  ;;  %9926 = vmatprep.subr.mxu1 %v13845_v28 }
  0x6a   :  { %9897 = vmatpush3.xpose.msra.mxu0 %v13846_v47  ;;  %9927 = vmatpush3.xpose.msra.mxu1 %v13847_v45 }
  0x6b   :  { %9898 = vmatprep.subr.mxu0 %v13848_v60  ;;  %9928 = vmatprep.subr.mxu1 %v13849_v48 }
  0x6e   :  { %9899 = vmatpush3.xpose.msra.mxu0 %v13850_v52  ;;  %9929 = vmatpush3.xpose.msra.mxu1 %v13851_v32  ;;  %v13858_v52 = vld [vmem:[#allocation14_spill] sm:$0xff] }
  0x6f   :  { %9900 = vmatprep.subr.mxu0 %v13852_v6  ;;  %9930 = vmatprep.subr.mxu1 %v13853_v44  ;;  %v13859_v6 = vld [vmem:[#allocation17_spill] sm:$0xff] }
  0x72   :  { %9901 = vmatpush3.xpose.msra.mxu0 %v13854_v19  ;;  %9931 = vmatpush3.xpose.msra.mxu1 %v13855_v63  ;;  %v13860_v19 = vld [vmem:[#allocation19_spill] sm:$0xff] }
  0x73   :  { %9902 = vmatprep.subr.mxu0 %v11106_v41  ;;  %9932 = vmatprep.subr.mxu1 %v13856_v37 }
  0x76   :  { %9903 = vmatpush3.xpose.msra.mxu0 %v11131_v46  ;;  %9933 = vmatpush3.xpose.msra.mxu1 %v13857_v55 }
  0x77   :  { %9904 = vmatprep.subr.mxu0 %v11137_v49  ;;  %9934 = vmatprep.subr.mxu1 %v13858_v52 }
  0x7a   :  { %9905 = vmatpush3.xpose.msra.mxu0 %v11163_v42  ;;  %9935 = vmatpush3.xpose.msra.mxu1 %v13859_v6  ;;  %v13861_v6 = vand.u32 4294901760, %v10799_v21  ;;  %v13865_v21 = vand.u32 4294901760, %v10828_v35  ;;  %v13870_v35 = vand.u32 4294901760, %v10901_v8  ;;  %v75_v8 = vld [vmem:[%s13564_s0 + $0x1f8] sm:$0xff] }
  0x7b   :  { %9906 = vmatprep.subr.mxu0 %v11173_v5  ;;  %9936 = vmatprep.subr.mxu1 %v13860_v19 }
  0x7e   :  { %9907 = vmatpush3.xpose.msra.mxu0 %v11185_v14  ;;  %9937 = vmatpush3.xpose.msra.mxu1 %v11098_v53  ;;  %v13862_v14 = vand.u32 4294901760, %v10804_v23  ;;  %v13866_v23 = vand.u32 4294901760, %v10841_v40  ;;  %v13878_v40 = vand.u32 4294901760, %v11010_v25  ;;  %v13888_v25 = vand.u32 4294901760, %v11106_v41  ;;  %v58_v41 = vld [vmem:[%s13564_s0 + $0x170] sm:$0xff] }
  0x7f   :  { %9908 = vmatprep.subr.mxu0 %v11193_v61  ;;  %9938 = vmatprep.subr.mxu1 %v11101_v39  ;;  %v13863_v39 = vand.u32 4294901760, %v10808_v24  ;;  %v13867_v24 = vand.u32 4294901760, %v10871_v56  ;;  %v13881_v56 = vand.u32 4294901760, %v13848_v60  ;;  %v72_v60 = vld [vmem:[%s13564_s0 + $0x1e0] sm:$0xff] }
  0x82   :  { %9909 = vmatpush3.xpose.msra.mxu0 %v11202_v12  ;;  %9939 = vmatpush3.xpose.msra.mxu1 %v11125_v59 }
  0x83   :  { %9940 = vmatprep.subr.mxu1 %v11127_v29  ;;  %9946 = vmatprep.subr.mxu0 %v13861_v6  ;;  %v13864_v29 = vand.u32 4294901760, %v10812_v26  ;;  %v13868_v26 = vand.u32 4294901760, %v10875_v58  ;;  %v13882_v58 = vld [vmem:[#allocation16_spill] sm:$0xff] }
  0x85   :  { %9911 = vmatmul.mubr.f32.vlgmr.msra.gmra.mxu0 %v11143_v4 }
  0x86   :  { %9941 = vmatpush3.xpose.msra.mxu1 %v11149_v2  ;;  %9947 = vmatpush3.xpose.msra.mxu0 %v13862_v14  ;;  %v73_v14 = vld [vmem:[%s13564_s0 + $0x1e8] sm:$0xff] }
  0x87   :  { %9942 = vmatprep.subr.mxu1 %v11159_v34  ;;  %9948 = vmatprep.subr.mxu0 %v13863_v39  ;;  %v13891_v39 = vand.u32 4294901760, %v11163_v42  ;;  %v57_v42 = vld [vmem:[%s13564_s0 + $0x168] sm:$0xff] }
  0x88   :  { %9978 = vmatprep.mubr.f32.mxu0 %v11122_v31 }
  0x8a   :  { %9943 = vmatpush3.xpose.msra.mxu1 %v11181_v7  ;;  %9949 = vmatpush3.xpose.msra.mxu0 %v13864_v29  ;;  %v13892_v29 = vld [vmem:[#allocation17_spill] sm:$0xff] }
  0x8b   :  { %9950 = vmatprep.subr.mxu0 %v13865_v21  ;;  %9980 = vmatprep.subr.mxu1 %v10774_v9  ;;  %v13869_v9 = vand.u32 4294901760, %v10888_v0  ;;  %v13884_v0 = vld [vmem:[#allocation18_spill] sm:$0xff]  ;;  %v13897_v21 = vld [vmem:[#allocation21_spill] sm:$0xff] }
  0x8d   :  { %9945 = vmatmul.mubr.f32.vlgmr.msra.gmra.mxu1 %v11152_v18 }
  0x8e   :  { %9951 = vmatpush3.xpose.msra.mxu0 %v13866_v23  ;;  %9981 = vmatpush3.xpose.msra.mxu1 %v10776_v10  ;;  %v13871_v10 = vand.u32 4294901760, %v10923_v27  ;;  %v354_v27 = vsel %vm160_vm0, %v75_v8, 0  ;;  %v56_v23 = vld [vmem:[%s13564_s0 + $0x160] sm:$0xff] }
  0x8f   :  { %9952 = vmatprep.subr.mxu0 %v13867_v24  ;;  %9982 = vmatprep.subr.mxu1 %v10778_v11  ;;  %v13872_v11 = vand.u32 4294901760, %v10930_v38  ;;  %v59_v38 = vld [vmem:[%s13564_s0 + $0x178] sm:$0xff] }
  0x90   :  { %10012 = vmatprep.mubr.f32.mxu1 %v11122_v31 }
  0x92   :  { %9953 = vmatpush3.xpose.msra.mxu0 %v13868_v26  ;;  %9983 = vmatpush3.xpose.msra.mxu1 %v10787_v15  ;;  %v13873_v15 = vand.u32 4294901760, %v10947_v51  ;;  %v13889_v51 = vand.u32 4294901760, %v11131_v46  ;;  %v303_v46 = vsel %vm160_vm0, %v58_v41, 0 }
  0x93   :  { %9954 = vmatprep.subr.mxu0 %v13869_v9  ;;  %9984 = vmatprep.subr.mxu1 %v10796_v20  ;;  %v13874_v20 = vand.u32 4294901760, %v10954_v57  ;;  %v11378_v57 = vand.u32 4294901760, %v354_v27 }
  0x96   :  { %9955 = vmatpush3.xpose.msra.mxu0 %v13870_v35  ;;  %9985 = vmatpush3.xpose.msra.mxu1 %v10801_v22  ;;  %v13875_v22 = vand.u32 4294901760, %v10966_v1  ;;  %v306_v1 = vsel %vm160_vm0, %v59_v38, 0  ;;  %v13898_v35 = vand.u32 4294901760, %v11202_v12 }
  0x97   :  { %9956 = vmatprep.subr.mxu0 %v13871_v10  ;;  %9986 = vmatprep.subr.mxu1 %v10820_v30  ;;  %v13876_v30 = vand.u32 4294901760, %v10982_v36  ;;  %v13890_v36 = vand.u32 4294901760, %v11137_v49 }
  0x9a   :  { %9957 = vmatpush3.xpose.msra.mxu0 %v13872_v11  ;;  %9987 = vmatpush3.xpose.msra.mxu1 %v10824_v33  ;;  %v13877_v33 = vand.u32 4294901760, %v10994_v50  ;;  %v74_v50 = vld [vmem:[%s13564_s0 + $0x1f0] sm:$0xff] }
  0x9b   :  { %9958 = vmatprep.subr.mxu0 %v13873_v15  ;;  %9988 = vmatprep.subr.mxu1 %v10850_v43  ;;  %v13879_v43 = vand.u32 4294901760, %v11014_v13  ;;  %v351_v13 = vsel %vm160_vm0, %v74_v50, 0  ;;  %v297_v15 = vsel %vm160_vm0, %v56_v23, 0  ;;  %v69_v50 = vld [vmem:[%s13564_s0 + $0x1c8] sm:$0xff] }
  0x9c   :  { %v11396_v49 = vand.u32 4294901760, %v351_v13 }
  0x9e   :  { %9959 = vmatpush3.xpose.msra.mxu0 %v13874_v20  ;;  %9989 = vmatpush3.xpose.msra.mxu1 %v10865_v54  ;;  %v13880_v54 = vand.u32 4294901760, %v13846_v47  ;;  %v11425_v6 = vsub.f32 %v351_v13, %v11396_v49 }
  0x9f   :  { %9960 = vmatprep.subr.mxu0 %v13875_v22  ;;  %9990 = vmatprep.subr.mxu1 %v10884_v62  ;;  %v13883_v62 = vand.u32 4294901760, %v13882_v58  ;;  %v13899_v22 = vld [vmem:[#allocation22_spill] sm:$0xff] }
  0xa0   :  { %v13641_v11 = vand.u32 4294901760, %v11425_v6 }
  0xa2   :  { %9961 = vmatpush3.xpose.msra.mxu0 %v13876_v30  ;;  %9991 = vmatpush3.xpose.msra.mxu1 %v10892_v3  ;;  %v13885_v3 = vand.u32 4294901760, %v13884_v0 }
  0xa3   :  { %9962 = vmatprep.subr.mxu0 %v13877_v33  ;;  %9992 = vmatprep.subr.mxu1 %v10910_v16  ;;  %v13886_v16 = vld [vmem:[#allocation20_spill] sm:$0xff]  ;;  %v70_v33 = vld [vmem:[%s13564_s0 + $0x1d0] sm:$0xff] }
  0xa4   :  { %v339_v8 = vsel %vm160_vm0, %v70_v33, 0  ;;  %v67_v33 = vld [vmem:[%s13564_s0 + $0x1b8] sm:$0xff] }
  0xa6   :  { %9963 = vmatpush3.xpose.msra.mxu0 %v13878_v40  ;;  %9993 = vmatpush3.xpose.msra.mxu1 %v10912_v17  ;;  %v13887_v17 = vand.u32 4294901760, %v13886_v16 }
  0xa7   :  { %9964 = vmatprep.subr.mxu0 %v13879_v43  ;;  %9994 = vmatprep.subr.mxu1 %v13845_v28  ;;  %v348_v28 = vsel %vm160_vm0, %v73_v14, 0  ;;  %v11469_v43 = vand.u32 4294901760, %v297_v15 }
  0xaa   :  { %9965 = vmatpush3.xpose.msra.mxu0 %v13880_v54  ;;  %9995 = vmatpush3.xpose.msra.mxu1 %v13847_v45  ;;  %v11412_v45 = vand.u32 4294901760, %v303_v46 }
  0xab   :  { %9966 = vmatprep.subr.mxu0 %v13881_v56  ;;  %9996 = vmatprep.subr.mxu1 %v13849_v48  ;;  %v13894_v48 = vld [vmem:[#allocation24_spill] sm:$0xff] }
  0xac   :  { %v11435_v24 = vsub.f32 %v303_v46, %v11412_v45  ;;  %v68_v46 = vld [vmem:[%s13564_s0 + $0x1c0] sm:$0xff] }
  0xae   :  { %9967 = vmatpush3.xpose.msra.mxu0 %v13883_v62  ;;  %9997 = vmatpush3.xpose.msra.mxu1 %v13851_v32  ;;  %v300_v32 = vsel %vm160_vm0, %v57_v42, 0  ;;  %v13640_v54 = vand.u32 4294901760, %v11435_v24  ;;  %v1634_v62 = vsub.f32 %v11425_v6, %v13641_v11 }
  0xaf   :  { %9968 = vmatprep.subr.mxu0 %v13885_v3  ;;  %9998 = vmatprep.subr.mxu1 %v13853_v44  ;;  %v13896_v44 = vand.u32 4294901760, %v11193_v61  ;;  %v11437_v26 = vand.u32 4294901760, %v300_v32  ;;  %v71_v61 = vld [vmem:[%s13564_s0 + $0x1d8] sm:$0xff] }
  0xb0   :  { %v342_v12 = vsel %vm160_vm0, %v71_v61, 0  ;;  %v1635_v41 = vand.u32 4294901760, %v1634_v62 }
  0xb1   :  { %v11467_v40 = vsub.f32 %v300_v32, %v11437_v26  ;;  %v11483_v3 = vand.u32 4294901760, %v342_v12 }
  0xb2   :  { %9969 = vmatpush3.xpose.msra.mxu0 %v13887_v17  ;;  %9999 = vmatpush3.xpose.msra.mxu1 %v13855_v63  ;;  %v13893_v63 = vand.u32 4294901760, %v11173_v5  ;;  %v13895_v5 = vand.u32 4294901760, %v13894_v48  ;;  %v54_v17 = vld [vmem:[%s13564_s0 + $0x150] sm:$0xff] }
  0xb3   :  { %9970 = vmatprep.subr.mxu0 %v13888_v25  ;;  %10000 = vmatprep.subr.mxu1 %v13856_v37  ;;  %v11400_v37 = vsub.f32 %v354_v27, %v11378_v57  ;;  %v13900_v25 = vld [vmem:[#allocation23_spill] sm:$0xff]  ;;  %v11495_v27 = vsub.f32 %v297_v15, %v11469_v43  ;;  %v13636_v38 = vand.u32 4294901760, %v11467_v40  ;;  %v291_v13 = vsel %vm160_vm0, %v54_v17, 0 }
  0xb5   :  { %v1529_v42 = vsub.f32 %v11467_v40, %v13636_v38  ;;  %v13633_v48 = vand.u32 4294901760, %v11495_v27 }
  0xb6   :  { %9971 = vmatpush3.xpose.msra.mxu0 %v13889_v51  ;;  %10001 = vmatpush3.xpose.msra.mxu1 %v13857_v55  ;;  %v11391_v55 = vand.u32 4294901760, %v306_v1 }
  0xb7   :  { %9972 = vmatprep.subr.mxu0 %v13890_v36  ;;  %10002 = vmatprep.subr.mxu1 %v13858_v52  ;;  %v13643_v52 = vand.u32 4294901760, %v11400_v37  ;;  %v11508_v36 = vand.u32 4294901760, %v339_v8  ;;  %v1530_v15 = vand.u32 4294901760, %v1529_v42 }
  0xb8   :  { %v11410_v47 = vsub.f32 %v306_v1, %v11391_v55 }
  0xb9   :  { %v1627_v10 = vsub.f32 %v11400_v37, %v13643_v52 }
  0xba   :  { %9973 = vmatpush3.xpose.msra.mxu0 %v13891_v39  ;;  %10003 = vmatpush3.xpose.msra.mxu1 %v13892_v29  ;;  %v13642_v9 = vand.u32 4294901760, %v11410_v47  ;;  %v53_v29 = vld [vmem:[%s13564_s0 + $0x148] sm:$0xff] }
  0xbb   :  { %9974 = vmatprep.subr.mxu0 %v13893_v63  ;;  %10004 = vmatprep.subr.mxu1 %v13860_v19  ;;  %v11420_v19 = vand.u32 4294901760, %v348_v28  ;;  %v1628_v56 = vand.u32 4294901760, %v1627_v10  ;;  %v336_v63 = vsel %vm160_vm0, %v69_v50, 0  ;;  %v288_v32 = vsel %vm160_vm0, %v53_v29, 0  ;;  %v52_v10 = vld [vmem:[%s13564_s0 + $0x140] sm:$0xff]  ;;  %v66_v29 = vld [vmem:[%s13564_s0 + $0x1b0] sm:$0xff] }
  0xbc   :  { %v1515_v58 = vsub.f32 %v11410_v47, %v13642_v9  ;;  %v11546_v61 = vand.u32 4294901760, %v336_v63  ;;  %v330_v50 = vsel %vm160_vm0, %v67_v33, 0 }
  0xbd   :  { %v11452_v20 = vsub.f32 %v348_v28, %v11420_v19 }
  0xbe   :  { %9975 = vmatpush3.xpose.msra.mxu0 %v13895_v5  ;;  %10005 = vmatpush3.xpose.msra.mxu1 %v11098_v53  ;;  %v345_v53 = vsel %vm160_vm0, %v72_v60, 0  ;;  %v1516_v51 = vand.u32 4294901760, %v1515_v58  ;;  %v11530_v60 = vand.u32 4294901760, %v291_v13 }
  0xbf   :  { %9976 = vmatprep.subr.mxu0 %v13896_v44  ;;  %10006 = vmatprep.subr.mxu1 %v13897_v21  ;;  %v11456_v30 = vand.u32 4294901760, %v345_v53  ;;  %v13638_v0 = vand.u32 4294901760, %v11452_v20  ;;  %v333_v44 = vsel %vm160_vm0, %v68_v46, 0  ;;  %v11540_v21 = vsub.f32 %v339_v8, %v11508_v36 }
  0xc1   :  { %v11488_v16 = vsub.f32 %v345_v53, %v11456_v30  ;;  %v1641_v14 = vsub.f32 %v11452_v20, %v13638_v0  ;;  %v13629_v62 = vand.u32 4294901760, %v11540_v21 }
  0xc2   :  { %9977 = vmatpush3.xpose.msra.mxu0 %v13898_v35  ;;  %10007 = vmatpush3.xpose.msra.mxu1 %v11125_v59  ;;  %v55_v59 = vld [vmem:[%s13564_s0 + $0x158] sm:$0xff] }
  0xc3   :  { %10008 = vmatprep.subr.mxu1 %v13899_v22  ;;  %10014 = vmatprep.subr.mxu0 %v11378_v57  ;;  %v13635_v39 = vand.u32 4294901760, %v11488_v16  ;;  %v1642_v23 = vand.u32 4294901760, %v1641_v14  ;;  %v11554_v22 = vsub.f32 %v291_v13, %v11530_v60  ;;  %v1662_v42 = vsub.f32 %v11540_v21, %v13629_v62 }
  0xc5   :  { %9979 = vmatmul.mubr.f32.vlgmr.msra.gmra.mxu0 %v11122_v31  ;;  %v1648_v53 = vsub.f32 %v11488_v16, %v13635_v39  ;;  %v13631_v14 = vand.u32 4294901760, %v11554_v22  ;;  %v1663_v62 = vand.u32 4294901760, %v1662_v42 }
  0xc6   :  { %10009 = vmatpush3.xpose.msra.mxu1 %v11149_v2  ;;  %10015 = vmatpush3.xpose.msra.mxu0 %v11391_v55  ;;  %v294_v2 = vsel %vm160_vm0, %v55_v59, 0  ;;  %v11558_v59 = vand.u32 4294901760, %v333_v44 }
  0xc7   :  { %10010 = vmatprep.subr.mxu1 %v11159_v34  ;;  %10016 = vmatprep.subr.mxu0 %v11396_v49  ;;  %v1522_v34 = vsub.f32 %v11435_v24, %v13640_v54  ;;  %v11506_v1 = vand.u32 4294901760, %v294_v2  ;;  %v1649_v8 = vand.u32 4294901760, %v1648_v53 }
  0xc8   :  { %10046 = vmatprep.mubr.f32.mxu0 %v13900_v25  ;;  %13901 = vst [vmem:[#allocation5_spill] sm:$0xff] %v11558_v59  ;;  %v11591_v46 = vsub.f32 %v333_v44, %v11558_v59 }
  0xc9   :  { %v1523_v28 = vand.u32 4294901760, %v1522_v34  ;;  %v11535_v5 = vsub.f32 %v294_v2, %v11506_v1  ;;  %v285_v2 = vsel %vm160_vm0, %v52_v10, 0  ;;  %v11575_v34 = vsub.f32 %v336_v63, %v11546_v61 }
  0xca   :  { %10011 = vmatpush3.xpose.msra.mxu1 %v11181_v7  ;;  %10017 = vmatpush3.xpose.msra.mxu0 %v11412_v45  ;;  %v11517_v7 = vsub.f32 %v342_v12, %v11483_v3  ;;  %v11556_v12 = vand.u32 4294901760, %v288_v32  ;;  %v327_v10 = vsel %vm160_vm0, %v66_v29, 0 }
  0xcb   :  { %10018 = vmatprep.subr.mxu0 %v11420_v19  ;;  %10048 = vmatprep.subr.mxu1 %v1628_v56  ;;  %v1536_v56 = vsub.f32 %v11495_v27, %v13633_v48  ;;  %v13630_v58 = vand.u32 4294901760, %v11535_v5  ;;  %v13634_v44 = vand.u32 4294901760, %v11575_v34 }
  0xcc   :  { %v13632_v35 = vand.u32 4294901760, %v11517_v7  ;;  %v11582_v13 = vsub.f32 %v288_v32, %v11556_v12 }
  0xcd   :  { %10013 = vmatmul.mubr.f32.vlgmr.msra.gmra.mxu1 %v11122_v31  ;;  %v1537_v63 = vand.u32 4294901760, %v1536_v56  ;;  %v1550_v56 = vsub.f32 %v11554_v22, %v13631_v14  ;;  %v11627_v14 = vand.u32 4294901760, %v327_v10 }
  0xce   :  { %10019 = vmatpush3.xpose.msra.mxu0 %v11437_v26  ;;  %10049 = vmatpush3.xpose.msra.mxu1 %v1516_v51  ;;  %v1655_v17 = vsub.f32 %v11517_v7, %v13632_v35  ;;  %v51_v51 = vld [vmem:[%s13564_s0 + $0x138] sm:$0xff] }
  0xcf   :  { %10020 = vmatprep.subr.mxu0 %v11456_v30  ;;  %10050 = vmatprep.subr.mxu1 %v1635_v41  ;;  %v11584_v41 = vand.u32 4294901760, %v285_v2  ;;  %v282_v53 = vsel %vm160_vm0, %v51_v51, 0  ;;  %v65_v51 = vld [vmem:[%s13564_s0 + $0x1a8] sm:$0xff]  ;;  %13905 = vst [vmem:[#allocation7_spill] sm:$0xff] %v11627_v14  ;;  %v11660_v54 = vsub.f32 %v327_v10, %v11627_v14 }
  0xd0   :  { %10080 = vmatprep.mubr.f32.mxu1 %v11122_v31  ;;  %v1656_v32 = vand.u32 4294901760, %v1655_v17  ;;  %v13639_v17 = vand.u32 4294901760, %v11591_v46  ;;  %v324_v42 = vsel %vm160_vm0, %v65_v51, 0 }
  0xd1   :  { %13902 = vst [vmem:[#allocation13_spill] sm:$0xff] %v11584_v41  ;;  %v11610_v33 = vsub.f32 %v285_v2, %v11584_v41  ;;  %v1669_v2 = vsub.f32 %v11575_v34, %v13634_v44  ;;  %v11656_v0 = vand.u32 4294901760, %v324_v42  ;;  %13908 = vst [vmem:[#allocation10_spill] sm:$0xff] %v11660_v54 }
  0xd2   :  { %10021 = vmatpush3.xpose.msra.mxu0 %v11469_v43  ;;  %10051 = vmatpush3.xpose.msra.mxu1 %v1523_v28  ;;  %v1543_v28 = vsub.f32 %v11535_v5, %v13630_v58  ;;  %v11621_v58 = vand.u32 4294901760, %v282_v53 }
  0xd3   :  { %10022 = vmatprep.subr.mxu0 %v11483_v3  ;;  %10052 = vmatprep.subr.mxu1 %v1642_v23  ;;  %v11601_v23 = vand.u32 4294901760, %v330_v50  ;;  %13907 = vst [vmem:[#allocation9_spill] sm:$0xff] %v11656_v0 }
  0xd4   :  { %v1544_v29 = vand.u32 4294901760, %v1543_v28  ;;  %13904 = vst [vmem:[#allocation15_spill] sm:$0xff] %v11621_v58  ;;  %v64_v28 = vld [vmem:[%s13564_s0 + $0x1a0] sm:$0xff]  ;;  %v11649_v39 = vsub.f32 %v282_v53, %v11621_v58 }
  0xd5   :  { %13903 = vst [vmem:[#allocation6_spill] sm:$0xff] %v11601_v23  ;;  %v11631_v48 = vsub.f32 %v330_v50, %v11601_v23  ;;  %v1676_v50 = vsub.f32 %v11591_v46, %v13639_v17  ;;  %v321_v51 = vsel %vm160_vm0, %v64_v28, 0  ;;  %v48_v53 = vld [vmem:[%s13564_s0 + $0x120] sm:$0xff] }
  0xd6   :  { %10023 = vmatpush3.xpose.msra.mxu0 %v11506_v1  ;;  %10053 = vmatpush3.xpose.msra.mxu1 %v1530_v15  ;;  %v50_v15 = vld [vmem:[%s13564_s0 + $0x130] sm:$0xff]  ;;  %v11673_v28 = vand.u32 4294901760, %v321_v51  ;;  %v13654_v9 = vand.u32 4294901760, %v11649_v39  ;;  %v273_v52 = vsel %vm160_vm0, %v48_v53, 0 }
  0xd7   :  { %10024 = vmatprep.subr.mxu0 %v11508_v36  ;;  %10054 = vmatprep.subr.mxu1 %v1649_v8  ;;  %v13637_v8 = vand.u32 4294901760, %v11582_v13  ;;  %v279_v35 = vsel %vm160_vm0, %v50_v15, 0  ;;  %v13644_v15 = vand.u32 4294901760, %v11610_v33  ;;  %v13647_v17 = vand.u32 4294901760, %v11631_v48 }
  0xd8   :  { %v11651_v38 = vand.u32 4294901760, %v279_v35  ;;  %13910 = vst [vmem:[#allocation12_spill] sm:$0xff] %v11673_v28  ;;  %v1677_v10 = vand.u32 4294901760, %v1676_v50  ;;  %v11696_v53 = vand.u32 4294901760, %v273_v52 }
  0xd9   :  { %v1557_v44 = vsub.f32 %v11582_v13, %v13637_v8  ;;  %v1670_v8 = vand.u32 4294901760, %v1669_v2 }
  0xda   :  { %10025 = vmatpush3.xpose.msra.mxu0 %v11530_v60  ;;  %10055 = vmatpush3.xpose.msra.mxu1 %v1537_v63  ;;  %v49_v63 = vld [vmem:[%s13564_s0 + $0x128] sm:$0xff]  ;;  %13906 = vst [vmem:[#allocation8_spill] sm:$0xff] %v11651_v38  ;;  %v11677_v11 = vsub.f32 %v279_v35, %v11651_v38  ;;  %v47_v35 = vld [vmem:[%s13564_s0 + $0x118] sm:$0xff]  ;;  %13914 = vst [vmem:[#allocation18_spill] sm:$0xff] %v11696_v53 }
  0xdb   :  { %10026 = vmatprep.subr.mxu0 %v11546_v61  ;;  %10056 = vmatprep.subr.mxu1 %v1656_v32  ;;  %v1551_v32 = vand.u32 4294901760, %v1550_v56  ;;  %v276_v56 = vsel %vm160_vm0, %v49_v63, 0  ;;  %v1558_v63 = vand.u32 4294901760, %v1557_v44  ;;  %v1683_v44 = vsub.f32 %v11631_v48, %v13647_v17 }
  0xdc   :  { %v11671_v2 = vand.u32 4294901760, %v276_v56  ;;  %13911 = vst [vmem:[#allocation14_spill] sm:$0xff] %v11677_v11  ;;  %v11702_v17 = vsub.f32 %v321_v51, %v11673_v28 }
  0xde   :  { %10027 = vmatpush3.xpose.msra.mxu0 %v11556_v12  ;;  %10057 = vmatpush3.xpose.msra.mxu1 %v1544_v29  ;;  %v63_v29 = vld [vmem:[%s13564_s0 + $0x198] sm:$0xff]  ;;  %13909 = vst [vmem:[#allocation11_spill] sm:$0xff] %v11671_v2  ;;  %v11694_v50 = vsub.f32 %v276_v56, %v11671_v2  ;;  %13915 = vst [vmem:[#allocation20_spill] sm:$0xff] %v11702_v17  ;;  %v11722_v56 = vsub.f32 %v273_v52, %v11696_v53 }
  0xdf   :  { %10028 = vmatprep.subr.mxu0 %v11558_v59  ;;  %10058 = vmatprep.subr.mxu1 %v1663_v62  ;;  %v1564_v62 = vsub.f32 %v11610_v33, %v13644_v15  ;;  %v13917_v59 = vand.u32 4294901760, %v11660_v54 }
  0xe0   :  { %13913 = vst [vmem:[#allocation16_spill] sm:$0xff] %v11694_v50  ;;  %13918 = vst [vmem:[#allocation24_spill] sm:$0xff] %v11722_v56 }
  0xe1   :  { %v1690_v51 = vsub.f32 %v11660_v54, %v13917_v59  ;;  %v61_v59 = vld [vmem:[%s13564_s0 + $0x188] sm:$0xff] }
  0xe2   :  { %10029 = vmatpush3.xpose.msra.mxu0 %v11584_v41  ;;  %10059 = vmatpush3.xpose.msra.mxu1 %v1551_v32  ;;  %v318_v41 = vsel %vm160_vm0, %v63_v29, 0  ;;  %v11688_v32 = vsub.f32 %v324_v42, %v11656_v0  ;;  %v1565_v42 = vand.u32 4294901760, %v1564_v62  ;;  %v1571_v29 = vsub.f32 %v11649_v39, %v13654_v9  ;;  %v46_v9 = vld [vmem:[%s13564_s0 + $0x110] sm:$0xff] }
  0xe3   :  { %10030 = vmatprep.subr.mxu0 %v11601_v23  ;;  %10060 = vmatprep.subr.mxu1 %v1670_v8  ;;  %v62_v8 = vld [vmem:[%s13564_s0 + $0x190] sm:$0xff]  ;;  %v11709_v15 = vand.u32 4294901760, %v318_v41  ;;  %v1684_v23 = vand.u32 4294901760, %v1683_v44  ;;  %v1691_v44 = vand.u32 4294901760, %v1690_v51 }
  0xe4   :  { %13912 = vst [vmem:[#allocation19_spill] sm:$0xff] %v11688_v32  ;;  %v315_v62 = vsel %vm160_vm0, %v62_v8, 0  ;;  %v13919_v8 = vand.u32 4294901760, %v11677_v11 }
  0xe5   :  { %13916 = vst [vmem:[#allocation17_spill] sm:$0xff] %v11709_v15  ;;  %v11736_v52 = vsub.f32 %v318_v41, %v11709_v15  ;;  %v13924_v41 = vand.u32 4294901760, %v11694_v50 }
  0xe6   :  { %10031 = vmatpush3.xpose.msra.mxu0 %v11621_v58  ;;  %10061 = vmatpush3.xpose.msra.mxu1 %v1558_v63  ;;  %v270_v63 = vsel %vm160_vm0, %v47_v35, 0  ;;  %v1572_v35 = vand.u32 4294901760, %v1571_v29  ;;  %v1578_v58 = vsub.f32 %v11677_v11, %v13919_v8  ;;  %v312_v29 = vsel %vm160_vm0, %v61_v59, 0  ;;  %v45_v8 = vld [vmem:[%s13564_s0 + $0x108] sm:$0xff] }
  0xe7   :  { %10032 = vmatprep.subr.mxu0 %v11627_v14  ;;  %10062 = vmatprep.subr.mxu1 %v1677_v10  ;;  %v11733_v14 = vand.u32 4294901760, %v270_v63  ;;  %13921 = vst [vmem:[#allocation22_spill] sm:$0xff] %v11736_v52  ;;  %v13922_v10 = vand.u32 4294901760, %v11688_v32 }
  0xe8   :  { %v1579_v59 = vand.u32 4294901760, %v1578_v58 }
  0xe9   :  { %13920 = vst [vmem:[#allocation21_spill] sm:$0xff] %v11733_v14  ;;  %v1697_v54 = vsub.f32 %v11688_v32, %v13922_v10  ;;  %v11761_v32 = vsub.f32 %v270_v63, %v11733_v14  ;;  %v11767_v10 = vand.u32 4294901760, %v312_v29  ;;  %v44_v63 = vld [vmem:[%s13564_s0 + $0x100] sm:$0xff] }
  0xea   :  { %10033 = vmatpush3.xpose.msra.mxu0 %v11651_v38  ;;  %10063 = vmatpush3.xpose.msra.mxu1 %v1565_v42  ;;  %v11742_v38 = vand.u32 4294901760, %v315_v62  ;;  %v267_v42 = vsel %vm160_vm0, %v46_v9, 0  ;;  %v60_v9 = vld [vmem:[%s13564_s0 + $0x180] sm:$0xff] }
  0xeb   :  { %10034 = vmatprep.subr.mxu0 %v11656_v0  ;;  %10064 = vmatprep.subr.mxu1 %v1684_v23  ;;  %v1585_v0 = vsub.f32 %v11694_v50, %v13924_v41  ;;  %v13925_v23 = vand.u32 4294901760, %v11702_v17  ;;  %v11763_v11 = vand.u32 4294901760, %v267_v42  ;;  %13926 = vst [vmem:[#allocation26_spill] sm:$0xff] %v11767_v10  ;;  %v309_v58 = vsel %vm160_vm0, %v60_v9, 0 }
  0xec   :  { %13923 = vst [vmem:[#allocation25_spill] sm:$0xff] %v11742_v38  ;;  %v11771_v50 = vsub.f32 %v315_v62, %v11742_v38  ;;  %v13927_v41 = vand.u32 4294901760, %v11722_v56  ;;  %v13928_v62 = vand.u32 4294901760, %v11736_v52 }
  0xed   :  { %v1704_v51 = vsub.f32 %v11702_v17, %v13925_v23  ;;  %v1698_v23 = vand.u32 4294901760, %v1697_v54  ;;  %v264_v17 = vsel %vm160_vm0, %v45_v8, 0  ;;  %v11782_v54 = vsub.f32 %v267_v42, %v11763_v11 }
  0xee   :  { %10035 = vmatpush3.xpose.msra.mxu0 %v11671_v2  ;;  %10065 = vmatpush3.xpose.msra.mxu1 %v1572_v35  ;;  %v1586_v35 = vand.u32 4294901760, %v1585_v0  ;;  %v1711_v8 = vsub.f32 %v11736_v52, %v13928_v62  ;;  %v11787_v9 = vand.u32 4294901760, %v264_v17  ;;  %v11791_v0 = vand.u32 4294901760, %v309_v58 }
  0xef   :  { %10036 = vmatprep.subr.mxu0 %v11673_v28  ;;  %10066 = vmatprep.subr.mxu1 %v1691_v44  ;;  %v1705_v2 = vand.u32 4294901760, %v1704_v51  ;;  %v1592_v44 = vsub.f32 %v11722_v56, %v13927_v41  ;;  %v13677_v28 = vand.u32 4294901760, %v11761_v32  ;;  %v11796_v42 = vsub.f32 %v312_v29, %v11767_v10 }
  0xf0   :  { %v11800_v62 = vsub.f32 %v264_v17, %v11787_v9  ;;  %v13680_v51 = vand.u32 4294901760, %v11782_v54  ;;  %v1712_v29 = vand.u32 4294901760, %v1711_v8  ;;  %v11814_v17 = vsub.f32 %v309_v58, %v11791_v0 }
  0xf1   :  { %v1593_v41 = vand.u32 4294901760, %v1592_v44 }
  0xf2   :  { %10037 = vmatpush3.xpose.msra.mxu0 %v11696_v53  ;;  %10067 = vmatpush3.xpose.msra.mxu1 %v1579_v59  ;;  %v261_v59 = vsel %vm160_vm0, %v44_v63, 0  ;;  %13929 = vst [vmem:[#allocation27_spill] sm:$0xff] %v11800_v62  ;;  %v13930_v63 = vand.u32 4294901760, %v11771_v50  ;;  %v13684_v8 = vand.u32 4294901760, %v11800_v62 }
  0xf3   :  { %10038 = vmatprep.subr.mxu0 %v11709_v15  ;;  %10068 = vmatprep.subr.mxu1 %v1698_v23  ;;  %v1599_v23 = vsub.f32 %v11761_v32, %v13677_v28  ;;  %v11805_v15 = vand.u32 4294901760, %v261_v59 }
  0xf4   :  { %v1718_v44 = vsub.f32 %v11771_v50, %v13930_v63 }
  0xf5   :  { %v1600_v28 = vand.u32 4294901760, %v1599_v23  ;;  %v1613_v23 = vsub.f32 %v11800_v62, %v13684_v8  ;;  %v13942_v8 = vld [vmem:[#allocation9_spill] sm:$0xff] }
  0xf6   :  { %10039 = vmatpush3.xpose.msra.mxu0 %v11733_v14  ;;  %10069 = vmatpush3.xpose.msra.mxu1 %v1586_v35  ;;  %v13681_v35 = vand.u32 4294901760, %v11796_v42  ;;  %v11818_v14 = vsub.f32 %v261_v59, %v11805_v15  ;;  %v1719_v63 = vand.u32 4294901760, %v1718_v44 }
  0xf7   :  { %10040 = vmatprep.subr.mxu0 %v11742_v38  ;;  %10070 = vmatprep.subr.mxu1 %v1705_v2  ;;  %v1606_v2 = vsub.f32 %v11782_v54, %v13680_v51 }
  0xf8   :  { %v1725_v58 = vsub.f32 %v11796_v42, %v13681_v35  ;;  %v13682_v51 = vand.u32 4294901760, %v11818_v14  ;;  %v1614_v35 = vand.u32 4294901760, %v1613_v23  ;;  %v13934_v23 = vld [vmem:[#allocation13_spill] sm:$0xff] }
  0xf9   :  { %v1607_v59 = vand.u32 4294901760, %v1606_v2 }
  0xfa   :  { %10041 = vmatpush3.xpose.msra.mxu0 %v11763_v11  ;;  %10071 = vmatpush3.xpose.msra.mxu1 %v1593_v41  ;;  %v13683_v41 = vand.u32 4294901760, %v11814_v17 }
  0xfb   :  { %10042 = vmatprep.subr.mxu0 %v11767_v10  ;;  %10072 = vmatprep.subr.mxu1 %v1712_v29  ;;  %v1726_v29 = vand.u32 4294901760, %v1725_v58  ;;  %v13932_v58 = vld [vmem:[#allocation5_spill] sm:$0xff] }
  0xfc   :  { %v1732_v44 = vsub.f32 %v11814_v17, %v13683_v41  ;;  %v13941_v41 = vld [vmem:[#allocation8_spill] sm:$0xff] }
  0xfe   :  { %10043 = vmatpush3.xpose.msra.mxu0 %v11787_v9  ;;  %10073 = vmatpush3.xpose.msra.mxu1 %v1600_v28  ;;  %v1620_v28 = vsub.f32 %v11818_v14, %v13682_v51  ;;  %v1733_v2 = vand.u32 4294901760, %v1732_v44  ;;  %v13936_v44 = vld [vmem:[#allocation6_spill] sm:$0xff]  ;;  %v13940_v51 = vld [vmem:[#allocation7_spill] sm:$0xff] }
  0xff   :  { %10044 = vmatprep.subr.mxu0 %v11791_v0  ;;  %10074 = vmatprep.subr.mxu1 %v1719_v63 }
 0x100   :  { %v1621_v63 = vand.u32 4294901760, %v1620_v28  ;;  %v13937_v28 = vld [vmem:[#allocation16_spill] sm:$0xff] }
 0x102   :  { %10045 = vmatpush3.xpose.msra.mxu0 %v11805_v15  ;;  %10075 = vmatpush3.xpose.msra.mxu1 %v1607_v59  ;;  %v13933_v59 = vld [vmem:[#allocation14_spill] sm:$0xff] }
 0x103   :  { %10076 = vmatprep.subr.mxu1 %v1726_v29  ;;  %10082 = vmatprep.subr.mxu0 %v11400_v37  ;;  %v13935_v29 = vld [vmem:[#allocation19_spill] sm:$0xff] }
 0x105   :  { %10047 = vmatmul.mubr.f32.vlgmr.msra.gmra.mxu0 %v13900_v25  ;;  %v13943_v25 = vld [vmem:[#allocation11_spill] sm:$0xff] }
 0x106   :  { %10077 = vmatpush3.xpose.msra.mxu1 %v1614_v35  ;;  %10083 = vmatpush3.xpose.msra.mxu0 %v11410_v47  ;;  %v13931_v35 = vld [vmem:[#allocation10_spill] sm:$0xff] }
 0x107   :  { %10078 = vmatprep.subr.mxu1 %v1733_v2  ;;  %10084 = vmatprep.subr.mxu0 %v11425_v6  ;;  %v13938_v2 = vld [vmem:[#allocation15_spill] sm:$0xff] }
 0x108   :  { %10114 = vmatprep.mubr.f32.mxu0 %v11143_v4 }
 0x10a   :  { %10079 = vmatpush3.xpose.msra.mxu1 %v1621_v63  ;;  %10085 = vmatpush3.xpose.msra.mxu0 %v11435_v24  ;;  %v13939_v63 = vld [vmem:[#allocation20_spill] sm:$0xff] }
 0x10b   :  { %10086 = vmatprep.subr.mxu0 %v11452_v20  ;;  %10116 = vmatprep.subr.mxu1 %v11378_v57 }
 0x10d   :  { %10081 = vmatmul.mubr.f32.vlgmr.msra.gmra.mxu1 %v11122_v31 }
 0x10e   :  { %10087 = vmatpush3.xpose.msra.mxu0 %v11467_v40  ;;  %10117 = vmatpush3.xpose.msra.mxu1 %v11391_v55 }
 0x10f   :  { %10088 = vmatprep.subr.mxu0 %v11488_v16  ;;  %10118 = vmatprep.subr.mxu1 %v11396_v49 }
 0x110   :  { %10148 = vmatprep.mubr.f32.mxu1 %v11152_v18 }
 0x112   :  { %10089 = vmatpush3.xpose.msra.mxu0 %v11495_v27  ;;  %10119 = vmatpush3.xpose.msra.mxu1 %v11412_v45 }
 0x113   :  { %10090 = vmatprep.subr.mxu0 %v11517_v7  ;;  %10120 = vmatprep.subr.mxu1 %v11420_v19 }
 0x116   :  { %10091 = vmatpush3.xpose.msra.mxu0 %v11535_v5  ;;  %10121 = vmatpush3.xpose.msra.mxu1 %v11437_v26 }
 0x117   :  { %10092 = vmatprep.subr.mxu0 %v11540_v21  ;;  %10122 = vmatprep.subr.mxu1 %v11456_v30 }
 0x11a   :  { %10093 = vmatpush3.xpose.msra.mxu0 %v11554_v22  ;;  %10123 = vmatpush3.xpose.msra.mxu1 %v11469_v43 }
 0x11b   :  { %10094 = vmatprep.subr.mxu0 %v11575_v34  ;;  %10124 = vmatprep.subr.mxu1 %v11483_v3 }
 0x11e   :  { %10095 = vmatpush3.xpose.msra.mxu0 %v11582_v13  ;;  %10125 = vmatpush3.xpose.msra.mxu1 %v11506_v1 }
 0x11f   :  { %10096 = vmatprep.subr.mxu0 %v11591_v46  ;;  %10126 = vmatprep.subr.mxu1 %v11508_v36 }
 0x122   :  { %10097 = vmatpush3.xpose.msra.mxu0 %v11610_v33  ;;  %10127 = vmatpush3.xpose.msra.mxu1 %v11530_v60 }
 0x123   :  { %10098 = vmatprep.subr.mxu0 %v11631_v48  ;;  %10128 = vmatprep.subr.mxu1 %v11546_v61 }
 0x126   :  { %10099 = vmatpush3.xpose.msra.mxu0 %v11649_v39  ;;  %10129 = vmatpush3.xpose.msra.mxu1 %v11556_v12 }
 0x127   :  { %10100 = vmatprep.subr.mxu0 %v13931_v35  ;;  %10130 = vmatprep.subr.mxu1 %v13932_v58 }
 0x12a   :  { %10101 = vmatpush3.xpose.msra.mxu0 %v13933_v59  ;;  %10131 = vmatpush3.xpose.msra.mxu1 %v13934_v23 }
 0x12b   :  { %10102 = vmatprep.subr.mxu0 %v13935_v29  ;;  %10132 = vmatprep.subr.mxu1 %v13936_v44 }
 0x12e   :  { %10103 = vmatpush3.xpose.msra.mxu0 %v13937_v28  ;;  %10133 = vmatpush3.xpose.msra.mxu1 %v13938_v2  ;;  %v13944_v28 = vld [vmem:[#allocation12_spill] sm:$0xff] }
 0x12f   :  { %10104 = vmatprep.subr.mxu0 %v13939_v63  ;;  %10134 = vmatprep.subr.mxu1 %v13940_v51 }
 0x132   :  { %10105 = vmatpush3.xpose.msra.mxu0 %v11722_v56  ;;  %10135 = vmatpush3.xpose.msra.mxu1 %v13941_v41  ;;  %v13945_v56 = vld [vmem:[#allocation17_spill] sm:$0xff] }
 0x133   :  { %10106 = vmatprep.subr.mxu0 %v11736_v52  ;;  %10136 = vmatprep.subr.mxu1 %v13942_v8  ;;  %v13946_v52 = vld [vmem:[#allocation21_spill] sm:$0xff] }
 0x136   :  { %10107 = vmatpush3.xpose.msra.mxu0 %v11761_v32  ;;  %10137 = vmatpush3.xpose.msra.mxu1 %v13943_v25 }
 0x137   :  { %10108 = vmatprep.subr.mxu0 %v11771_v50  ;;  %10138 = vmatprep.subr.mxu1 %v13944_v28 }
 0x13a   :  { %10109 = vmatpush3.xpose.msra.mxu0 %v11782_v54  ;;  %10139 = vmatpush3.xpose.msra.mxu1 %v11696_v53  ;;  %v13947_v53 = vand.u32 4294901760, %v11400_v37  ;;  %v13951_v37 = vand.u32 4294901760, %v11452_v20  ;;  %v13956_v20 = vand.u32 4294901760, %v11535_v5 }
 0x13b   :  { %10110 = vmatprep.subr.mxu0 %v11796_v42  ;;  %10140 = vmatprep.subr.mxu1 %v13945_v56 }
 0x13e   :  { %10111 = vmatpush3.xpose.msra.mxu0 %v11800_v62  ;;  %10141 = vmatpush3.xpose.msra.mxu1 %v13946_v52  ;;  %v13948_v62 = vand.u32 4294901760, %v11410_v47  ;;  %v13952_v47 = vand.u32 4294901760, %v11467_v40  ;;  %v13963_v40 = vand.u32 4294901760, %v11631_v48  ;;  %v13973_v48 = vld [vmem:[#allocation22_spill] sm:$0xff] }
 0x13f   :  { %10112 = vmatprep.subr.mxu0 %v11814_v17  ;;  %10142 = vmatprep.subr.mxu1 %v11742_v38  ;;  %v13949_v38 = vand.u32 4294901760, %v11425_v6  ;;  %v13953_v6 = vand.u32 4294901760, %v11488_v16  ;;  %v13966_v16 = vand.u32 4294901760, %v13933_v59  ;;  %v13974_v5 = vand.u32 4294901760, %v13973_v48  ;;  %v86_v48 = vld [vmem:[%s13564_s0 + $0x250] sm:$0xff] }
 0x142   :  { %10113 = vmatpush3.xpose.msra.mxu0 %v11818_v14  ;;  %10143 = vmatpush3.xpose.msra.mxu1 %v11763_v11 }
 0x143   :  { %10144 = vmatprep.subr.mxu1 %v11767_v10  ;;  %10150 = vmatprep.subr.mxu0 %v13947_v53  ;;  %v13950_v10 = vand.u32 4294901760, %v11435_v24  ;;  %v13954_v24 = vand.u32 4294901760, %v11495_v27  ;;  %v13967_v27 = vand.u32 4294901760, %v13935_v29  ;;  %v90_v53 = vld [vmem:[%s13564_s0 + $0x270] sm:$0xff]  ;;  %v13980_v29 = vld [vmem:[#allocation27_spill] sm:$0xff] }
 0x145   :  { %10115 = vmatmul.mubr.f32.vlgmr.msra.gmra.mxu0 %v11143_v4 }
 0x146   :  { %10145 = vmatpush3.xpose.msra.mxu1 %v11787_v9  ;;  %10151 = vmatpush3.xpose.msra.mxu0 %v13948_v62  ;;  %v399_v62 = vsel %vm160_vm0, %v90_v53, 0 }
 0x147   :  { %10146 = vmatprep.subr.mxu1 %v11791_v0  ;;  %10152 = vmatprep.subr.mxu0 %v13949_v38  ;;  %v13968_v38 = vld [vmem:[#allocation16_spill] sm:$0xff]  ;;  %v12032_v59 = vand.u32 4294901760, %v399_v62 }
 0x148   :  { %10182 = vmatprep.mubr.f32.mxu0 %v11122_v31 }
 0x14a   :  { %10147 = vmatpush3.xpose.msra.mxu1 %v11805_v15  ;;  %10153 = vmatpush3.xpose.msra.mxu0 %v13950_v10  ;;  %v13977_v10 = vand.u32 4294901760, %v11782_v54  ;;  %v89_v54 = vld [vmem:[%s13564_s0 + $0x268] sm:$0xff] }
 0x14b   :  { %10154 = vmatprep.subr.mxu0 %v13951_v37  ;;  %10184 = vmatprep.subr.mxu1 %v11378_v57  ;;  %v13955_v57 = vand.u32 4294901760, %v11517_v7  ;;  %v13971_v7 = vld [vmem:[#allocation24_spill] sm:$0xff]  ;;  %v13983_v37 = vld [vmem:[#allocation25_spill] sm:$0xff] }
 0x14d   :  { %10149 = vmatmul.mubr.f32.vlgmr.msra.gmra.mxu1 %v11152_v18 }
 0x14e   :  { %10155 = vmatpush3.xpose.msra.mxu0 %v13952_v47  ;;  %10185 = vmatpush3.xpose.msra.mxu1 %v11391_v55  ;;  %v13957_v55 = vand.u32 4294901760, %v11540_v21  ;;  %v88_v47 = vld [vmem:[%s13564_s0 + $0x260] sm:$0xff] }
 0x14f   :  { %10156 = vmatprep.subr.mxu0 %v13953_v6  ;;  %10186 = vmatprep.subr.mxu1 %v11396_v49  ;;  %v13958_v49 = vand.u32 4294901760, %v11554_v22  ;;  %v106_v22 = vld [vmem:[%s13564_s0 + $0x2f0] sm:$0xff]  ;;  %v12055_v6 = vsub.f32 %v399_v62, %v12032_v59  ;;  %v100_v62 = vld [vmem:[%s13564_s0 + $0x2c0] sm:$0xff] }
 0x150   :  { %10216 = vmatprep.mubr.f32.mxu1 %v11122_v31 }
 0x152   :  { %10157 = vmatpush3.xpose.msra.mxu0 %v13954_v24  ;;  %10187 = vmatpush3.xpose.msra.mxu1 %v11412_v45  ;;  %v13959_v45 = vand.u32 4294901760, %v11575_v34 }
 0x153   :  { %10158 = vmatprep.subr.mxu0 %v13955_v57  ;;  %10188 = vmatprep.subr.mxu1 %v11420_v19  ;;  %v13960_v19 = vand.u32 4294901760, %v11582_v13 }
 0x156   :  { %10159 = vmatpush3.xpose.msra.mxu0 %v13956_v20  ;;  %10189 = vmatpush3.xpose.msra.mxu1 %v11437_v26  ;;  %v13961_v26 = vand.u32 4294901760, %v11591_v46  ;;  %v13976_v46 = vand.u32 4294901760, %v11771_v50  ;;  %v13984_v20 = vand.u32 4294901760, %v11818_v14 }
 0x157   :  { %10160 = vmatprep.subr.mxu0 %v13957_v55  ;;  %10190 = vmatprep.subr.mxu1 %v11456_v30  ;;  %v13962_v30 = vand.u32 4294901760, %v11610_v33  ;;  %v447_v33 = vsel %vm160_vm0, %v106_v22, 0  ;;  %v101_v22 = vld [vmem:[%s13564_s0 + $0x2c8] sm:$0xff] }
 0x158   :  { %v12016_v50 = vand.u32 4294901760, %v447_v33 }
 0x15a   :  { %10161 = vmatpush3.xpose.msra.mxu0 %v13958_v49  ;;  %10191 = vmatpush3.xpose.msra.mxu1 %v11469_v43  ;;  %v13964_v43 = vand.u32 4294901760, %v11649_v39  ;;  %v107_v39 = vld [vmem:[%s13564_s0 + $0x2f8] sm:$0xff] }
 0x15b   :  { %10162 = vmatprep.subr.mxu0 %v13959_v45  ;;  %10192 = vmatprep.subr.mxu1 %v11483_v3  ;;  %v13965_v3 = vand.u32 4294901760, %v13931_v35  ;;  %v450_v21 = vsel %vm160_vm0, %v107_v39, 0  ;;  %v393_v45 = vsel %vm160_vm0, %v88_v47, 0 }
 0x15c   :  { %v11998_v34 = vand.u32 4294901760, %v450_v21 }
 0x15e   :  { %10163 = vmatpush3.xpose.msra.mxu0 %v13960_v19  ;;  %10193 = vmatpush3.xpose.msra.mxu1 %v11506_v1  ;;  %v13969_v1 = vand.u32 4294901760, %v13968_v38 }
 0x15f   :  { %10164 = vmatprep.subr.mxu0 %v13961_v26  ;;  %10194 = vmatprep.subr.mxu1 %v11508_v36  ;;  %v13970_v36 = vand.u32 4294901760, %v13939_v63  ;;  %v13982_v63 = vand.u32 4294901760, %v11814_v17  ;;  %v103_v17 = vld [vmem:[%s13564_s0 + $0x2d8] sm:$0xff]  ;;  %v13985_v26 = vld [vmem:[#allocation26_spill] sm:$0xff] }
 0x160   :  { %v438_v14 = vsel %vm160_vm0, %v103_v17, 0 }
 0x161   :  { %v12103_v39 = vand.u32 4294901760, %v438_v14 }
 0x162   :  { %10165 = vmatpush3.xpose.msra.mxu0 %v13962_v30  ;;  %10195 = vmatpush3.xpose.msra.mxu1 %v11530_v60  ;;  %v13972_v60 = vand.u32 4294901760, %v13971_v7 }
 0x163   :  { %10166 = vmatprep.subr.mxu0 %v13963_v40  ;;  %10196 = vmatprep.subr.mxu1 %v11546_v61  ;;  %v91_v61 = vld [vmem:[%s13564_s0 + $0x278] sm:$0xff]  ;;  %v102_v40 = vld [vmem:[%s13564_s0 + $0x2d0] sm:$0xff] }
 0x164   :  { %v402_v13 = vsel %vm160_vm0, %v91_v61, 0  ;;  %v435_v7 = vsel %vm160_vm0, %v102_v40, 0  ;;  %v99_v40 = vld [vmem:[%s13564_s0 + $0x2b8] sm:$0xff] }
 0x166   :  { %10167 = vmatpush3.xpose.msra.mxu0 %v13964_v43  ;;  %10197 = vmatpush3.xpose.msra.mxu1 %v11556_v12  ;;  %v13975_v12 = vand.u32 4294901760, %v11761_v32  ;;  %v105_v32 = vld [vmem:[%s13564_s0 + $0x2e8] sm:$0xff] }
 0x167   :  { %10168 = vmatprep.subr.mxu0 %v13965_v3  ;;  %10198 = vmatprep.subr.mxu1 %v13932_v58  ;;  %v444_v35 = vsel %vm160_vm0, %v105_v32, 0  ;;  %v12089_v3 = vand.u32 4294901760, %v393_v45 }
 0x16a   :  { %10169 = vmatpush3.xpose.msra.mxu0 %v13966_v16  ;;  %10199 = vmatpush3.xpose.msra.mxu1 %v13934_v23  ;;  %v104_v23 = vld [vmem:[%s13564_s0 + $0x2e0] sm:$0xff]  ;;  %v13703_v16 = vand.u32 4294901760, %v12055_v6 }
 0x16b   :  { %10170 = vmatprep.subr.mxu0 %v13967_v27  ;;  %10200 = vmatprep.subr.mxu1 %v13936_v44 }
 0x16e   :  { %10171 = vmatpush3.xpose.msra.mxu0 %v13969_v1  ;;  %10201 = vmatpush3.xpose.msra.mxu1 %v13938_v2  ;;  %v12045_v2 = vsub.f32 %v447_v33, %v12016_v50  ;;  %v387_v33 = vsel %vm160_vm0, %v86_v48, 0 }
 0x16f   :  { %10172 = vmatprep.subr.mxu0 %v13970_v36  ;;  %10202 = vmatprep.subr.mxu1 %v13940_v51  ;;  %v13978_v51 = vld [vmem:[#allocation18_spill] sm:$0xff] }
 0x170   :  { %v13704_v49 = vand.u32 4294901760, %v12045_v2 }
 0x172   :  { %10173 = vmatpush3.xpose.msra.mxu0 %v13972_v60  ;;  %10203 = vmatpush3.xpose.msra.mxu1 %v13941_v41  ;;  %v13979_v41 = vand.u32 4294901760, %v11796_v42  ;;  %v13981_v42 = vand.u32 4294901760, %v13980_v29  ;;  %v2489_v1 = vsub.f32 %v12045_v2, %v13704_v49 }
 0x173   :  { %10174 = vmatprep.subr.mxu0 %v13974_v5  ;;  %10204 = vmatprep.subr.mxu1 %v13942_v8  ;;  %v12020_v8 = vsub.f32 %v450_v21, %v11998_v34  ;;  %v13986_v5 = vld [vmem:[#allocation23_spill] sm:$0xff]  ;;  %v12115_v21 = vsub.f32 %v393_v45, %v12089_v3 }
 0x174   :  { %v2490_v53 = vand.u32 4294901760, %v2489_v1 }
 0x175   :  { %v13706_v44 = vand.u32 4294901760, %v12020_v8  ;;  %v13696_v29 = vand.u32 4294901760, %v12115_v21 }
 0x176   :  { %10175 = vmatpush3.xpose.msra.mxu0 %v13975_v12  ;;  %10205 = vmatpush3.xpose.msra.mxu1 %v13943_v25  ;;  %v12011_v25 = vand.u32 4294901760, %v402_v13 }
 0x177   :  { %10176 = vmatprep.subr.mxu0 %v13976_v46  ;;  %10206 = vmatprep.subr.mxu1 %v13944_v28  ;;  %v396_v28 = vsel %vm160_vm0, %v89_v54, 0  ;;  %v2482_v55 = vsub.f32 %v12020_v8, %v13706_v44  ;;  %v12128_v46 = vand.u32 4294901760, %v435_v7 }
 0x178   :  { %v12030_v58 = vsub.f32 %v402_v13, %v12011_v25  ;;  %v12057_v24 = vand.u32 4294901760, %v396_v28 }
 0x179   :  { %v2483_v27 = vand.u32 4294901760, %v2482_v55  ;;  %v84_v55 = vld [vmem:[%s13564_s0 + $0x240] sm:$0xff] }
 0x17a   :  { %10177 = vmatpush3.xpose.msra.mxu0 %v13977_v10  ;;  %10207 = vmatpush3.xpose.msra.mxu1 %v13978_v51  ;;  %v13705_v57 = vand.u32 4294901760, %v12030_v58  ;;  %v12087_v43 = vsub.f32 %v396_v28, %v12057_v24  ;;  %v85_v51 = vld [vmem:[%s13564_s0 + $0x248] sm:$0xff] }
 0x17b   :  { %10178 = vmatprep.subr.mxu0 %v13979_v41  ;;  %10208 = vmatprep.subr.mxu1 %v13945_v56  ;;  %v12040_v56 = vand.u32 4294901760, %v444_v35  ;;  %v432_v41 = vsel %vm160_vm0, %v101_v22, 0  ;;  %v384_v28 = vsel %vm160_vm0, %v85_v51, 0  ;;  %v426_v22 = vsel %vm160_vm0, %v99_v40, 0  ;;  %v98_v51 = vld [vmem:[%s13564_s0 + $0x2b0] sm:$0xff] }
 0x17c   :  { %v2370_v38 = vsub.f32 %v12030_v58, %v13705_v57  ;;  %v13699_v61 = vand.u32 4294901760, %v12087_v43  ;;  %v12166_v17 = vand.u32 4294901760, %v432_v41 }
 0x17d   :  { %v12072_v19 = vsub.f32 %v444_v35, %v12040_v56 }
 0x17e   :  { %10179 = vmatpush3.xpose.msra.mxu0 %v13981_v42  ;;  %10209 = vmatpush3.xpose.msra.mxu1 %v13946_v52  ;;  %v441_v52 = vsel %vm160_vm0, %v104_v23, 0  ;;  %v2371_v12 = vand.u32 4294901760, %v2370_v38  ;;  %v2384_v54 = vsub.f32 %v12087_v43, %v13699_v61  ;;  %v12150_v23 = vand.u32 4294901760, %v387_v33 }
 0x17f   :  { %10180 = vmatprep.subr.mxu0 %v13982_v63  ;;  %10210 = vmatprep.subr.mxu1 %v13983_v37  ;;  %v12076_v30 = vand.u32 4294901760, %v441_v52  ;;  %v13701_v36 = vand.u32 4294901760, %v12072_v19  ;;  %v429_v63 = vsel %vm160_vm0, %v100_v62, 0  ;;  %v12160_v37 = vsub.f32 %v435_v7, %v12128_v46 }
 0x180   :  { %v2385_v45 = vand.u32 4294901760, %v2384_v54 }
 0x181   :  { %v12108_v60 = vsub.f32 %v441_v52, %v12076_v30  ;;  %v2496_v32 = vsub.f32 %v12072_v19, %v13701_v36  ;;  %v13692_v1 = vand.u32 4294901760, %v12160_v37 }
 0x182   :  { %10181 = vmatpush3.xpose.msra.mxu0 %v13984_v20  ;;  %10211 = vmatpush3.xpose.msra.mxu1 %v11763_v11  ;;  %v87_v11 = vld [vmem:[%s13564_s0 + $0x258] sm:$0xff] }
 0x183   :  { %10212 = vmatprep.subr.mxu1 %v13985_v26  ;;  %10218 = vmatprep.subr.mxu0 %v11998_v34  ;;  %v13698_v10 = vand.u32 4294901760, %v12108_v60  ;;  %v2497_v47 = vand.u32 4294901760, %v2496_v32  ;;  %v12174_v26 = vsub.f32 %v387_v33, %v12150_v23  ;;  %v2517_v54 = vsub.f32 %v12160_v37, %v13692_v1 }
 0x185   :  { %10183 = vmatmul.mubr.f32.vlgmr.msra.gmra.mxu0 %v11122_v31  ;;  %v2503_v52 = vsub.f32 %v12108_v60, %v13698_v10  ;;  %v13694_v32 = vand.u32 4294901760, %v12174_v26  ;;  %v2518_v1 = vand.u32 4294901760, %v2517_v54 }
 0x186   :  { %10213 = vmatpush3.xpose.msra.mxu1 %v11787_v9  ;;  %10219 = vmatpush3.xpose.msra.mxu0 %v12011_v25  ;;  %v390_v9 = vsel %vm160_vm0, %v87_v11, 0  ;;  %v12178_v11 = vand.u32 4294901760, %v429_v63 }
 0x187   :  { %10214 = vmatprep.subr.mxu1 %v11791_v0  ;;  %10220 = vmatprep.subr.mxu0 %v12016_v50  ;;  %v2377_v0 = vsub.f32 %v12055_v6, %v13703_v16  ;;  %v12126_v13 = vand.u32 4294901760, %v390_v9  ;;  %v2504_v7 = vand.u32 4294901760, %v2503_v52 }
 0x188   :  { %10250 = vmatprep.mubr.f32.mxu0 %v13986_v5  ;;  %13987 = vst [vmem:[#allocation10_spill] sm:$0xff] %v12178_v11  ;;  %v12211_v62 = vsub.f32 %v429_v63, %v12178_v11 }
 0x189   :  { %v2378_v35 = vand.u32 4294901760, %v2377_v0  ;;  %v12155_v42 = vsub.f32 %v390_v9, %v12126_v13  ;;  %v381_v9 = vsel %vm160_vm0, %v84_v55, 0  ;;  %v12195_v0 = vsub.f32 %v432_v41, %v12166_v17 }
 0x18a   :  { %10215 = vmatpush3.xpose.msra.mxu1 %v11805_v15  ;;  %10221 = vmatpush3.xpose.msra.mxu0 %v12032_v59  ;;  %v12137_v15 = vsub.f32 %v438_v14, %v12103_v39  ;;  %v12176_v14 = vand.u32 4294901760, %v384_v28  ;;  %v423_v55 = vsel %vm160_vm0, %v98_v51, 0 }
 0x18b   :  { %10222 = vmatprep.subr.mxu0 %v12040_v56  ;;  %10252 = vmatprep.subr.mxu1 %v2483_v27  ;;  %v2391_v27 = vsub.f32 %v12115_v21, %v13696_v29  ;;  %v13693_v38 = vand.u32 4294901760, %v12155_v42  ;;  %v13697_v63 = vand.u32 4294901760, %v12195_v0 }
 0x18c   :  { %v13695_v20 = vand.u32 4294901760, %v12137_v15  ;;  %v12202_v33 = vsub.f32 %v384_v28, %v12176_v14 }
 0x18d   :  { %10217 = vmatmul.mubr.f32.vlgmr.msra.gmra.mxu1 %v11122_v31  ;;  %v2392_v41 = vand.u32 4294901760, %v2391_v27  ;;  %v2405_v27 = vsub.f32 %v12174_v26, %v13694_v32  ;;  %v12247_v32 = vand.u32 4294901760, %v423_v55 }
 0x18e   :  { %10223 = vmatpush3.xpose.msra.mxu0 %v12057_v24  ;;  %10253 = vmatpush3.xpose.msra.mxu1 %v2371_v12  ;;  %v2510_v48 = vsub.f32 %v12137_v15, %v13695_v20  ;;  %v83_v12 = vld [vmem:[%s13564_s0 + $0x238] sm:$0xff] }
 0x18f   :  { %10224 = vmatprep.subr.mxu0 %v12076_v30  ;;  %10254 = vmatprep.subr.mxu1 %v2490_v53  ;;  %v12204_v53 = vand.u32 4294901760, %v381_v9  ;;  %v378_v52 = vsel %vm160_vm0, %v83_v12, 0  ;;  %v97_v12 = vld [vmem:[%s13564_s0 + $0x2a8] sm:$0xff]  ;;  %13991 = vst [vmem:[#allocation19_spill] sm:$0xff] %v12247_v32  ;;  %v12280_v16 = vsub.f32 %v423_v55, %v12247_v32 }
 0x190   :  { %10284 = vmatprep.mubr.f32.mxu1 %v11122_v31  ;;  %v2511_v28 = vand.u32 4294901760, %v2510_v48  ;;  %v13702_v48 = vand.u32 4294901760, %v12211_v62  ;;  %v420_v54 = vsel %vm160_vm0, %v97_v12, 0 }
 0x191   :  { %13988 = vst [vmem:[#allocation5_spill] sm:$0xff] %v12204_v53  ;;  %v12230_v40 = vsub.f32 %v381_v9, %v12204_v53  ;;  %v2524_v9 = vsub.f32 %v12195_v0, %v13697_v63  ;;  %v12276_v36 = vand.u32 4294901760, %v420_v54  ;;  %13994 = vst [vmem:[#allocation20_spill] sm:$0xff] %v12280_v16 }
 0x192   :  { %10225 = vmatpush3.xpose.msra.mxu0 %v12089_v3  ;;  %10255 = vmatpush3.xpose.msra.mxu1 %v2378_v35  ;;  %v2398_v35 = vsub.f32 %v12155_v42, %v13693_v38  ;;  %v12241_v38 = vand.u32 4294901760, %v378_v52 }
 0x193   :  { %10226 = vmatprep.subr.mxu0 %v12103_v39  ;;  %10256 = vmatprep.subr.mxu1 %v2497_v47  ;;  %v12221_v47 = vand.u32 4294901760, %v426_v22  ;;  %13993 = vst [vmem:[#allocation15_spill] sm:$0xff] %v12276_v36 }
 0x194   :  { %v2399_v51 = vand.u32 4294901760, %v2398_v35  ;;  %13990 = vst [vmem:[#allocation13_spill] sm:$0xff] %v12241_v38  ;;  %v96_v35 = vld [vmem:[%s13564_s0 + $0x2a0] sm:$0xff]  ;;  %v12269_v10 = vsub.f32 %v378_v52, %v12241_v38 }
 0x195   :  { %13989 = vst [vmem:[#allocation14_spill] sm:$0xff] %v12221_v47  ;;  %v12251_v29 = vsub.f32 %v426_v22, %v12221_v47  ;;  %v2531_v22 = vsub.f32 %v12211_v62, %v13702_v48  ;;  %v417_v12 = vsel %vm160_vm0, %v96_v35, 0  ;;  %v80_v52 = vld [vmem:[%s13564_s0 + $0x220] sm:$0xff] }
 0x196   :  { %10227 = vmatpush3.xpose.msra.mxu0 %v12126_v13  ;;  %10257 = vmatpush3.xpose.msra.mxu1 %v2385_v45  ;;  %v82_v45 = vld [vmem:[%s13564_s0 + $0x230] sm:$0xff]  ;;  %v12293_v35 = vand.u32 4294901760, %v417_v12  ;;  %v13717_v57 = vand.u32 4294901760, %v12269_v10  ;;  %v369_v44 = vsel %vm160_vm0, %v80_v52, 0 }
 0x197   :  { %10228 = vmatprep.subr.mxu0 %v12128_v46  ;;  %10258 = vmatprep.subr.mxu1 %v2504_v7  ;;  %v13700_v7 = vand.u32 4294901760, %v12202_v33  ;;  %v375_v20 = vsel %vm160_vm0, %v82_v45, 0  ;;  %v13707_v45 = vand.u32 4294901760, %v12230_v40  ;;  %v13710_v48 = vand.u32 4294901760, %v12251_v29 }
 0x198   :  { %v12271_v61 = vand.u32 4294901760, %v375_v20  ;;  %13996 = vst [vmem:[#allocation8_spill] sm:$0xff] %v12293_v35  ;;  %v2532_v55 = vand.u32 4294901760, %v2531_v22  ;;  %v12316_v52 = vand.u32 4294901760, %v369_v44 }
 0x199   :  { %v2412_v63 = vsub.f32 %v12202_v33, %v13700_v7  ;;  %v2525_v7 = vand.u32 4294901760, %v2524_v9 }
 0x19a   :  { %10229 = vmatpush3.xpose.msra.mxu0 %v12150_v23  ;;  %10259 = vmatpush3.xpose.msra.mxu1 %v2392_v41  ;;  %v81_v41 = vld [vmem:[%s13564_s0 + $0x228] sm:$0xff]  ;;  %13992 = vst [vmem:[#allocation6_spill] sm:$0xff] %v12271_v61  ;;  %v12297_v49 = vsub.f32 %v375_v20, %v12271_v61  ;;  %v79_v20 = vld [vmem:[%s13564_s0 + $0x218] sm:$0xff]  ;;  %14000 = vst [vmem:[#allocation17_spill] sm:$0xff] %v12316_v52 }
 0x19b   :  { %10230 = vmatprep.subr.mxu0 %v12166_v17  ;;  %10260 = vmatprep.subr.mxu1 %v2511_v28  ;;  %v2406_v28 = vand.u32 4294901760, %v2405_v27  ;;  %v372_v27 = vsel %vm160_vm0, %v81_v41, 0  ;;  %v2413_v41 = vand.u32 4294901760, %v2412_v63  ;;  %v2538_v63 = vsub.f32 %v12251_v29, %v13710_v48 }
 0x19c   :  { %v12291_v9 = vand.u32 4294901760, %v372_v27  ;;  %13997 = vst [vmem:[#allocation9_spill] sm:$0xff] %v12297_v49  ;;  %v12322_v48 = vsub.f32 %v417_v12, %v12293_v35 }
 0x19e   :  { %10231 = vmatpush3.xpose.msra.mxu0 %v12176_v14  ;;  %10261 = vmatpush3.xpose.msra.mxu1 %v2399_v51  ;;  %v95_v51 = vld [vmem:[%s13564_s0 + $0x298] sm:$0xff]  ;;  %13995 = vst [vmem:[#allocation7_spill] sm:$0xff] %v12291_v9  ;;  %v12314_v22 = vsub.f32 %v372_v27, %v12291_v9  ;;  %14001 = vst [vmem:[#allocation21_spill] sm:$0xff] %v12322_v48  ;;  %v12342_v27 = vsub.f32 %v369_v44, %v12316_v52 }
 0x19f   :  { %10232 = vmatprep.subr.mxu0 %v12178_v11  ;;  %10262 = vmatprep.subr.mxu1 %v2518_v1  ;;  %v2419_v1 = vsub.f32 %v12230_v40, %v13707_v45  ;;  %v14003_v11 = vand.u32 4294901760, %v12280_v16 }
 0x1a0   :  { %13999 = vst [vmem:[#allocation12_spill] sm:$0xff] %v12314_v22  ;;  %14004 = vst [vmem:[#allocation24_spill] sm:$0xff] %v12342_v27 }
 0x1a1   :  { %v2545_v12 = vsub.f32 %v12280_v16, %v14003_v11  ;;  %v93_v11 = vld [vmem:[%s13564_s0 + $0x288] sm:$0xff] }
 0x1a2   :  { %10233 = vmatpush3.xpose.msra.mxu0 %v12204_v53  ;;  %10263 = vmatpush3.xpose.msra.mxu1 %v2406_v28  ;;  %v414_v53 = vsel %vm160_vm0, %v95_v51, 0  ;;  %v12308_v28 = vsub.f32 %v420_v54, %v12276_v36  ;;  %v2420_v54 = vand.u32 4294901760, %v2419_v1  ;;  %v2426_v51 = vsub.f32 %v12269_v10, %v13717_v57  ;;  %v78_v57 = vld [vmem:[%s13564_s0 + $0x210] sm:$0xff] }
 0x1a3   :  { %10234 = vmatprep.subr.mxu0 %v12221_v47  ;;  %10264 = vmatprep.subr.mxu1 %v2525_v7  ;;  %v94_v7 = vld [vmem:[%s13564_s0 + $0x290] sm:$0xff]  ;;  %v12329_v45 = vand.u32 4294901760, %v414_v53  ;;  %v2539_v47 = vand.u32 4294901760, %v2538_v63  ;;  %v2546_v63 = vand.u32 4294901760, %v2545_v12 }
 0x1a4   :  { %13998 = vst [vmem:[#allocation11_spill] sm:$0xff] %v12308_v28  ;;  %v411_v1 = vsel %vm160_vm0, %v94_v7, 0  ;;  %v14005_v7 = vand.u32 4294901760, %v12297_v49 }
 0x1a5   :  { %14002 = vst [vmem:[#allocation16_spill] sm:$0xff] %v12329_v45  ;;  %v12356_v44 = vsub.f32 %v414_v53, %v12329_v45  ;;  %v14010_v53 = vand.u32 4294901760, %v12314_v22 }
 0x1a6   :  { %10235 = vmatpush3.xpose.msra.mxu0 %v12241_v38  ;;  %10265 = vmatpush3.xpose.msra.mxu1 %v2413_v41  ;;  %v366_v41 = vsel %vm160_vm0, %v79_v20, 0  ;;  %v2427_v20 = vand.u32 4294901760, %v2426_v51  ;;  %v2433_v38 = vsub.f32 %v12297_v49, %v14005_v7  ;;  %v408_v51 = vsel %vm160_vm0, %v93_v11, 0  ;;  %v77_v7 = vld [vmem:[%s13564_s0 + $0x208] sm:$0xff] }
 0x1a7   :  { %10236 = vmatprep.subr.mxu0 %v12247_v32  ;;  %10266 = vmatprep.subr.mxu1 %v2532_v55  ;;  %v12353_v32 = vand.u32 4294901760, %v366_v41  ;;  %14007 = vst [vmem:[#allocation18_spill] sm:$0xff] %v12356_v44  ;;  %v14008_v55 = vand.u32 4294901760, %v12308_v28 }
 0x1a8   :  { %v2434_v11 = vand.u32 4294901760, %v2433_v38 }
 0x1a9   :  { %14006 = vst [vmem:[#allocation22_spill] sm:$0xff] %v12353_v32  ;;  %v2552_v16 = vsub.f32 %v12308_v28, %v14008_v55  ;;  %v12381_v28 = vsub.f32 %v366_v41, %v12353_v32  ;;  %v12387_v55 = vand.u32 4294901760, %v408_v51  ;;  %v76_v41 = vld [vmem:[%s13564_s0 + $0x200] sm:$0xff] }
 0x1aa   :  { %10237 = vmatpush3.xpose.msra.mxu0 %v12271_v61  ;;  %10267 = vmatpush3.xpose.msra.mxu1 %v2420_v54  ;;  %v12362_v61 = vand.u32 4294901760, %v411_v1  ;;  %v363_v54 = vsel %vm160_vm0, %v78_v57, 0  ;;  %v92_v57 = vld [vmem:[%s13564_s0 + $0x280] sm:$0xff] }
 0x1ab   :  { %10238 = vmatprep.subr.mxu0 %v12276_v36  ;;  %10268 = vmatprep.subr.mxu1 %v2539_v47  ;;  %v2440_v36 = vsub.f32 %v12314_v22, %v14010_v53  ;;  %v14011_v47 = vand.u32 4294901760, %v12322_v48  ;;  %v12383_v49 = vand.u32 4294901760, %v363_v54  ;;  %14012 = vst [vmem:[#allocation25_spill] sm:$0xff] %v12387_v55  ;;  %v405_v38 = vsel %vm160_vm0, %v92_v57, 0 }
 0x1ac   :  { %14009 = vst [vmem:[#allocation27_spill] sm:$0xff] %v12362_v61  ;;  %v12391_v22 = vsub.f32 %v411_v1, %v12362_v61  ;;  %v14013_v53 = vand.u32 4294901760, %v12342_v27  ;;  %v14014_v1 = vand.u32 4294901760, %v12356_v44 }
 0x1ad   :  { %v2559_v12 = vsub.f32 %v12322_v48, %v14011_v47  ;;  %v2553_v47 = vand.u32 4294901760, %v2552_v16  ;;  %v360_v48 = vsel %vm160_vm0, %v77_v7, 0  ;;  %v12402_v16 = vsub.f32 %v363_v54, %v12383_v49 }
 0x1ae   :  { %10239 = vmatpush3.xpose.msra.mxu0 %v12291_v9  ;;  %10269 = vmatpush3.xpose.msra.mxu1 %v2427_v20  ;;  %v2441_v20 = vand.u32 4294901760, %v2440_v36  ;;  %v2566_v7 = vsub.f32 %v12356_v44, %v14014_v1  ;;  %v12407_v57 = vand.u32 4294901760, %v360_v48  ;;  %v12411_v36 = vand.u32 4294901760, %v405_v38 }
 0x1af   :  { %10240 = vmatprep.subr.mxu0 %v12293_v35  ;;  %10270 = vmatprep.subr.mxu1 %v2546_v63  ;;  %v2560_v9 = vand.u32 4294901760, %v2559_v12  ;;  %v2447_v63 = vsub.f32 %v12342_v27, %v14013_v53  ;;  %v13740_v35 = vand.u32 4294901760, %v12381_v28  ;;  %v12416_v54 = vsub.f32 %v408_v51, %v12387_v55 }
 0x1b0   :  { %v12420_v1 = vsub.f32 %v360_v48, %v12407_v57  ;;  %v13743_v12 = vand.u32 4294901760, %v12402_v16  ;;  %v2567_v51 = vand.u32 4294901760, %v2566_v7  ;;  %v12434_v48 = vsub.f32 %v405_v38, %v12411_v36 }
 0x1b1   :  { %v2448_v53 = vand.u32 4294901760, %v2447_v63 }
 0x1b2   :  { %10241 = vmatpush3.xpose.msra.mxu0 %v12316_v52  ;;  %10271 = vmatpush3.xpose.msra.mxu1 %v2434_v11  ;;  %v357_v11 = vsel %vm160_vm0, %v76_v41, 0  ;;  %14015 = vst [vmem:[#allocation26_spill] sm:$0xff] %v12420_v1  ;;  %v14016_v41 = vand.u32 4294901760, %v12391_v22  ;;  %v13747_v7 = vand.u32 4294901760, %v12420_v1 }
 0x1b3   :  { %10242 = vmatprep.subr.mxu0 %v12329_v45  ;;  %10272 = vmatprep.subr.mxu1 %v2553_v47  ;;  %v2454_v47 = vsub.f32 %v12381_v28, %v13740_v35  ;;  %v12425_v45 = vand.u32 4294901760, %v357_v11 }
 0x1b4   :  { %v2573_v63 = vsub.f32 %v12391_v22, %v14016_v41 }
 0x1b5   :  { %v2455_v35 = vand.u32 4294901760, %v2454_v47  ;;  %v2468_v47 = vsub.f32 %v12420_v1, %v13747_v7  ;;  %v14028_v7 = vld [vmem:[#allocation15_spill] sm:$0xff] }
 0x1b6   :  { %10243 = vmatpush3.xpose.msra.mxu0 %v12353_v32  ;;  %10273 = vmatpush3.xpose.msra.mxu1 %v2441_v20  ;;  %v13744_v20 = vand.u32 4294901760, %v12416_v54  ;;  %v12438_v32 = vsub.f32 %v357_v11, %v12425_v45  ;;  %v2574_v41 = vand.u32 4294901760, %v2573_v63 }
 0x1b7   :  { %10244 = vmatprep.subr.mxu0 %v12362_v61  ;;  %10274 = vmatprep.subr.mxu1 %v2560_v9  ;;  %v2461_v9 = vsub.f32 %v12402_v16, %v13743_v12 }
 0x1b8   :  { %v2580_v38 = vsub.f32 %v12416_v54, %v13744_v20  ;;  %v13745_v12 = vand.u32 4294901760, %v12438_v32  ;;  %v2469_v20 = vand.u32 4294901760, %v2468_v47  ;;  %v14020_v47 = vld [vmem:[#allocation5_spill] sm:$0xff] }
 0x1b9   :  { %v2462_v11 = vand.u32 4294901760, %v2461_v9 }
 0x1ba   :  { %10245 = vmatpush3.xpose.msra.mxu0 %v12383_v49  ;;  %10275 = vmatpush3.xpose.msra.mxu1 %v2448_v53  ;;  %v13746_v53 = vand.u32 4294901760, %v12434_v48 }
 0x1bb   :  { %10246 = vmatprep.subr.mxu0 %v12387_v55  ;;  %10276 = vmatprep.subr.mxu1 %v2567_v51  ;;  %v2581_v51 = vand.u32 4294901760, %v2580_v38  ;;  %v14018_v38 = vld [vmem:[#allocation10_spill] sm:$0xff] }
 0x1bc   :  { %v2587_v63 = vsub.f32 %v12434_v48, %v13746_v53  ;;  %v14027_v53 = vld [vmem:[#allocation6_spill] sm:$0xff] }
 0x1be   :  { %10247 = vmatpush3.xpose.msra.mxu0 %v12407_v57  ;;  %10277 = vmatpush3.xpose.msra.mxu1 %v2455_v35  ;;  %v2475_v35 = vsub.f32 %v12438_v32, %v13745_v12  ;;  %v2588_v9 = vand.u32 4294901760, %v2587_v63  ;;  %v14022_v63 = vld [vmem:[#allocation14_spill] sm:$0xff]  ;;  %v14026_v12 = vld [vmem:[#allocation19_spill] sm:$0xff] }
 0x1bf   :  { %10248 = vmatprep.subr.mxu0 %v12411_v36  ;;  %10278 = vmatprep.subr.mxu1 %v2574_v41 }
 0x1c0   :  { %v2476_v41 = vand.u32 4294901760, %v2475_v35  ;;  %v14023_v35 = vld [vmem:[#allocation12_spill] sm:$0xff] }
 0x1c2   :  { %10249 = vmatpush3.xpose.msra.mxu0 %v12425_v45  ;;  %10279 = vmatpush3.xpose.msra.mxu1 %v2462_v11  ;;  %v14019_v11 = vld [vmem:[#allocation9_spill] sm:$0xff] }
 0x1c3   :  { %10280 = vmatprep.subr.mxu1 %v2581_v51  ;;  %10286 = vmatprep.subr.mxu0 %v12020_v8  ;;  %v14021_v51 = vld [vmem:[#allocation11_spill] sm:$0xff] }
 0x1c5   :  { %10251 = vmatmul.mubr.f32.vlgmr.msra.gmra.mxu0 %v13986_v5  ;;  %v14029_v5 = vld [vmem:[#allocation7_spill] sm:$0xff] }
 0x1c6   :  { %10281 = vmatpush3.xpose.msra.mxu1 %v2469_v20  ;;  %10287 = vmatpush3.xpose.msra.mxu0 %v12030_v58  ;;  %v14017_v20 = vld [vmem:[#allocation20_spill] sm:$0xff] }
 0x1c7   :  { %10282 = vmatprep.subr.mxu1 %v2588_v9  ;;  %10288 = vmatprep.subr.mxu0 %v12045_v2  ;;  %v14024_v9 = vld [vmem:[#allocation13_spill] sm:$0xff] }
 0x1c8   :  { %10318 = vmatprep.mubr.f32.mxu0 %v11143_v4 }
 0x1ca   :  { %10283 = vmatpush3.xpose.msra.mxu1 %v2476_v41  ;;  %10289 = vmatpush3.xpose.msra.mxu0 %v12055_v6  ;;  %v14025_v41 = vld [vmem:[#allocation21_spill] sm:$0xff] }
 0x1cb   :  { %10290 = vmatprep.subr.mxu0 %v12072_v19  ;;  %10320 = vmatprep.subr.mxu1 %v11998_v34 }
 0x1cd   :  { %10285 = vmatmul.mubr.f32.vlgmr.msra.gmra.mxu1 %v11122_v31 }
 0x1ce   :  { %10291 = vmatpush3.xpose.msra.mxu0 %v12087_v43  ;;  %10321 = vmatpush3.xpose.msra.mxu1 %v12011_v25 }
 0x1cf   :  { %10292 = vmatprep.subr.mxu0 %v12108_v60  ;;  %10322 = vmatprep.subr.mxu1 %v12016_v50 }
 0x1d0   :  { %10352 = vmatprep.mubr.f32.mxu1 %v11152_v18 }
 0x1d2   :  { %10293 = vmatpush3.xpose.msra.mxu0 %v12115_v21  ;;  %10323 = vmatpush3.xpose.msra.mxu1 %v12032_v59 }
 0x1d3   :  { %10294 = vmatprep.subr.mxu0 %v12137_v15  ;;  %10324 = vmatprep.subr.mxu1 %v12040_v56 }
 0x1d6   :  { %10295 = vmatpush3.xpose.msra.mxu0 %v12155_v42  ;;  %10325 = vmatpush3.xpose.msra.mxu1 %v12057_v24 }
 0x1d7   :  { %10296 = vmatprep.subr.mxu0 %v12160_v37  ;;  %10326 = vmatprep.subr.mxu1 %v12076_v30 }
 0x1da   :  { %10297 = vmatpush3.xpose.msra.mxu0 %v12174_v26  ;;  %10327 = vmatpush3.xpose.msra.mxu1 %v12089_v3 }
 0x1db   :  { %10298 = vmatprep.subr.mxu0 %v12195_v0  ;;  %10328 = vmatprep.subr.mxu1 %v12103_v39 }
 0x1de   :  { %10299 = vmatpush3.xpose.msra.mxu0 %v12202_v33  ;;  %10329 = vmatpush3.xpose.msra.mxu1 %v12126_v13 }
 0x1df   :  { %10300 = vmatprep.subr.mxu0 %v12211_v62  ;;  %10330 = vmatprep.subr.mxu1 %v12128_v46 }
 0x1e2   :  { %10301 = vmatpush3.xpose.msra.mxu0 %v12230_v40  ;;  %10331 = vmatpush3.xpose.msra.mxu1 %v12150_v23 }
 0x1e3   :  { %10302 = vmatprep.subr.mxu0 %v12251_v29  ;;  %10332 = vmatprep.subr.mxu1 %v12166_v17 }
 0x1e6   :  { %10303 = vmatpush3.xpose.msra.mxu0 %v12269_v10  ;;  %10333 = vmatpush3.xpose.msra.mxu1 %v12176_v14 }
 0x1e7   :  { %10304 = vmatprep.subr.mxu0 %v14017_v20  ;;  %10334 = vmatprep.subr.mxu1 %v14018_v38 }
 0x1ea   :  { %10305 = vmatpush3.xpose.msra.mxu0 %v14019_v11  ;;  %10335 = vmatpush3.xpose.msra.mxu1 %v14020_v47 }
 0x1eb   :  { %10306 = vmatprep.subr.mxu0 %v14021_v51  ;;  %10336 = vmatprep.subr.mxu1 %v14022_v63 }
 0x1ee   :  { %10307 = vmatpush3.xpose.msra.mxu0 %v14023_v35  ;;  %10337 = vmatpush3.xpose.msra.mxu1 %v14024_v9  ;;  %v14030_v35 = vld [vmem:[#allocation8_spill] sm:$0xff] }
 0x1ef   :  { %10308 = vmatprep.subr.mxu0 %v14025_v41  ;;  %10338 = vmatprep.subr.mxu1 %v14026_v12 }
 0x1f2   :  { %10309 = vmatpush3.xpose.msra.mxu0 %v12342_v27  ;;  %10339 = vmatpush3.xpose.msra.mxu1 %v14027_v53  ;;  %v14031_v27 = vld [vmem:[#allocation16_spill] sm:$0xff] }
 0x1f3   :  { %10310 = vmatprep.subr.mxu0 %v12356_v44  ;;  %10340 = vmatprep.subr.mxu1 %v14028_v7  ;;  %v14032_v44 = vld [vmem:[#allocation22_spill] sm:$0xff] }
 0x1f6   :  { %10311 = vmatpush3.xpose.msra.mxu0 %v12381_v28  ;;  %10341 = vmatpush3.xpose.msra.mxu1 %v14029_v5 }
 0x1f7   :  { %10312 = vmatprep.subr.mxu0 %v12391_v22  ;;  %10342 = vmatprep.subr.mxu1 %v14030_v35 }
 0x1fa   :  { %10313 = vmatpush3.xpose.msra.mxu0 %v12402_v16  ;;  %10343 = vmatpush3.xpose.msra.mxu1 %v12316_v52  ;;  %v14033_v52 = vand.u32 4294901760, %v12020_v8  ;;  %v14037_v8 = vand.u32 4294901760, %v12072_v19  ;;  %v14042_v19 = vand.u32 4294901760, %v12155_v42 }
 0x1fb   :  { %10314 = vmatprep.subr.mxu0 %v12416_v54  ;;  %10344 = vmatprep.subr.mxu1 %v14031_v27 }
 0x1fe   :  { %10315 = vmatpush3.xpose.msra.mxu0 %v12420_v1  ;;  %10345 = vmatpush3.xpose.msra.mxu1 %v14032_v44  ;;  %v14034_v1 = vand.u32 4294901760, %v12030_v58  ;;  %v14038_v58 = vand.u32 4294901760, %v12087_v43  ;;  %v14049_v43 = vand.u32 4294901760, %v12251_v29  ;;  %v14059_v29 = vld [vmem:[#allocation18_spill] sm:$0xff] }
 0x1ff   :  { %10316 = vmatprep.subr.mxu0 %v12434_v48  ;;  %10346 = vmatprep.subr.mxu1 %v12362_v61  ;;  %v14035_v61 = vand.u32 4294901760, %v12045_v2  ;;  %v14039_v2 = vand.u32 4294901760, %v12108_v60  ;;  %v14052_v60 = vand.u32 4294901760, %v14019_v11  ;;  %v14060_v42 = vand.u32 4294901760, %v14059_v29  ;;  %v118_v29 = vld [vmem:[%s13564_s0 + $0x350] sm:$0xff] }
 0x202   :  { %10317 = vmatpush3.xpose.msra.mxu0 %v12438_v32  ;;  %10347 = vmatpush3.xpose.msra.mxu1 %v12383_v49 }
 0x203   :  { %10348 = vmatprep.subr.mxu1 %v12387_v55  ;;  %10354 = vmatprep.subr.mxu0 %v14033_v52  ;;  %v14036_v55 = vand.u32 4294901760, %v12055_v6  ;;  %v14040_v6 = vand.u32 4294901760, %v12115_v21  ;;  %v14053_v21 = vand.u32 4294901760, %v14021_v51  ;;  %v122_v52 = vld [vmem:[%s13564_s0 + $0x370] sm:$0xff] }
 0x204   :  { %v14066_v51 = vld [vmem:[#allocation26_spill] sm:$0xff] }
 0x205   :  { %10319 = vmatmul.mubr.f32.vlgmr.msra.gmra.mxu0 %v11143_v4 }
 0x206   :  { %10349 = vmatpush3.xpose.msra.mxu1 %v12407_v57  ;;  %10355 = vmatpush3.xpose.msra.mxu0 %v14034_v1  ;;  %v495_v1 = vsel %vm160_vm0, %v122_v52, 0 }
 0x207   :  { %10350 = vmatprep.subr.mxu1 %v12411_v36  ;;  %10356 = vmatprep.subr.mxu0 %v14035_v61  ;;  %v14054_v61 = vld [vmem:[#allocation12_spill] sm:$0xff]  ;;  %v12652_v11 = vand.u32 4294901760, %v495_v1 }
 0x208   :  { %10386 = vmatprep.mubr.f32.mxu0 %v11122_v31 }
 0x20a   :  { %10351 = vmatpush3.xpose.msra.mxu1 %v12425_v45  ;;  %10357 = vmatpush3.xpose.msra.mxu0 %v14036_v55  ;;  %v14063_v55 = vand.u32 4294901760, %v12402_v16  ;;  %v121_v16 = vld [vmem:[%s13564_s0 + $0x368] sm:$0xff] }
 0x20b   :  { %10358 = vmatprep.subr.mxu0 %v14037_v8  ;;  %10388 = vmatprep.subr.mxu1 %v11998_v34  ;;  %v14041_v34 = vand.u32 4294901760, %v12137_v15  ;;  %v14057_v15 = vld [vmem:[#allocation24_spill] sm:$0xff]  ;;  %v14069_v8 = vld [vmem:[#allocation27_spill] sm:$0xff] }
 0x20d   :  { %10353 = vmatmul.mubr.f32.vlgmr.msra.gmra.mxu1 %v11152_v18 }
 0x20e   :  { %10359 = vmatpush3.xpose.msra.mxu0 %v14038_v58  ;;  %10389 = vmatpush3.xpose.msra.mxu1 %v12011_v25  ;;  %v14043_v25 = vand.u32 4294901760, %v12160_v37  ;;  %v120_v58 = vld [vmem:[%s13564_s0 + $0x360] sm:$0xff] }
 0x20f   :  { %10360 = vmatprep.subr.mxu0 %v14039_v2  ;;  %10390 = vmatprep.subr.mxu1 %v12016_v50  ;;  %v14044_v50 = vand.u32 4294901760, %v12174_v26  ;;  %v138_v26 = vld [vmem:[%s13564_s0 + $0x3f0] sm:$0xff]  ;;  %v12675_v2 = vsub.f32 %v495_v1, %v12652_v11  ;;  %v132_v1 = vld [vmem:[%s13564_s0 + $0x3c0] sm:$0xff] }
 0x210   :  { %10420 = vmatprep.mubr.f32.mxu1 %v11122_v31 }
 0x212   :  { %10361 = vmatpush3.xpose.msra.mxu0 %v14040_v6  ;;  %10391 = vmatpush3.xpose.msra.mxu1 %v12032_v59  ;;  %v14045_v59 = vand.u32 4294901760, %v12195_v0 }
 0x213   :  { %10362 = vmatprep.subr.mxu0 %v14041_v34  ;;  %10392 = vmatprep.subr.mxu1 %v12040_v56  ;;  %v14046_v56 = vand.u32 4294901760, %v12202_v33 }
 0x216   :  { %10363 = vmatpush3.xpose.msra.mxu0 %v14042_v19  ;;  %10393 = vmatpush3.xpose.msra.mxu1 %v12057_v24  ;;  %v14047_v24 = vand.u32 4294901760, %v12211_v62  ;;  %v14062_v62 = vand.u32 4294901760, %v12391_v22  ;;  %v14070_v19 = vand.u32 4294901760, %v12438_v32 }
 0x217   :  { %10364 = vmatprep.subr.mxu0 %v14043_v25  ;;  %10394 = vmatprep.subr.mxu1 %v12076_v30  ;;  %v14048_v30 = vand.u32 4294901760, %v12230_v40  ;;  %v543_v40 = vsel %vm160_vm0, %v138_v26, 0  ;;  %v133_v26 = vld [vmem:[%s13564_s0 + $0x3c8] sm:$0xff] }
 0x218   :  { %v12636_v22 = vand.u32 4294901760, %v543_v40 }
 0x21a   :  { %10365 = vmatpush3.xpose.msra.mxu0 %v14044_v50  ;;  %10395 = vmatpush3.xpose.msra.mxu1 %v12089_v3  ;;  %v14050_v3 = vand.u32 4294901760, %v12269_v10  ;;  %v139_v10 = vld [vmem:[%s13564_s0 + $0x3f8] sm:$0xff] }
 0x21b   :  { %10366 = vmatprep.subr.mxu0 %v14045_v59  ;;  %10396 = vmatprep.subr.mxu1 %v12103_v39  ;;  %v14051_v39 = vand.u32 4294901760, %v14017_v20  ;;  %v546_v37 = vsel %vm160_vm0, %v139_v10, 0  ;;  %v489_v59 = vsel %vm160_vm0, %v120_v58, 0 }
 0x21c   :  { %v12618_v0 = vand.u32 4294901760, %v546_v37 }
 0x21e   :  { %10367 = vmatpush3.xpose.msra.mxu0 %v14046_v56  ;;  %10397 = vmatpush3.xpose.msra.mxu1 %v12126_v13  ;;  %v14055_v13 = vand.u32 4294901760, %v14054_v61 }
 0x21f   :  { %10368 = vmatprep.subr.mxu0 %v14047_v24  ;;  %10398 = vmatprep.subr.mxu1 %v12128_v46  ;;  %v14056_v46 = vand.u32 4294901760, %v14025_v41  ;;  %v14068_v41 = vand.u32 4294901760, %v12434_v48  ;;  %v135_v48 = vld [vmem:[%s13564_s0 + $0x3d8] sm:$0xff]  ;;  %v14071_v24 = vld [vmem:[#allocation25_spill] sm:$0xff] }
 0x220   :  { %v534_v32 = vsel %vm160_vm0, %v135_v48, 0 }
 0x221   :  { %v12723_v10 = vand.u32 4294901760, %v534_v32 }
 0x222   :  { %10369 = vmatpush3.xpose.msra.mxu0 %v14048_v30  ;;  %10399 = vmatpush3.xpose.msra.mxu1 %v12150_v23  ;;  %v14058_v23 = vand.u32 4294901760, %v14057_v15 }
 0x223   :  { %10370 = vmatprep.subr.mxu0 %v14049_v43  ;;  %10400 = vmatprep.subr.mxu1 %v12166_v17  ;;  %v123_v17 = vld [vmem:[%s13564_s0 + $0x378] sm:$0xff]  ;;  %v134_v43 = vld [vmem:[%s13564_s0 + $0x3d0] sm:$0xff] }
 0x224   :  { %v498_v33 = vsel %vm160_vm0, %v123_v17, 0  ;;  %v531_v15 = vsel %vm160_vm0, %v134_v43, 0  ;;  %v131_v43 = vld [vmem:[%s13564_s0 + $0x3b8] sm:$0xff] }
 0x226   :  { %10371 = vmatpush3.xpose.msra.mxu0 %v14050_v3  ;;  %10401 = vmatpush3.xpose.msra.mxu1 %v12176_v14  ;;  %v14061_v14 = vand.u32 4294901760, %v12381_v28  ;;  %v137_v28 = vld [vmem:[%s13564_s0 + $0x3e8] sm:$0xff] }
 0x227   :  { %10372 = vmatprep.subr.mxu0 %v14051_v39  ;;  %10402 = vmatprep.subr.mxu1 %v14018_v38  ;;  %v540_v20 = vsel %vm160_vm0, %v137_v28, 0  ;;  %v12709_v39 = vand.u32 4294901760, %v489_v59 }
 0x22a   :  { %10373 = vmatpush3.xpose.msra.mxu0 %v14052_v60  ;;  %10403 = vmatpush3.xpose.msra.mxu1 %v14020_v47  ;;  %v136_v47 = vld [vmem:[%s13564_s0 + $0x3e0] sm:$0xff]  ;;  %v13766_v60 = vand.u32 4294901760, %v12675_v2 }
 0x22b   :  { %10374 = vmatprep.subr.mxu0 %v14053_v21  ;;  %10404 = vmatprep.subr.mxu1 %v14022_v63 }
 0x22e   :  { %10375 = vmatpush3.xpose.msra.mxu0 %v14055_v13  ;;  %10405 = vmatpush3.xpose.msra.mxu1 %v14024_v9  ;;  %v12665_v9 = vsub.f32 %v543_v40, %v12636_v22  ;;  %v483_v40 = vsel %vm160_vm0, %v118_v29, 0 }
 0x22f   :  { %10376 = vmatprep.subr.mxu0 %v14056_v46  ;;  %10406 = vmatprep.subr.mxu1 %v14026_v12  ;;  %v14064_v12 = vld [vmem:[#allocation17_spill] sm:$0xff] }
 0x230   :  { %v13767_v50 = vand.u32 4294901760, %v12665_v9 }
 0x232   :  { %10377 = vmatpush3.xpose.msra.mxu0 %v14058_v23  ;;  %10407 = vmatpush3.xpose.msra.mxu1 %v14027_v53  ;;  %v14065_v53 = vand.u32 4294901760, %v12416_v54  ;;  %v14067_v54 = vand.u32 4294901760, %v14066_v51  ;;  %v3344_v13 = vsub.f32 %v12665_v9, %v13767_v50 }
 0x233   :  { %10378 = vmatprep.subr.mxu0 %v14060_v42  ;;  %10408 = vmatprep.subr.mxu1 %v14028_v7  ;;  %v12640_v7 = vsub.f32 %v546_v37, %v12618_v0  ;;  %v14072_v42 = vld [vmem:[#allocation23_spill] sm:$0xff]  ;;  %v12735_v37 = vsub.f32 %v489_v59, %v12709_v39 }
 0x234   :  { %v3345_v52 = vand.u32 4294901760, %v3344_v13 }
 0x235   :  { %v13769_v63 = vand.u32 4294901760, %v12640_v7  ;;  %v13759_v51 = vand.u32 4294901760, %v12735_v37 }
 0x236   :  { %10379 = vmatpush3.xpose.msra.mxu0 %v14061_v14  ;;  %10409 = vmatpush3.xpose.msra.mxu1 %v14029_v5  ;;  %v12631_v5 = vand.u32 4294901760, %v498_v33 }
 0x237   :  { %10380 = vmatprep.subr.mxu0 %v14062_v62  ;;  %10410 = vmatprep.subr.mxu1 %v14030_v35  ;;  %v492_v35 = vsel %vm160_vm0, %v121_v16, 0  ;;  %v3337_v25 = vsub.f32 %v12640_v7, %v13769_v63  ;;  %v12748_v62 = vand.u32 4294901760, %v531_v15 }
 0x238   :  { %v12650_v38 = vsub.f32 %v498_v33, %v12631_v5  ;;  %v12677_v6 = vand.u32 4294901760, %v492_v35 }
 0x239   :  { %v3338_v21 = vand.u32 4294901760, %v3337_v25  ;;  %v116_v25 = vld [vmem:[%s13564_s0 + $0x340] sm:$0xff] }
 0x23a   :  { %10381 = vmatpush3.xpose.msra.mxu0 %v14063_v55  ;;  %10411 = vmatpush3.xpose.msra.mxu1 %v14064_v12  ;;  %v13768_v34 = vand.u32 4294901760, %v12650_v38  ;;  %v12707_v3 = vsub.f32 %v492_v35, %v12677_v6  ;;  %v117_v12 = vld [vmem:[%s13564_s0 + $0x348] sm:$0xff] }
 0x23b   :  { %10382 = vmatprep.subr.mxu0 %v14065_v53  ;;  %10412 = vmatprep.subr.mxu1 %v14031_v27  ;;  %v12660_v27 = vand.u32 4294901760, %v540_v20  ;;  %v528_v53 = vsel %vm160_vm0, %v133_v26, 0  ;;  %v480_v35 = vsel %vm160_vm0, %v117_v12, 0  ;;  %v522_v26 = vsel %vm160_vm0, %v131_v43, 0  ;;  %v130_v12 = vld [vmem:[%s13564_s0 + $0x3b0] sm:$0xff] }
 0x23c   :  { %v3225_v61 = vsub.f32 %v12650_v38, %v13768_v34  ;;  %v13762_v17 = vand.u32 4294901760, %v12707_v3  ;;  %v12786_v48 = vand.u32 4294901760, %v528_v53 }
 0x23d   :  { %v12692_v56 = vsub.f32 %v540_v20, %v12660_v27 }
 0x23e   :  { %10383 = vmatpush3.xpose.msra.mxu0 %v14067_v54  ;;  %10413 = vmatpush3.xpose.msra.mxu1 %v14032_v44  ;;  %v537_v44 = vsel %vm160_vm0, %v136_v47, 0  ;;  %v3226_v14 = vand.u32 4294901760, %v3225_v61  ;;  %v3239_v16 = vsub.f32 %v12707_v3, %v13762_v17  ;;  %v12770_v47 = vand.u32 4294901760, %v483_v40 }
 0x23f   :  { %10384 = vmatprep.subr.mxu0 %v14068_v41  ;;  %10414 = vmatprep.subr.mxu1 %v14069_v8  ;;  %v12696_v30 = vand.u32 4294901760, %v537_v44  ;;  %v13764_v46 = vand.u32 4294901760, %v12692_v56  ;;  %v525_v41 = vsel %vm160_vm0, %v132_v1, 0  ;;  %v12780_v8 = vsub.f32 %v531_v15, %v12748_v62 }
 0x240   :  { %v3240_v59 = vand.u32 4294901760, %v3239_v16 }
 0x241   :  { %v12728_v23 = vsub.f32 %v537_v44, %v12696_v30  ;;  %v3351_v28 = vsub.f32 %v12692_v56, %v13764_v46  ;;  %v13755_v13 = vand.u32 4294901760, %v12780_v8 }
 0x242   :  { %10385 = vmatpush3.xpose.msra.mxu0 %v14070_v19  ;;  %10415 = vmatpush3.xpose.msra.mxu1 %v12383_v49  ;;  %v119_v49 = vld [vmem:[%s13564_s0 + $0x358] sm:$0xff] }
 0x243   :  { %10416 = vmatprep.subr.mxu1 %v14071_v24  ;;  %10422 = vmatprep.subr.mxu0 %v12618_v0  ;;  %v13761_v55 = vand.u32 4294901760, %v12728_v23  ;;  %v3352_v58 = vand.u32 4294901760, %v3351_v28  ;;  %v12794_v24 = vsub.f32 %v483_v40, %v12770_v47  ;;  %v3372_v16 = vsub.f32 %v12780_v8, %v13755_v13 }
 0x245   :  { %10387 = vmatmul.mubr.f32.vlgmr.msra.gmra.mxu0 %v11122_v31  ;;  %v3358_v44 = vsub.f32 %v12728_v23, %v13761_v55  ;;  %v13757_v28 = vand.u32 4294901760, %v12794_v24  ;;  %v3373_v13 = vand.u32 4294901760, %v3372_v16 }
 0x246   :  { %10417 = vmatpush3.xpose.msra.mxu1 %v12407_v57  ;;  %10423 = vmatpush3.xpose.msra.mxu0 %v12631_v5  ;;  %v486_v57 = vsel %vm160_vm0, %v119_v49, 0  ;;  %v12798_v49 = vand.u32 4294901760, %v525_v41 }
 0x247   :  { %10418 = vmatprep.subr.mxu1 %v12411_v36  ;;  %10424 = vmatprep.subr.mxu0 %v12636_v22  ;;  %v3232_v36 = vsub.f32 %v12675_v2, %v13766_v60  ;;  %v12746_v33 = vand.u32 4294901760, %v486_v57  ;;  %v3359_v15 = vand.u32 4294901760, %v3358_v44 }
 0x248   :  { %10454 = vmatprep.mubr.f32.mxu0 %v14072_v42  ;;  %14073 = vst [vmem:[#allocation20_spill] sm:$0xff] %v12798_v49  ;;  %v12831_v1 = vsub.f32 %v525_v41, %v12798_v49 }
 0x249   :  { %v3233_v20 = vand.u32 4294901760, %v3232_v36  ;;  %v12775_v54 = vsub.f32 %v486_v57, %v12746_v33  ;;  %v477_v57 = vsel %vm160_vm0, %v116_v25, 0  ;;  %v12815_v36 = vsub.f32 %v528_v53, %v12786_v48 }
 0x24a   :  { %10419 = vmatpush3.xpose.msra.mxu1 %v12425_v45  ;;  %10425 = vmatpush3.xpose.msra.mxu0 %v12652_v11  ;;  %v12757_v45 = vsub.f32 %v534_v32, %v12723_v10  ;;  %v12796_v32 = vand.u32 4294901760, %v480_v35  ;;  %v519_v25 = vsel %vm160_vm0, %v130_v12, 0 }
 0x24b   :  { %10426 = vmatprep.subr.mxu0 %v12660_v27  ;;  %10456 = vmatprep.subr.mxu1 %v3338_v21  ;;  %v3246_v21 = vsub.f32 %v12735_v37, %v13759_v51  ;;  %v13756_v61 = vand.u32 4294901760, %v12775_v54  ;;  %v13760_v41 = vand.u32 4294901760, %v12815_v36 }
 0x24c   :  { %v13758_v19 = vand.u32 4294901760, %v12757_v45  ;;  %v12822_v40 = vsub.f32 %v480_v35, %v12796_v32 }
 0x24d   :  { %10421 = vmatmul.mubr.f32.vlgmr.msra.gmra.mxu1 %v11122_v31  ;;  %v3247_v53 = vand.u32 4294901760, %v3246_v21  ;;  %v3260_v21 = vsub.f32 %v12794_v24, %v13757_v28  ;;  %v12867_v28 = vand.u32 4294901760, %v519_v25 }
 0x24e   :  { %10427 = vmatpush3.xpose.msra.mxu0 %v12677_v6  ;;  %10457 = vmatpush3.xpose.msra.mxu1 %v3226_v14  ;;  %v3365_v29 = vsub.f32 %v12757_v45, %v13758_v19  ;;  %v115_v14 = vld [vmem:[%s13564_s0 + $0x338] sm:$0xff] }
 0x24f   :  { %10428 = vmatprep.subr.mxu0 %v12696_v30  ;;  %10458 = vmatprep.subr.mxu1 %v3345_v52  ;;  %v12824_v52 = vand.u32 4294901760, %v477_v57  ;;  %v474_v44 = vsel %vm160_vm0, %v115_v14, 0  ;;  %v129_v14 = vld [vmem:[%s13564_s0 + $0x3a8] sm:$0xff]  ;;  %14077 = vst [vmem:[#allocation11_spill] sm:$0xff] %v12867_v28  ;;  %v12900_v60 = vsub.f32 %v519_v25, %v12867_v28 }
 0x250   :  { %10488 = vmatprep.mubr.f32.mxu1 %v11122_v31  ;;  %v3366_v35 = vand.u32 4294901760, %v3365_v29  ;;  %v13765_v29 = vand.u32 4294901760, %v12831_v1  ;;  %v516_v16 = vsel %vm160_vm0, %v129_v14, 0 }
 0x251   :  { %14074 = vst [vmem:[#allocation10_spill] sm:$0xff] %v12824_v52  ;;  %v12850_v43 = vsub.f32 %v477_v57, %v12824_v52  ;;  %v3379_v57 = vsub.f32 %v12815_v36, %v13760_v41  ;;  %v12896_v46 = vand.u32 4294901760, %v516_v16  ;;  %14080 = vst [vmem:[#allocation21_spill] sm:$0xff] %v12900_v60 }
 0x252   :  { %10429 = vmatpush3.xpose.msra.mxu0 %v12709_v39  ;;  %10459 = vmatpush3.xpose.msra.mxu1 %v3233_v20  ;;  %v3253_v20 = vsub.f32 %v12775_v54, %v13756_v61  ;;  %v12861_v61 = vand.u32 4294901760, %v474_v44 }
 0x253   :  { %10430 = vmatprep.subr.mxu0 %v12723_v10  ;;  %10460 = vmatprep.subr.mxu1 %v3352_v58  ;;  %v12841_v58 = vand.u32 4294901760, %v522_v26  ;;  %14079 = vst [vmem:[#allocation13_spill] sm:$0xff] %v12896_v46 }
 0x254   :  { %v3254_v12 = vand.u32 4294901760, %v3253_v20  ;;  %14076 = vst [vmem:[#allocation5_spill] sm:$0xff] %v12861_v61  ;;  %v128_v20 = vld [vmem:[%s13564_s0 + $0x3a0] sm:$0xff]  ;;  %v12889_v55 = vsub.f32 %v474_v44, %v12861_v61 }
 0x255   :  { %14075 = vst [vmem:[#allocation9_spill] sm:$0xff] %v12841_v58  ;;  %v12871_v51 = vsub.f32 %v522_v26, %v12841_v58  ;;  %v3386_v26 = vsub.f32 %v12831_v1, %v13765_v29  ;;  %v513_v14 = vsel %vm160_vm0, %v128_v20, 0  ;;  %v112_v44 = vld [vmem:[%s13564_s0 + $0x320] sm:$0xff] }
 0x256   :  { %10431 = vmatpush3.xpose.msra.mxu0 %v12746_v33  ;;  %10461 = vmatpush3.xpose.msra.mxu1 %v3240_v59  ;;  %v114_v59 = vld [vmem:[%s13564_s0 + $0x330] sm:$0xff]  ;;  %v12913_v20 = vand.u32 4294901760, %v513_v14  ;;  %v13780_v34 = vand.u32 4294901760, %v12889_v55  ;;  %v465_v63 = vsel %vm160_vm0, %v112_v44, 0 }
 0x257   :  { %10432 = vmatprep.subr.mxu0 %v12748_v62  ;;  %10462 = vmatprep.subr.mxu1 %v3359_v15  ;;  %v13763_v15 = vand.u32 4294901760, %v12822_v40  ;;  %v471_v19 = vsel %vm160_vm0, %v114_v59, 0  ;;  %v13770_v59 = vand.u32 4294901760, %v12850_v43  ;;  %v13773_v29 = vand.u32 4294901760, %v12871_v51 }
 0x258   :  { %v12891_v17 = vand.u32 4294901760, %v471_v19  ;;  %14082 = vst [vmem:[#allocation6_spill] sm:$0xff] %v12913_v20  ;;  %v3387_v25 = vand.u32 4294901760, %v3386_v26  ;;  %v12936_v44 = vand.u32 4294901760, %v465_v63 }
 0x259   :  { %v3267_v41 = vsub.f32 %v12822_v40, %v13763_v15  ;;  %v3380_v15 = vand.u32 4294901760, %v3379_v57 }
 0x25a   :  { %10433 = vmatpush3.xpose.msra.mxu0 %v12770_v47  ;;  %10463 = vmatpush3.xpose.msra.mxu1 %v3247_v53  ;;  %v113_v53 = vld [vmem:[%s13564_s0 + $0x328] sm:$0xff]  ;;  %14078 = vst [vmem:[#allocation14_spill] sm:$0xff] %v12891_v17  ;;  %v12917_v50 = vsub.f32 %v471_v19, %v12891_v17  ;;  %v111_v19 = vld [vmem:[%s13564_s0 + $0x318] sm:$0xff]  ;;  %14086 = vst [vmem:[#allocation16_spill] sm:$0xff] %v12936_v44 }
 0x25b   :  { %10434 = vmatprep.subr.mxu0 %v12786_v48  ;;  %10464 = vmatprep.subr.mxu1 %v3366_v35  ;;  %v3261_v35 = vand.u32 4294901760, %v3260_v21  ;;  %v468_v21 = vsel %vm160_vm0, %v113_v53, 0  ;;  %v3268_v53 = vand.u32 4294901760, %v3267_v41  ;;  %v3393_v41 = vsub.f32 %v12871_v51, %v13773_v29 }
 0x25c   :  { %v12911_v57 = vand.u32 4294901760, %v468_v21  ;;  %14083 = vst [vmem:[#allocation15_spill] sm:$0xff] %v12917_v50  ;;  %v12942_v29 = vsub.f32 %v513_v14, %v12913_v20 }
 0x25e   :  { %10435 = vmatpush3.xpose.msra.mxu0 %v12796_v32  ;;  %10465 = vmatpush3.xpose.msra.mxu1 %v3254_v12  ;;  %v127_v12 = vld [vmem:[%s13564_s0 + $0x398] sm:$0xff]  ;;  %14081 = vst [vmem:[#allocation19_spill] sm:$0xff] %v12911_v57  ;;  %v12934_v26 = vsub.f32 %v468_v21, %v12911_v57  ;;  %14087 = vst [vmem:[#allocation22_spill] sm:$0xff] %v12942_v29  ;;  %v12962_v21 = vsub.f32 %v465_v63, %v12936_v44 }
 0x25f   :  { %10436 = vmatprep.subr.mxu0 %v12798_v49  ;;  %10466 = vmatprep.subr.mxu1 %v3373_v13  ;;  %v3274_v13 = vsub.f32 %v12850_v43, %v13770_v59  ;;  %v14089_v49 = vand.u32 4294901760, %v12900_v60 }
 0x260   :  { %14085 = vst [vmem:[#allocation8_spill] sm:$0xff] %v12934_v26  ;;  %14090 = vst [vmem:[#allocation24_spill] sm:$0xff] %v12962_v21 }
 0x261   :  { %v3400_v14 = vsub.f32 %v12900_v60, %v14089_v49  ;;  %v125_v49 = vld [vmem:[%s13564_s0 + $0x388] sm:$0xff] }
 0x262   :  { %10437 = vmatpush3.xpose.msra.mxu0 %v12824_v52  ;;  %10467 = vmatpush3.xpose.msra.mxu1 %v3261_v35  ;;  %v510_v52 = vsel %vm160_vm0, %v127_v12, 0  ;;  %v12928_v35 = vsub.f32 %v516_v16, %v12896_v46  ;;  %v3275_v16 = vand.u32 4294901760, %v3274_v13  ;;  %v3281_v12 = vsub.f32 %v12889_v55, %v13780_v34  ;;  %v110_v34 = vld [vmem:[%s13564_s0 + $0x310] sm:$0xff] }
 0x263   :  { %10438 = vmatprep.subr.mxu0 %v12841_v58  ;;  %10468 = vmatprep.subr.mxu1 %v3380_v15  ;;  %v126_v15 = vld [vmem:[%s13564_s0 + $0x390] sm:$0xff]  ;;  %v12949_v59 = vand.u32 4294901760, %v510_v52  ;;  %v3394_v58 = vand.u32 4294901760, %v3393_v41  ;;  %v3401_v41 = vand.u32 4294901760, %v3400_v14 }
 0x264   :  { %14084 = vst [vmem:[#allocation7_spill] sm:$0xff] %v12928_v35  ;;  %v507_v13 = vsel %vm160_vm0, %v126_v15, 0  ;;  %v14091_v15 = vand.u32 4294901760, %v12917_v50 }
 0x265   :  { %14088 = vst [vmem:[#allocation12_spill] sm:$0xff] %v12949_v59  ;;  %v12976_v63 = vsub.f32 %v510_v52, %v12949_v59  ;;  %v14096_v52 = vand.u32 4294901760, %v12934_v26 }
 0x266   :  { %10439 = vmatpush3.xpose.msra.mxu0 %v12861_v61  ;;  %10469 = vmatpush3.xpose.msra.mxu1 %v3268_v53  ;;  %v462_v53 = vsel %vm160_vm0, %v111_v19, 0  ;;  %v3282_v19 = vand.u32 4294901760, %v3281_v12  ;;  %v3288_v61 = vsub.f32 %v12917_v50, %v14091_v15  ;;  %v504_v12 = vsel %vm160_vm0, %v125_v49, 0  ;;  %v109_v15 = vld [vmem:[%s13564_s0 + $0x308] sm:$0xff] }
 0x267   :  { %10440 = vmatprep.subr.mxu0 %v12867_v28  ;;  %10470 = vmatprep.subr.mxu1 %v3387_v25  ;;  %v12973_v28 = vand.u32 4294901760, %v462_v53  ;;  %14093 = vst [vmem:[#allocation17_spill] sm:$0xff] %v12976_v63  ;;  %v14094_v25 = vand.u32 4294901760, %v12928_v35 }
 0x268   :  { %v3289_v49 = vand.u32 4294901760, %v3288_v61 }
 0x269   :  { %14092 = vst [vmem:[#allocation18_spill] sm:$0xff] %v12973_v28  ;;  %v3407_v60 = vsub.f32 %v12928_v35, %v14094_v25  ;;  %v13001_v35 = vsub.f32 %v462_v53, %v12973_v28  ;;  %v13007_v25 = vand.u32 4294901760, %v504_v12  ;;  %v108_v53 = vld [vmem:[%s13564_s0 + $0x300] sm:$0xff] }
 0x26a   :  { %10441 = vmatpush3.xpose.msra.mxu0 %v12891_v17  ;;  %10471 = vmatpush3.xpose.msra.mxu1 %v3275_v16  ;;  %v12982_v17 = vand.u32 4294901760, %v507_v13  ;;  %v459_v16 = vsel %vm160_vm0, %v110_v34, 0  ;;  %v124_v34 = vld [vmem:[%s13564_s0 + $0x380] sm:$0xff] }
 0x26b   :  { %10442 = vmatprep.subr.mxu0 %v12896_v46  ;;  %10472 = vmatprep.subr.mxu1 %v3394_v58  ;;  %v3295_v46 = vsub.f32 %v12934_v26, %v14096_v52  ;;  %v14097_v58 = vand.u32 4294901760, %v12942_v29  ;;  %v13003_v50 = vand.u32 4294901760, %v459_v16  ;;  %v501_v61 = vsel %vm160_vm0, %v124_v34, 0 }
 0x26c   :  { %14095 = vst [vmem:[#allocation26_spill] sm:$0xff] %v12982_v17  ;;  %v13011_v26 = vsub.f32 %v507_v13, %v12982_v17  ;;  %v14099_v52 = vand.u32 4294901760, %v12962_v21  ;;  %v14100_v13 = vand.u32 4294901760, %v12976_v63 }
 0x26d   :  { %v3414_v14 = vsub.f32 %v12942_v29, %v14097_v58  ;;  %14098 = vst [vmem:[#allocation27_spill] sm:$0xff] %v13003_v50  ;;  %v3408_v58 = vand.u32 4294901760, %v3407_v60  ;;  %v456_v29 = vsel %vm160_vm0, %v109_v15, 0  ;;  %v13022_v60 = vsub.f32 %v459_v16, %v13003_v50 }
 0x26e   :  { %10443 = vmatpush3.xpose.msra.mxu0 %v12911_v57  ;;  %10473 = vmatpush3.xpose.msra.mxu1 %v3282_v19  ;;  %v3296_v19 = vand.u32 4294901760, %v3295_v46  ;;  %v3421_v15 = vsub.f32 %v12976_v63, %v14100_v13  ;;  %v13027_v34 = vand.u32 4294901760, %v456_v29  ;;  %v13031_v46 = vand.u32 4294901760, %v501_v61 }
 0x26f   :  { %10444 = vmatprep.subr.mxu0 %v12913_v20  ;;  %10474 = vmatprep.subr.mxu1 %v3401_v41  ;;  %v3415_v57 = vand.u32 4294901760, %v3414_v14  ;;  %v3302_v41 = vsub.f32 %v12962_v21, %v14099_v52  ;;  %v13803_v20 = vand.u32 4294901760, %v13001_v35  ;;  %v13036_v16 = vsub.f32 %v504_v12, %v13007_v25 }
 0x270   :  { %v13040_v13 = vsub.f32 %v456_v29, %v13027_v34  ;;  %v13806_v14 = vand.u32 4294901760, %v13022_v60  ;;  %v3422_v12 = vand.u32 4294901760, %v3421_v15  ;;  %v13054_v29 = vsub.f32 %v501_v61, %v13031_v46 }
 0x271   :  { %v3303_v52 = vand.u32 4294901760, %v3302_v41 }
 0x272   :  { %10445 = vmatpush3.xpose.msra.mxu0 %v12936_v44  ;;  %10475 = vmatpush3.xpose.msra.mxu1 %v3289_v49  ;;  %v453_v49 = vsel %vm160_vm0, %v108_v53, 0  ;;  %14101 = vst [vmem:[#allocation25_spill] sm:$0xff] %v13040_v13  ;;  %v14103_v53 = vand.u32 4294901760, %v13011_v26  ;;  %v13810_v15 = vand.u32 4294901760, %v13040_v13 }
 0x273   :  { %10446 = vmatprep.subr.mxu0 %v12949_v59  ;;  %10476 = vmatprep.subr.mxu1 %v3408_v58  ;;  %v3309_v58 = vsub.f32 %v13001_v35, %v13803_v20  ;;  %v13045_v59 = vand.u32 4294901760, %v453_v49 }
 0x274   :  { %v3428_v41 = vsub.f32 %v13011_v26, %v14103_v53 }
 0x275   :  { %14102 = vst [vmem:[#allocation23_spill] sm:$0xff] %v13045_v59  ;;  %v3310_v20 = vand.u32 4294901760, %v3309_v58  ;;  %v3323_v58 = vsub.f32 %v13040_v13, %v13810_v15  ;;  %v14116_v15 = vld [vmem:[#allocation19_spill] sm:$0xff] }
 0x276   :  { %10447 = vmatpush3.xpose.msra.mxu0 %v12973_v28  ;;  %10477 = vmatpush3.xpose.msra.mxu1 %v3296_v19  ;;  %v13807_v19 = vand.u32 4294901760, %v13036_v16  ;;  %v13058_v28 = vsub.f32 %v453_v49, %v13045_v59  ;;  %v3429_v53 = vand.u32 4294901760, %v3428_v41 }
 0x277   :  { %10448 = vmatprep.subr.mxu0 %v12982_v17  ;;  %10478 = vmatprep.subr.mxu1 %v3415_v57  ;;  %v3316_v57 = vsub.f32 %v13022_v60, %v13806_v14 }
 0x278   :  { %v3435_v61 = vsub.f32 %v13036_v16, %v13807_v19  ;;  %v13808_v14 = vand.u32 4294901760, %v13058_v28  ;;  %v3324_v19 = vand.u32 4294901760, %v3323_v58  ;;  %v14107_v58 = vld [vmem:[#allocation10_spill] sm:$0xff] }
 0x279   :  { %v3317_v49 = vand.u32 4294901760, %v3316_v57 }
 0x27a   :  { %10449 = vmatpush3.xpose.msra.mxu0 %v13003_v50  ;;  %10479 = vmatpush3.xpose.msra.mxu1 %v3303_v52  ;;  %v13809_v52 = vand.u32 4294901760, %v13054_v29 }
 0x27b   :  { %10450 = vmatprep.subr.mxu0 %v13007_v25  ;;  %10480 = vmatprep.subr.mxu1 %v3422_v12  ;;  %v3436_v12 = vand.u32 4294901760, %v3435_v61  ;;  %v14105_v61 = vld [vmem:[#allocation20_spill] sm:$0xff] }
 0x27c   :  { %v3442_v41 = vsub.f32 %v13054_v29, %v13809_v52  ;;  %v14114_v52 = vld [vmem:[#allocation14_spill] sm:$0xff] }
 0x27e   :  { %10451 = vmatpush3.xpose.msra.mxu0 %v13027_v34  ;;  %10481 = vmatpush3.xpose.msra.mxu1 %v3310_v20  ;;  %v3330_v20 = vsub.f32 %v13058_v28, %v13808_v14  ;;  %v3443_v57 = vand.u32 4294901760, %v3442_v41  ;;  %v14109_v41 = vld [vmem:[#allocation9_spill] sm:$0xff]  ;;  %v14113_v14 = vld [vmem:[#allocation11_spill] sm:$0xff] }
 0x27f   :  { %10452 = vmatprep.subr.mxu0 %v13031_v46  ;;  %10482 = vmatprep.subr.mxu1 %v3429_v53 }
 0x280   :  { %v3331_v53 = vand.u32 4294901760, %v3330_v20  ;;  %v14110_v20 = vld [vmem:[#allocation8_spill] sm:$0xff] }
 0x282   :  { %10453 = vmatpush3.xpose.msra.mxu0 %v13045_v59  ;;  %10483 = vmatpush3.xpose.msra.mxu1 %v3317_v49  ;;  %v14106_v49 = vld [vmem:[#allocation15_spill] sm:$0xff] }
 0x283   :  { %10484 = vmatprep.subr.mxu1 %v3436_v12  ;;  %10490 = vmatprep.subr.mxu0 %v12640_v7  ;;  %v14108_v12 = vld [vmem:[#allocation7_spill] sm:$0xff] }
 0x285   :  { %10455 = vmatmul.mubr.f32.vlgmr.msra.gmra.mxu0 %v14072_v42  ;;  %v9797_v42 = vld [vmem:[%s13565_s1 + $0x18] sm:$0xff] }
 0x286   :  { %10485 = vmatpush3.xpose.msra.mxu1 %v3324_v19  ;;  %10491 = vmatpush3.xpose.msra.mxu0 %v12650_v38  ;;  %v14104_v19 = vld [vmem:[#allocation21_spill] sm:$0xff] }
 0x287   :  { %10486 = vmatprep.subr.mxu1 %v3443_v57  ;;  %10492 = vmatprep.subr.mxu0 %v12665_v9  ;;  %v14111_v57 = vld [vmem:[#allocation5_spill] sm:$0xff] }
 0x288   :  { %10522 = vmatprep.mubr.f32.mxu0 %v11143_v4  ;;  %3978 = vperm.xlu0 %10630, %v9797_v42   ;;  %v14115_v42 = vld [vmem:[#allocation13_spill] sm:$0xff] }
 0x28a   :  { %10487 = vmatpush3.xpose.msra.mxu1 %v3331_v53  ;;  %10493 = vmatpush3.xpose.msra.mxu0 %v12675_v2  ;;  %v14112_v53 = vld [vmem:[#allocation22_spill] sm:$0xff] }
 0x28b   :  { %10494 = vmatprep.subr.mxu0 %v12692_v56  ;;  %10524 = vmatprep.subr.mxu1 %v12618_v0 }
 0x28d   :  { %10489 = vmatmul.mubr.f32.vlgmr.msra.gmra.mxu1 %v11122_v31 }
 0x28e   :  { %10495 = vmatpush3.xpose.msra.mxu0 %v12707_v3  ;;  %10525 = vmatpush3.xpose.msra.mxu1 %v12631_v5 }
 0x28f   :  { %10496 = vmatprep.subr.mxu0 %v12728_v23  ;;  %10526 = vmatprep.subr.mxu1 %v12636_v22 }
 0x290   :  { %10556 = vmatprep.mubr.f32.mxu1 %v11152_v18 }
 0x292   :  { %10497 = vmatpush3.xpose.msra.mxu0 %v12735_v37  ;;  %10527 = vmatpush3.xpose.msra.mxu1 %v12652_v11 }
 0x293   :  { %10498 = vmatprep.subr.mxu0 %v12757_v45  ;;  %10528 = vmatprep.subr.mxu1 %v12660_v27 }
 0x296   :  { %10499 = vmatpush3.xpose.msra.mxu0 %v12775_v54  ;;  %10529 = vmatpush3.xpose.msra.mxu1 %v12677_v6 }
 0x297   :  { %10500 = vmatprep.subr.mxu0 %v12780_v8  ;;  %10530 = vmatprep.subr.mxu1 %v12696_v30 }
 0x29a   :  { %10501 = vmatpush3.xpose.msra.mxu0 %v12794_v24  ;;  %10531 = vmatpush3.xpose.msra.mxu1 %v12709_v39 }
 0x29b   :  { %10502 = vmatprep.subr.mxu0 %v12815_v36  ;;  %10532 = vmatprep.subr.mxu1 %v12723_v10 }
 0x29e   :  { %10503 = vmatpush3.xpose.msra.mxu0 %v12822_v40  ;;  %10533 = vmatpush3.xpose.msra.mxu1 %v12746_v33 }
 0x29f   :  { %10504 = vmatprep.subr.mxu0 %v12831_v1  ;;  %10534 = vmatprep.subr.mxu1 %v12748_v62 }
 0x2a2   :  { %10505 = vmatpush3.xpose.msra.mxu0 %v12850_v43  ;;  %10535 = vmatpush3.xpose.msra.mxu1 %v12770_v47 }
 0x2a3   :  { %10506 = vmatprep.subr.mxu0 %v12871_v51  ;;  %10536 = vmatprep.subr.mxu1 %v12786_v48 }
 0x2a6   :  { %10507 = vmatpush3.xpose.msra.mxu0 %v12889_v55  ;;  %10537 = vmatpush3.xpose.msra.mxu1 %v12796_v32 }
 0x2a7   :  { %10508 = vmatprep.subr.mxu0 %v14104_v19  ;;  %10538 = vmatprep.subr.mxu1 %v14105_v61 }
 0x2aa   :  { %10509 = vmatpush3.xpose.msra.mxu0 %v14106_v49  ;;  %10539 = vmatpush3.xpose.msra.mxu1 %v14107_v58 }
 0x2ab   :  { %10510 = vmatprep.subr.mxu0 %v14108_v12  ;;  %10540 = vmatprep.subr.mxu1 %v14109_v41 }
 0x2ae   :  { %10511 = vmatpush3.xpose.msra.mxu0 %v14110_v20  ;;  %10541 = vmatpush3.xpose.msra.mxu1 %v14111_v57  ;;  %v14117_v20 = vld [vmem:[#allocation6_spill] sm:$0xff] }
 0x2af   :  { %10512 = vmatprep.subr.mxu0 %v14112_v53  ;;  %10542 = vmatprep.subr.mxu1 %v14113_v14 }
 0x2b2   :  { %10513 = vmatpush3.xpose.msra.mxu0 %v12962_v21  ;;  %10543 = vmatpush3.xpose.msra.mxu1 %v14114_v52  ;;  %v14118_v21 = vld [vmem:[#allocation12_spill] sm:$0xff] }
 0x2b3   :  { %10514 = vmatprep.subr.mxu0 %v12976_v63  ;;  %10544 = vmatprep.subr.mxu1 %v14115_v42  ;;  %v14119_v63 = vld [vmem:[#allocation18_spill] sm:$0xff] }
 0x2b6   :  { %10515 = vmatpush3.xpose.msra.mxu0 %v13001_v35  ;;  %10545 = vmatpush3.xpose.msra.mxu1 %v14116_v15 }
 0x2b7   :  { %10516 = vmatprep.subr.mxu0 %v13011_v26  ;;  %10546 = vmatprep.subr.mxu1 %v14117_v20 }
 0x2ba   :  { %10517 = vmatpush3.xpose.msra.mxu0 %v13022_v60  ;;  %10547 = vmatpush3.xpose.msra.mxu1 %v12936_v44  ;;  %v14120_v44 = vand.u32 4294901760, %v12640_v7  ;;  %v14123_v7 = vand.u32 4294901760, %v12675_v2 }
 0x2bb   :  { %10518 = vmatprep.subr.mxu0 %v13036_v16  ;;  %10548 = vmatprep.subr.mxu1 %v14118_v21 }
 0x2be   :  { %10519 = vmatpush3.xpose.msra.mxu0 %v13040_v13  ;;  %10549 = vmatpush3.xpose.msra.mxu1 %v14119_v63  ;;  %v14121_v13 = vand.u32 4294901760, %v12650_v38  ;;  %v651_v63 = vpop.f32.mrf.mxu0 }
 0x2bf   :  { %10520 = vmatprep.subr.mxu0 %v13054_v29  ;;  %10550 = vmatprep.subr.mxu1 %v12982_v17  ;;  %v14122_v17 = vand.u32 4294901760, %v12665_v9  ;;  %v14125_v9 = vand.u32 4294901760, %v12707_v3 }
 0x2c2   :  { %10521 = vmatpush3.xpose.msra.mxu0 %v13058_v28  ;;  %10551 = vmatpush3.xpose.msra.mxu1 %v13003_v50  ;;  %v883_v50 = vpop.f32.mrf.mxu1 }
 0x2c3   :  { %10552 = vmatprep.subr.mxu1 %v13007_v25  ;;  %10558 = vmatprep.subr.mxu0 %v14120_v44  ;;  %v14124_v44 = vand.u32 4294901760, %v12692_v56  ;;  %v13174_v56 = vpop.permute.xlu0 %157 }
 0x2c4   :  { %v885_v38 = vpop.f32.mrf.mxu1 }
 0x2c5   :  { %10523 = vmatmul.mubr.f32.vlgmr.msra.gmra.mxu0 %v11143_v4  ;;  %v653_v4 = vpop.f32.mrf.mxu0 }
 0x2c6   :  { %10553 = vmatpush3.xpose.msra.mxu1 %v13027_v34  ;;  %10559 = vmatpush3.xpose.msra.mxu0 %v14121_v13 }
 0x2c7   :  { %10554 = vmatprep.subr.mxu1 %v13031_v46  ;;  %10560 = vmatprep.subr.mxu0 %v14122_v17  ;;  %v1020_v13 = vpop.f32.mrf.mxu0  ;;  %v1126_v17 = vpop.f32.mrf.mxu1 }
 0x2c8   :  { %10590 = vmatprep.mubr.f32.mxu0 %v11122_v31 }
 0x2c9   :  { %v1022_v2 = vpop.f32.mrf.mxu0 }
 0x2ca   :  { %10555 = vmatpush3.xpose.msra.mxu1 %v13045_v59  ;;  %10561 = vmatpush3.xpose.msra.mxu0 %v14123_v7  ;;  %v14126_v59 = vand.u32 4294901760, %v12728_v23 }
 0x2cb   :  { %10562 = vmatprep.subr.mxu0 %v14124_v44  ;;  %10592 = vmatprep.subr.mxu1 %v12618_v0  ;;  %v14127_v0 = vand.u32 4294901760, %v12735_v37  ;;  %v1294_v3 = vpop.f32.mrf.mxu0  ;;  %v14130_v37 = vand.u32 4294901760, %v12780_v8 }
 0x2cd   :  { %10557 = vmatmul.mubr.f32.vlgmr.msra.gmra.mxu1 %v11152_v18  ;;  %v1128_v18 = vpop.f32.mrf.mxu1  ;;  %v1296_v7 = vpop.f32.mrf.mxu0 }
 0x2ce   :  { %10563 = vmatpush3.xpose.msra.mxu0 %v14125_v9  ;;  %10593 = vmatpush3.xpose.msra.mxu1 %v12631_v5  ;;  %v14128_v5 = vand.u32 4294901760, %v12757_v45 }
 0x2cf   :  { %10564 = vmatprep.subr.mxu0 %v14126_v59  ;;  %10594 = vmatprep.subr.mxu1 %v12636_v22  ;;  %v1398_v23 = vpop.f32.mrf.mxu1  ;;  %v654_v22 = vadd.f32 %v653_v4, %v13174_v56  ;;  %v14129_v59 = vand.u32 4294901760, %v12775_v54  ;;  %v1506_v44 = vpop.f32.mrf.mxu0  ;;  %v14132_v4 = vand.u32 4294901760, %v12815_v36 }
 0x2d0   :  { %10624 = vmatprep.mubr.f32.mxu1 %v11122_v31 }
 0x2d1   :  { %v1400_v45 = vpop.f32.mrf.mxu1  ;;  %v886_v9 = vadd.f32 %v885_v38, %v654_v22 }
 0x2d2   :  { %10565 = vmatpush3.xpose.msra.mxu0 %v14127_v0  ;;  %10595 = vmatpush3.xpose.msra.mxu1 %v12652_v11  ;;  %v652_v11 = vadd.f32 %v651_v63, %v13174_v56  ;;  %v1508_v0 = vpop.f32.mrf.mxu0  ;;  %v14133_v63 = vand.u32 4294901760, %v12822_v40 }
 0x2d3   :  { %10566 = vmatprep.subr.mxu0 %v14128_v5  ;;  %10596 = vmatprep.subr.mxu1 %v12660_v27  ;;  %v14131_v27 = vand.u32 4294901760, %v12794_v24  ;;  %v1738_v54 = vpop.f32.mrf.mxu1 }
 0x2d4   :  { %v884_v8 = vadd.f32 %v883_v50, %v652_v11  ;;  %v1875_v5 = vpop.f32.mrf.mxu0  ;;  %v1509_v50 = vadd.f32 %v1508_v0, %v13174_v56  ;;  %v14139_v11 = vand.u32 4294901760, %v14106_v49  ;;  %v14143_v49 = vand.u32 4294901760, %v14112_v53 }
 0x2d5   :  { %v1740_v24 = vpop.f32.mrf.mxu1 }
 0x2d6   :  { %10567 = vmatpush3.xpose.msra.mxu0 %v14129_v59  ;;  %10597 = vmatpush3.xpose.msra.mxu1 %v12677_v6  ;;  %v1023_v6 = vadd.f32 %v1022_v2, %v886_v9  ;;  %v1021_v38 = vadd.f32 %v1020_v13, %v884_v8  ;;  %v1877_v40 = vpop.f32.mrf.mxu0  ;;  %v14136_v13 = vand.u32 4294901760, %v12871_v51  ;;  %v14141_v9 = vld [vmem:[#allocation8_spill] sm:$0xff]  ;;  %v14146_v8 = vld [vmem:[#allocation17_spill] sm:$0xff] }
 0x2d7   :  { %10568 = vmatprep.subr.mxu0 %v14130_v37  ;;  %10598 = vmatprep.subr.mxu1 %v12696_v30  ;;  %v14137_v37 = vand.u32 4294901760, %v12889_v55  ;;  %v14147_v0 = vand.u32 4294901760, %v14146_v8 }
 0x2d8   :  { %v1129_v30 = vadd.f32 %v1128_v18, %v1023_v6  ;;  %v1127_v22 = vadd.f32 %v1126_v17, %v1021_v38  ;;  %v14135_v18 = vand.u32 4294901760, %v12850_v43  ;;  %v2149_v59 = vpop.f32.mrf.mxu0  ;;  %v14138_v43 = vand.u32 4294901760, %v14104_v19 }
 0x2da   :  { %10569 = vmatpush3.xpose.msra.mxu0 %v14131_v27  ;;  %10599 = vmatpush3.xpose.msra.mxu1 %v12709_v39  ;;  %v14134_v39 = vand.u32 4294901760, %v12831_v1  ;;  %v1297_v36 = vadd.f32 %v1296_v7, %v1129_v30  ;;  %v1741_v7 = vadd.f32 %v1740_v24, %v1509_v50  ;;  %v14142_v27 = vand.u32 4294901760, %v14141_v9 }
 0x2db   :  { %10570 = vmatprep.subr.mxu0 %v14132_v4  ;;  %10600 = vmatprep.subr.mxu1 %v12723_v10  ;;  %v1981_v10 = vpop.f32.mrf.mxu1  ;;  %v14148_v30 = vand.u32 4294901760, %v13001_v35  ;;  %v14151_v35 = vld [vmem:[#allocation16_spill] sm:$0xff] }
 0x2dc   :  { %v1401_v2 = vadd.f32 %v1400_v45, %v1297_v36  ;;  %v1878_v51 = vadd.f32 %v1877_v40, %v1741_v7  ;;  %v14159_v7 = vld [vmem:[#allocation27_spill] sm:$0xff] }
 0x2dd   :  { %v1983_v17 = vpop.f32.mrf.mxu1 }
 0x2de   :  { %10571 = vmatpush3.xpose.msra.mxu0 %v14133_v63  ;;  %10601 = vmatpush3.xpose.msra.mxu1 %v12746_v33  ;;  %v1295_v33 = vadd.f32 %v1294_v3, %v1127_v22  ;;  %10632 = vtanh.f32 %v1401_v2  ;;  %v2151_v3 = vpop.f32.mrf.mxu0  ;;  %v14153_v22 = vld [vmem:[#allocation25_spill] sm:$0xff] }
 0x2df   :  { %10572 = vmatprep.subr.mxu0 %v14134_v39  ;;  %10602 = vmatprep.subr.mxu1 %v12748_v62  ;;  %v1507_v62 = vadd.f32 %v1506_v44, %v13174_v56  ;;  %v14152_v39 = vand.u32 4294901760, %v13036_v16  ;;  %v14156_v16 = vand.u32 4294901760, %v13054_v29 }
 0x2e0   :  { %v1399_v1 = vadd.f32 %v1398_v23, %v1295_v33  ;;  %v1984_v23 = vadd.f32 %v1983_v17, %v1878_v51  ;;  %v14157_v33 = vld [vmem:[#allocation26_spill] sm:$0xff] }
 0x2e2   :  { %10573 = vmatpush3.xpose.msra.mxu0 %v14135_v18  ;;  %10603 = vmatpush3.xpose.msra.mxu1 %v12770_v47  ;;  %v2253_v47 = vpop.f32.mrf.mxu1  ;;  %10634 = vtanh.f32 %v1399_v1  ;;  %v2152_v19 = vadd.f32 %v2151_v3, %v1984_v23 }
 0x2e3   :  { %10574 = vmatprep.subr.mxu0 %v14136_v13  ;;  %10604 = vmatprep.subr.mxu1 %v12786_v48  ;;  %v1739_v48 = vadd.f32 %v1738_v54, %v1507_v62 }
 0x2e4   :  { %v2255_v45 = vpop.f32.mrf.mxu1 }
 0x2e5   :  { %v1876_v55 = vadd.f32 %v1875_v5, %v1739_v48  ;;  %v14150_v5 = vand.u32 4294901760, %v13022_v60  ;;  %v14155_v60 = vld [vmem:[#allocation18_spill] sm:$0xff] }
 0x2e6   :  { %10575 = vmatpush3.xpose.msra.mxu0 %v14137_v37  ;;  %10605 = vmatpush3.xpose.msra.mxu1 %v12796_v32  ;;  %v14140_v32 = vand.u32 4294901760, %v14108_v12  ;;  %v2593_v18 = vpop.f32.mrf.mxu1 }
 0x2e7   :  { %10576 = vmatprep.subr.mxu0 %v14138_v43  ;;  %10606 = vmatprep.subr.mxu1 %v14105_v61  ;;  %v1982_v44 = vadd.f32 %v1981_v10, %v1876_v55  ;;  %v2256_v61 = vadd.f32 %v2255_v45, %v2152_v19  ;;  %v14154_v10 = vand.u32 4294901760, %v14153_v22  ;;  %v10735_v45 = vmov 0.0  }
 0x2e8   :  { %v2595_v37 = vpop.f32.mrf.mxu1 }
 0x2e9   :  { %v2150_v54 = vadd.f32 %v2149_v59, %v1982_v44  ;;  %10636 = vtanh.f32 %v2256_v61  ;;  %v14158_v59 = vand.u32 4294901760, %v13058_v28 }
 0x2ea   :  { %10577 = vmatpush3.xpose.msra.mxu0 %v14139_v11  ;;  %10607 = vmatpush3.xpose.msra.mxu1 %v14107_v58  ;;  %v9796_v58 = vld [vmem:[%s13565_s1 + $0x10] sm:$0xff]  ;;  %v2836_v48 = vpop.f32.mrf.mxu1 }
 0x2eb   :  { %10578 = vmatprep.subr.mxu0 %v14140_v32  ;;  %10608 = vmatprep.subr.mxu1 %v14109_v41  ;;  %v2254_v12 = vadd.f32 %v2253_v47, %v2150_v54  ;;  %v14144_v41 = vld [vmem:[#allocation24_spill] sm:$0xff]  ;;  %v3983_v6 = vsel %vm3981_vm1, %v9796_v58, 0  ;;  %v14160_v58 = vld [vmem:[#allocation23_spill] sm:$0xff] }
 0x2ec   :  { %v14145_v4 = vand.u32 4294901760, %v14144_v41  ;;  %v2838_v9 = vpop.f32.mrf.mxu1 }
 0x2ed   :  { %10638 = vtanh.f32 %v2254_v12 }
 0x2ee   :  { %10579 = vmatpush3.xpose.msra.mxu0 %v14142_v27  ;;  %10609 = vmatpush3.xpose.msra.mxu1 %v14111_v57  ;;  %v10633_v57 = vpop.eup %10632 }
 0x2ef   :  { %10580 = vmatprep.subr.mxu0 %v14143_v49  ;;  %10610 = vmatprep.subr.mxu1 %v14113_v14  ;;  %v13237_v14 = vand.u32 4294901760, %v3983_v6  ;;  %v10635_v53 = vpop.eup %10634  ;;  %v3990_v63 = vsel %vm3985_vm2, %v10633_v57, 0 }
 0x2f0   :  { %v13246_v38 = vand.u32 4294901760, %v3990_v63 }
 0x2f1   :  { %v13250_v24 = vsub.f32 %v3983_v6, %v13237_v14 }
 0x2f2   :  { %10581 = vmatpush3.xpose.msra.mxu0 %v14145_v4  ;;  %10611 = vmatpush3.xpose.msra.mxu1 %v14114_v52  ;;  %v14149_v52 = vand.u32 4294901760, %v13011_v26 }
 0x2f3   :  { %10582 = vmatprep.subr.mxu0 %v14147_v0  ;;  %10612 = vmatprep.subr.mxu1 %v14115_v42  ;;  %v3987_v42 = vsel %vm3985_vm2, %v10635_v53, 0  ;;  %v13262_v36 = vand.u32 4294901760, %v13250_v24 }
 0x2f4   :  { %v13258_v26 = vand.u32 4294901760, %v3987_v42 }
 0x2f5   :  { %v4080_v13 = vsub.f32 %v13250_v24, %v13262_v36 }
 0x2f6   :  { %10583 = vmatpush3.xpose.msra.mxu0 %v14148_v30  ;;  %10613 = vmatpush3.xpose.msra.mxu1 %v14116_v15  ;;  %v2361_v15 = vpop.f32.mrf.mxu0  ;;  %v10637_v2 = vpop.eup %10636 }
 0x2f7   :  { %10584 = vmatprep.subr.mxu0 %v14149_v52  ;;  %10614 = vmatprep.subr.mxu1 %v14117_v20  ;;  %v4119_v20 = vsub.f32 %v3990_v63, %v13246_v38  ;;  %v2362_v17 = vadd.f32 %v2361_v15, %v13174_v56  ;;  %v3996_v29 = vsel %vm3985_vm2, %v10637_v2, 0  ;;  %v13282_v3 = vand.u32 4294901760, %v4080_v13 }
 0x2f8   :  { %v2363_v50 = vpop.f32.mrf.mxu0  ;;  %v13284_v23 = vand.u32 4294901760, %v3996_v29 }
 0x2f9   :  { %v4120_v1 = vand.u32 4294901760, %v4119_v20  ;;  %v2364_v47 = vadd.f32 %v2363_v50, %v13174_v56  ;;  %v2594_v55 = vadd.f32 %v2593_v18, %v2362_v17 }
 0x2fa   :  { %10585 = vmatpush3.xpose.msra.mxu0 %v14150_v5  ;;  %10615 = vmatpush3.xpose.msra.mxu1 %v14151_v35  ;;  %v2730_v40 = vpop.f32.mrf.mxu0  ;;  %v10639_v62 = vpop.eup %10638 }
 0x2fb   :  { %10586 = vmatprep.subr.mxu0 %v14152_v39  ;;  %10616 = vmatprep.subr.mxu1 %v14118_v21  ;;  %v4125_v21 = vsub.f32 %v3987_v42, %v13258_v26  ;;  %v4121_v28 = vsub.f32 %v4119_v20, %v4120_v1  ;;  %v3993_v11 = vsel %vm3985_vm2, %v10639_v62, 0  ;;  %v2596_v32 = vadd.f32 %v2595_v37, %v2364_v47 }
 0x2fc   :  { %v2732_v51 = vpop.f32.mrf.mxu0  ;;  %v2731_v19 = vadd.f32 %v2730_v40, %v2594_v55  ;;  %v13291_v61 = vand.u32 4294901760, %v3993_v11  ;;  %v9799_v40 = vld [vmem:[%s13565_s1 + $0x28] sm:$0xff] }
 0x2fd   :  { %v4126_v43 = vand.u32 4294901760, %v4125_v21  ;;  %v4122_v27 = vand.u32 4294901760, %v4121_v28  ;;  %v2733_v54 = vadd.f32 %v2732_v51, %v2596_v32  ;;  %5880 = vperm.xlu1 %10631, %v9799_v40  }
 0x2fe   :  { %10587 = vmatpush3.xpose.msra.mxu0 %v14154_v10  ;;  %10617 = vmatpush3.xpose.msra.mxu1 %v14155_v60  ;;  %v2837_v49 = vadd.f32 %v2836_v48, %v2731_v19  ;;  %v4590_v6 = vsub.f32 %v3993_v11, %v13291_v61 }
 0x2ff   :  { %10588 = vmatprep.subr.mxu0 %v14156_v16  ;;  %10618 = vmatprep.subr.mxu1 %v14157_v33  ;;  %v4127_v44 = vsub.f32 %v4125_v21, %v4126_v43  ;;  %v2839_v41 = vadd.f32 %v2838_v9, %v2733_v54 }
 0x300   :  { %v4591_v52 = vand.u32 4294901760, %v4590_v6 }
 0x302   :  { %10589 = vmatpush3.xpose.msra.mxu0 %v14158_v59  ;;  %10619 = vmatpush3.xpose.msra.mxu1 %v14159_v7  ;;  %v4592_v42 = vsub.f32 %v4590_v6, %v4591_v52 }
 0x303   :  { %4041 = vmatprep.subr.mxu0 %v13246_v38  ;;  %10620 = vmatprep.subr.mxu1 %v13007_v25 }
 0x305   :  { %10591 = vmatmul.mubr.f32.vlgmr.msra.gmra.mxu0 %v11122_v31  ;;  %v3004_v25 = vpop.f32.mrf.mxu0 }
 0x306   :  { %10621 = vmatpush3.xpose.msra.mxu1 %v13027_v34  ;;  %4043 = vmatpush1.msra.mxu0 %v13258_v26  ;;  %v4584_v34 = vsub.f32 %v3996_v29, %v13284_v23  ;;  %v3005_v4 = vadd.f32 %v3004_v25, %v2837_v49 }
 0x307   :  { %4202 = vmatprep.subr.mxu0 %v4119_v20  ;;  %4076 = vmatprep.mubr.f32.mxu0 %v10735_v45  ;;  %v3006_v12 = vpop.f32.mrf.mxu0 }
 0x308   :  { %10622 = vmatprep.subr.mxu1 %v13031_v46  ;;  %v4128_v46 = vand.u32 4294901760, %v4127_v44  ;;  %v4585_v8 = vand.u32 4294901760, %v4584_v34  ;;  %v3007_v0 = vadd.f32 %v3006_v12, %v2839_v41 }
 0x309   :  { %4082 = vmatmul.mubr.f32.vlgmr.msra.gmra.mxu0 %v13282_v3 }
 0x30a   :  { %4205 = vmatpush1.msra.mxu0 %v4125_v21  ;;  %10623 = vmatpush3.xpose.msra.mxu1 %v14160_v58 }
 0x30b   :  { %4356 = vmatprep.subr.mxu0 %v4120_v1  ;;  %4123 = vmatprep.subr.mxu1 %v4122_v27 }
 0x30c   :  { %4238 = vmatprep.mubr.f32.mxu0 %v10735_v45 }
 0x30d   :  { %v3108_v57 = vpop.f32.mrf.mxu1  ;;  %10625 = vmatmul.mubr.f32.vlgmr.msra.gmra.mxu1 %v11122_v31  ;;  %4241 = vmatmul.mubr.f32.vlgmr.msra.gmra.mxu0 %v13250_v24  ;;  %v4586_v31 = vsub.f32 %v4584_v34, %v4585_v8 }
 0x30e   :  { %v3109_v53 = vadd.f32 %v3108_v57, %v3005_v4  ;;  %4360 = vmatpush1.msra.mxu0 %v4126_v43  ;;  %4129 = vmatpush1.msra.mxu1 %v4128_v46 }
 0x30f   :  { %4506 = vmatprep.subr.mxu0 %v13284_v23  ;;  %v3110_v30 = vpop.f32.mrf.mxu1  ;;  %4278 = vmatprep.subr.mxu1 %v13246_v38  ;;  %v4587_v5 = vand.u32 4294901760, %v4586_v31 }
 0x310   :  { %10640 = vtanh.f32 %v3109_v53  ;;  %v3111_v63 = vadd.f32 %v3110_v30, %v3007_v0  ;;  %4162 = vmatprep.mubr.f32.mxu1 %v10735_v45  ;;  %4393 = vmatprep.mubr.f32.mxu0 %v10735_v45 }
 0x311   :  { %4164 = vmatmul.mubr.f32.vlgmr.msra.gmra.mxu1 %v13237_v14  ;;  %4395 = vmatmul.mubr.f32.vlgmr.msra.gmra.mxu0 %v13237_v14 }
 0x312   :  { %10642 = vtanh.f32 %v3111_v63  ;;  %4280 = vmatpush1.msra.mxu1 %v13258_v26  ;;  %4508 = vmatpush1.msra.mxu0 %v13291_v61 }
 0x313   :  { %4432 = vmatprep.subr.mxu1 %v13246_v38  ;;  %4667 = vmatprep.subr.mxu0 %v4584_v34  ;;  %v4593_v38 = vand.u32 4294901760, %v4592_v42  ;;  %v13351_v34 = vpop.permute.xlu0 %3978 }
 0x314   :  { %4313 = vmatprep.mubr.f32.mxu1 %v10735_v45  ;;  %4541 = vmatprep.mubr.f32.mxu0 %v10735_v45 }
 0x315   :  { %4317 = vmatmul.mubr.f32.vlgmr.msra.gmra.mxu1 %v13262_v36  ;;  %4547 = vmatmul.mubr.f32.vlgmr.msra.gmra.mxu0 %v13282_v3 }
 0x316   :  { %4434 = vmatpush1.msra.mxu1 %v13258_v26  ;;  %4670 = vmatpush1.msra.mxu0 %v4590_v6 }
 0x317   :  { %4588 = vmatprep.subr.mxu1 %v4587_v5  ;;  %4821 = vmatprep.subr.mxu0 %v4585_v8 }
 0x318   :  { %4467 = vmatprep.mubr.f32.mxu1 %v10735_v45  ;;  %4703 = vmatprep.mubr.f32.mxu0 %v10735_v45 }
 0x319   :  { %4469 = vmatmul.mubr.f32.vlgmr.msra.gmra.mxu1 %v13237_v14  ;;  %4706 = vmatmul.mubr.f32.vlgmr.msra.gmra.mxu0 %v13250_v24 }
 0x31a   :  { %4594 = vmatpush1.msra.mxu1 %v4593_v38  ;;  %4825 = vmatpush1.msra.mxu0 %v4591_v52 }
 0x31b   :  { %4743 = vmatprep.subr.mxu1 %v13284_v23  ;;  %4627 = vmatprep.mubr.f32.mxu1 %v10735_v45 }
 0x31c   :  { %4858 = vmatprep.mubr.f32.mxu0 %v10735_v45 }
 0x31d   :  { %v10641_v35 = vpop.eup %10640  ;;  %4629 = vmatmul.mubr.f32.vlgmr.msra.gmra.mxu1 %v13237_v14  ;;  %4860 = vmatmul.mubr.f32.vlgmr.msra.gmra.mxu0 %v13237_v14 }
 0x31e   :  { %4745 = vmatpush1.msra.mxu1 %v13291_v61  ;;  %4778 = vmatprep.mubr.f32.mxu1 %v10735_v45  ;;  %v3999_v15 = vsel %vm3985_vm2, %v10641_v35, 0  ;;  %v9798_v35 = vld [vmem:[%s13565_s1 + $0x20] sm:$0xff] }
 0x31f   :  { %v10643_v39 = vpop.eup %10642  ;;  %4897 = vmatprep.subr.mxu1 %v13284_v23  ;;  %v4972_v26 = vand.u32 4294901760, %v3999_v15  ;;  %5006 = vmatprep.mubr.f32.mxu0 %v10735_v45 }
 0x320   :  { %v4002_v20 = vsel %vm3985_vm2, %v10643_v39, 0 }
 0x321   :  { %4782 = vmatmul.mubr.f32.vlgmr.msra.gmra.mxu1 %v13262_v36  ;;  %v4970_v22 = vand.u32 4294901760, %v4002_v20  ;;  %v5055_v10 = vsub.f32 %v3999_v15, %v4972_v26 }
 0x322   :  { %4899 = vmatpush1.msra.mxu1 %v13291_v61  ;;  %4932 = vmatprep.mubr.f32.mxu1 %v10735_v45 }
 0x323   :  { %4971 = vmatprep.subr.mxu0 %v4970_v22  ;;  %v5049_v60 = vsub.f32 %v4002_v20, %v4970_v22  ;;  %v5056_v2 = vand.u32 4294901760, %v5055_v10 }
 0x324   :  { %4973 = vmatpush1.msra.mxu0 %v4972_v26 }
 0x325   :  { %4934 = vmatmul.mubr.f32.vlgmr.msra.gmra.mxu1 %v13237_v14  ;;  %5012 = vmatmul.mubr.f32.vlgmr.msra.gmra.mxu0 %v13282_v3  ;;  %v5050_v50 = vand.u32 4294901760, %v5049_v60  ;;  %v5057_v18 = vsub.f32 %v5055_v10, %v5056_v2 }
 0x326   :  { %5132 = vmatprep.subr.mxu0 %v5049_v60  ;;  %5168 = vmatprep.mubr.f32.mxu0 %v10735_v45 }
 0x327   :  { %5135 = vmatpush1.msra.mxu0 %v5055_v10  ;;  %v5051_v16 = vsub.f32 %v5049_v60, %v5050_v50  ;;  %5092 = vmatprep.mubr.f32.mxu1 %v10735_v45  ;;  %v5058_v21 = vand.u32 4294901760, %v5057_v18  ;;  %v5885_v60 = vsel %vm5883_vm3, %v9798_v35, 0 }
 0x328   :  { %5286 = vmatprep.subr.mxu0 %v5050_v50 }
 0x329   :  { %5171 = vmatmul.mubr.f32.vlgmr.msra.gmra.mxu0 %v13250_v24  ;;  %v5052_v33 = vand.u32 4294901760, %v5051_v16 }
 0x32a   :  { %5290 = vmatpush1.msra.mxu0 %v5056_v2  ;;  %5323 = vmatprep.mubr.f32.mxu0 %v10735_v45 }
 0x32b   :  { %5053 = vmatprep.subr.mxu1 %v5052_v33 }
 0x32c   :  { %5059 = vmatpush1.msra.mxu1 %v5058_v21 }
 0x32d   :  { %5094 = vmatmul.mubr.f32.vlgmr.msra.gmra.mxu1 %v13237_v14  ;;  %5208 = vmatprep.subr.mxu1 %v4970_v22 }
 0x32e   :  { %5210 = vmatpush1.msra.mxu1 %v4972_v26  ;;  %5243 = vmatprep.mubr.f32.mxu1 %v10735_v45 }
 0x32f   :  { %5362 = vmatprep.subr.mxu1 %v4970_v22  ;;  %5325 = vmatmul.mubr.f32.vlgmr.msra.gmra.mxu0 %v13237_v14 }
 0x330   :  { %5471 = vmatprep.mubr.f32.mxu0 %v10735_v45 }
 0x331   :  { %5247 = vmatmul.mubr.f32.vlgmr.msra.gmra.mxu1 %v13262_v36 }
 0x332   :  { %5364 = vmatpush1.msra.mxu1 %v4972_v26  ;;  %5397 = vmatprep.mubr.f32.mxu1 %v10735_v45 }
 0x335   :  { %5399 = vmatmul.mubr.f32.vlgmr.msra.gmra.mxu1 %v13237_v14 }
 0x336   :  { %5557 = vmatprep.mubr.f32.mxu1 %v10735_v45 }
 0x345   :  { %v3216_v13 = vpop.f32.mrf.mxu0 }
 0x346   :  { %v3217_v59 = vadd.f32 %v3216_v13, %v13174_v56  ;;  %v13359_v13 = vand.u32 4294901760, %v5885_v60 }
 0x347   :  { %v3218_v1 = vpop.f32.mrf.mxu0 }
 0x348   :  { %v3219_v37 = vadd.f32 %v3218_v1, %v13174_v56 }
 0x34d   :  { %v3448_v62 = vpop.f32.mrf.mxu1 }
 0x34e   :  { %v3449_v51 = vadd.f32 %v3448_v62, %v3217_v59 }
 0x34f   :  { %v3450_v7 = vpop.f32.mrf.mxu1 }
 0x350   :  { %v3451_v28 = vadd.f32 %v3450_v7, %v3219_v37 }
 0x385   :  { %v3585_v17 = vpop.f32.mrf.mxu0 }
 0x386   :  { %v3586_v23 = vadd.f32 %v3585_v17, %v3449_v51 }
 0x387   :  { %v3587_v29 = vpop.f32.mrf.mxu0 }
 0x388   :  { %v3588_v25 = vadd.f32 %v3587_v29, %v3451_v28 }
 0x38d   :  { %v3691_v47 = vpop.f32.mrf.mxu1 }
 0x38e   :  { %v3692_v32 = vadd.f32 %v3691_v47, %v3586_v23 }
 0x38f   :  { %v3693_v11 = vpop.f32.mrf.mxu1 }
 0x390   :  { %v3694_v44 = vadd.f32 %v3693_v11, %v3588_v25  ;;  %v13368_v25 = vsub.f32 %v5885_v60, %v13359_v13 }
 0x3c5   :  { %v3859_v43 = vpop.f32.mrf.mxu0 }
 0x3c6   :  { %v3860_v61 = vadd.f32 %v3859_v43, %v3692_v32 }
 0x3c7   :  { %v3861_v48 = vpop.f32.mrf.mxu0 }
 0x3c8   :  { %v3862_v54 = vadd.f32 %v3861_v48, %v3694_v44 }
 0x3c9   :  { %v4083_v55 = vpop.f32.mrf.mxu0 }
 0x3ca   :  { %v4084_v12 = vadd.f32 %v4083_v55, %v13351_v34 }
 0x3cb   :  { %v4085_v19 = vpop.f32.mrf.mxu0 }
 0x3cc   :  { %v4086_v6 = vadd.f32 %v4085_v19, %v13351_v34 }
 0x3cd   :  { %v3963_v9 = vpop.f32.mrf.mxu1  ;;  %v4242_v27 = vpop.f32.mrf.mxu0 }
 0x3ce   :  { %v3964_v49 = vadd.f32 %v3963_v9, %v3860_v61 }
 0x3cf   :  { %v3965_v56 = vpop.f32.mrf.mxu1  ;;  %v4244_v58 = vpop.f32.mrf.mxu0 }
 0x3d0   :  { %10644 = vtanh.f32 %v3964_v49  ;;  %v3966_v41 = vadd.f32 %v3965_v56, %v3862_v54 }
 0x3d1   :  { %v4165_v4 = vpop.f32.mrf.mxu1  ;;  %v4396_v46 = vpop.f32.mrf.mxu0 }
 0x3d2   :  { %10646 = vtanh.f32 %v3966_v41  ;;  %v4166_v57 = vadd.f32 %v4165_v4, %v4084_v12  ;;  %v13374_v41 = vand.u32 4294901760, %v13368_v25 }
 0x3d3   :  { %v4167_v8 = vpop.f32.mrf.mxu1  ;;  %v4398_v0 = vpop.f32.mrf.mxu0 }
 0x3d4   :  { %v4168_v53 = vadd.f32 %v4167_v8, %v4086_v6  ;;  %v4243_v30 = vadd.f32 %v4242_v27, %v4166_v57 }
 0x3d5   :  { %v4318_v63 = vpop.f32.mrf.mxu1  ;;  %v4548_v52 = vpop.f32.mrf.mxu0 }
 0x3d6   :  { %v4319_v31 = vadd.f32 %v4318_v63, %v4243_v30  ;;  %v4245_v42 = vadd.f32 %v4244_v58, %v4168_v53  ;;  %v4549_v18 = vadd.f32 %v4548_v52, %v13351_v34  ;;  %v5982_v63 = vsub.f32 %v13368_v25, %v13374_v41 }
 0x3d7   :  { %v4320_v5 = vpop.f32.mrf.mxu1  ;;  %v4550_v38 = vpop.f32.mrf.mxu0 }
 0x3d8   :  { %v4321_v15 = vadd.f32 %v4320_v5, %v4245_v42  ;;  %v4397_v39 = vadd.f32 %v4396_v46, %v4319_v31  ;;  %v4551_v1 = vadd.f32 %v4550_v38, %v13351_v34 }
 0x3d9   :  { %v4470_v26 = vpop.f32.mrf.mxu1  ;;  %v4707_v20 = vpop.f32.mrf.mxu0 }
 0x3da   :  { %v4471_v22 = vadd.f32 %v4470_v26, %v4397_v39  ;;  %v4399_v10 = vadd.f32 %v4398_v0, %v4321_v15 }
 0x3db   :  { %v4472_v2 = vpop.f32.mrf.mxu1  ;;  %v4709_v50 = vpop.f32.mrf.mxu0 }
 0x3dc   :  { %10648 = vtanh.f32 %v4471_v22  ;;  %v4473_v16 = vadd.f32 %v4472_v2, %v4399_v10 }
 0x3dd   :  { %v10645_v33 = vpop.eup %10644  ;;  %v4630_v21 = vpop.f32.mrf.mxu1 }
 0x3de   :  { %v4861_v40 = vpop.f32.mrf.mxu0  ;;  %10650 = vtanh.f32 %v4473_v16  ;;  %v4631_v62 = vadd.f32 %v4630_v21, %v4549_v18  ;;  %v4005_v17 = vsel %vm3985_vm2, %v10645_v33, 0 }
 0x3df   :  { %v10647_v59 = vpop.eup %10646  ;;  %v4632_v7 = vpop.f32.mrf.mxu1  ;;  %v13363_v29 = vand.u32 4294901760, %v4005_v17 }
 0x3e0   :  { %v4708_v37 = vadd.f32 %v4707_v20, %v4631_v62  ;;  %v4633_v47 = vadd.f32 %v4632_v7, %v4551_v1  ;;  %v4008_v43 = vsel %vm3985_vm2, %v10647_v59, 0  ;;  %v4863_v48 = vpop.f32.mrf.mxu0  ;;  %v13390_v20 = vand.u32 4294901760, %v5982_v63 }
 0x3e1   :  { %v4783_v51 = vpop.f32.mrf.mxu1  ;;  %v5435_v28 = vand.u32 4294901760, %v4008_v43  ;;  %v5520_v23 = vsub.f32 %v4005_v17, %v13363_v29 }
 0x3e2   :  { %v4710_v11 = vadd.f32 %v4709_v50, %v4633_v47  ;;  %v4784_v55 = vadd.f32 %v4783_v51, %v4708_v37 }
 0x3e3   :  { %v4785_v32 = vpop.f32.mrf.mxu1  ;;  %5436 = vmatprep.subr.mxu0 %v5435_v28  ;;  %v5514_v19 = vsub.f32 %v4008_v43, %v5435_v28  ;;  %v5521_v44 = vand.u32 4294901760, %v5520_v23 }
 0x3e4   :  { %v4862_v61 = vadd.f32 %v4861_v40, %v4784_v55  ;;  %v4786_v9 = vadd.f32 %v4785_v32, %v4710_v11  ;;  %5438 = vmatpush1.msra.mxu0 %v13363_v29 }
 0x3e5   :  { %v4935_v27 = vpop.f32.mrf.mxu1  ;;  %v5013_v54 = vpop.f32.mrf.mxu0  ;;  %5477 = vmatmul.mubr.f32.vlgmr.msra.gmra.mxu0 %v13282_v3  ;;  %5597 = vmatprep.subr.mxu0 %v5514_v19  ;;  %v5515_v49 = vand.u32 4294901760, %v5514_v19  ;;  %v5522_v12 = vsub.f32 %v5520_v23, %v5521_v44 }
 0x3e6   :  { %v4864_v56 = vadd.f32 %v4863_v48, %v4786_v9  ;;  %v4936_v58 = vadd.f32 %v4935_v27, %v4862_v61  ;;  %5600 = vmatpush1.msra.mxu0 %v5520_v23  ;;  %5633 = vmatprep.mubr.f32.mxu0 %v10735_v45  ;;  %v5014_v5 = vadd.f32 %v5013_v54, %v13351_v34 }
 0x3e7   :  { %v4937_v4 = vpop.f32.mrf.mxu1  ;;  %v5015_v46 = vpop.f32.mrf.mxu0  ;;  %5751 = vmatprep.subr.mxu0 %v5515_v49  ;;  %v5516_v6 = vsub.f32 %v5514_v19, %v5515_v49  ;;  %v5523_v53 = vand.u32 4294901760, %v5522_v12 }
 0x3e8   :  { %10652 = vtanh.f32 %v4936_v58  ;;  %v4938_v57 = vadd.f32 %v4937_v4, %v4864_v56  ;;  %v5016_v39 = vadd.f32 %v5015_v46, %v13351_v34 }
 0x3e9   :  { %v10649_v8 = vpop.eup %10648  ;;  %5636 = vmatmul.mubr.f32.vlgmr.msra.gmra.mxu0 %v13250_v24  ;;  %v5517_v3 = vand.u32 4294901760, %v5516_v6  ;;  %v5172_v0 = vpop.f32.mrf.mxu0 }
 0x3ea   :  { %10654 = vtanh.f32 %v4938_v57  ;;  %5755 = vmatpush1.msra.mxu0 %v5521_v44  ;;  %5788 = vmatprep.mubr.f32.mxu0 %v10735_v45  ;;  %v5889_v30 = vsel %vm5887_vm4, %v10649_v8, 0 }
 0x3eb   :  { %v10651_v52 = vpop.eup %10650  ;;  %5518 = vmatprep.subr.mxu1 %v5517_v3  ;;  %v13381_v31 = vand.u32 4294901760, %v5889_v30  ;;  %v5174_v42 = vpop.f32.mrf.mxu0 }
 0x3ec   :  { %5524 = vmatpush1.msra.mxu1 %v5523_v53  ;;  %v5892_v24 = vsel %vm5887_vm4, %v10651_v52, 0 }
 0x3ed   :  { %v5095_v38 = vpop.f32.mrf.mxu1  ;;  %5559 = vmatmul.mubr.f32.vlgmr.msra.gmra.mxu1 %v13237_v14  ;;  %5673 = vmatprep.subr.mxu1 %v5435_v28  ;;  %v5942_v35 = vand.u32 4294901760, %v5892_v24  ;;  %v6027_v15 = vsub.f32 %v5889_v30, %v13381_v31 }
 0x3ee   :  { %v5096_v26 = vadd.f32 %v5095_v38, %v5014_v5  ;;  %5790 = vmatmul.mubr.f32.vlgmr.msra.gmra.mxu0 %v13237_v14  ;;  %5675 = vmatpush1.msra.mxu1 %v13363_v29  ;;  %v9801_v5 = vld [vmem:[%s13565_s1 + $0x38] sm:$0xff] }
 0x3ef   :  { %v5097_v22 = vpop.f32.mrf.mxu1  ;;  %5827 = vmatprep.subr.mxu1 %v5435_v28  ;;  %5943 = vmatprep.subr.mxu0 %v5942_v35  ;;  %v6021_v10 = vsub.f32 %v5892_v24, %v5942_v35  ;;  %v5326_v60 = vpop.f32.mrf.mxu0  ;;  %v6028_v2 = vand.u32 4294901760, %v6027_v15 }
 0x3f0   :  { %v5098_v50 = vadd.f32 %v5097_v22, %v5016_v39  ;;  %v5173_v18 = vadd.f32 %v5172_v0, %v5096_v26  ;;  %5708 = vmatprep.mubr.f32.mxu1 %v10735_v45  ;;  %5945 = vmatpush1.msra.mxu0 %v13381_v31 }
 0x3f1   :  { %5978 = vmatprep.mubr.f32.mxu0 %v10735_v45  ;;  %v5248_v16 = vpop.f32.mrf.mxu1  ;;  %5712 = vmatmul.mubr.f32.vlgmr.msra.gmra.mxu1 %v13262_v36  ;;  %v6022_v33 = vand.u32 4294901760, %v6021_v10  ;;  %v6029_v1 = vsub.f32 %v6027_v15, %v6028_v2  ;;  %v5328_v17 = vpop.f32.mrf.mxu0 }
 0x3f2   :  { %v5175_v21 = vadd.f32 %v5174_v42, %v5098_v50  ;;  %v5249_v40 = vadd.f32 %v5248_v16, %v5173_v18  ;;  %5829 = vmatpush1.msra.mxu1 %v13363_v29  ;;  %5984 = vmatmul.mubr.f32.vlgmr.msra.gmra.mxu0 %v13390_v20 }
 0x3f3   :  { %6104 = vmatprep.subr.mxu0 %v6021_v10  ;;  %v5250_v62 = vpop.f32.mrf.mxu1  ;;  %5862 = vmatprep.mubr.f32.mxu1 %v10735_v45  ;;  %v6023_v59 = vsub.f32 %v6021_v10, %v6022_v33  ;;  %v6030_v48 = vand.u32 4294901760, %v6029_v1 }
 0x3f4   :  { %6107 = vmatpush1.msra.mxu0 %v6027_v15  ;;  %v5251_v7 = vadd.f32 %v5250_v62, %v5175_v21  ;;  %v5327_v37 = vadd.f32 %v5326_v60, %v5249_v40  ;;  %6140 = vmatprep.mubr.f32.mxu0 %v10735_v45 }
 0x3f5   :  { %v10653_v36 = vpop.eup %10652  ;;  %6258 = vmatprep.subr.mxu0 %v6022_v33  ;;  %v5400_v47 = vpop.f32.mrf.mxu1  ;;  %5864 = vmatmul.mubr.f32.vlgmr.msra.gmra.mxu1 %v13237_v14  ;;  %v6024_v29 = vand.u32 4294901760, %v6023_v59 }
 0x3f6   :  { %v5329_v43 = vadd.f32 %v5328_v17, %v5251_v7  ;;  %v5401_v51 = vadd.f32 %v5400_v47, %v5327_v37  ;;  %6143 = vmatmul.mubr.f32.vlgmr.msra.gmra.mxu0 %v13368_v25  ;;  %6064 = vmatprep.mubr.f32.mxu1 %v10735_v45  ;;  %v5895_v28 = vsel %vm5887_vm4, %v10653_v36, 0  ;;  %v13447_v17 = vpop.permute.xlu1 %5880 }
 0x3f7   :  { %v10655_v23 = vpop.eup %10654  ;;  %6262 = vmatpush1.msra.mxu0 %v6028_v2  ;;  %v5402_v11 = vpop.f32.mrf.mxu1  ;;  %6025 = vmatprep.subr.mxu1 %v6024_v29  ;;  %v6409_v55 = vand.u32 4294901760, %v5895_v28 }
 0x3f8   :  { %10656 = vtanh.f32 %v5401_v51  ;;  %v5403_v32 = vadd.f32 %v5402_v11, %v5329_v43  ;;  %6031 = vmatpush1.msra.mxu1 %v6030_v48  ;;  %6295 = vmatprep.mubr.f32.mxu0 %v10735_v45  ;;  %v5898_v14 = vsel %vm5887_vm4, %v10655_v23, 0 }
 0x3f9   :  { %6066 = vmatmul.mubr.f32.vlgmr.msra.gmra.mxu1 %v13359_v13  ;;  %6180 = vmatprep.subr.mxu1 %v5942_v35  ;;  %v6407_v19 = vand.u32 4294901760, %v5898_v14  ;;  %v6492_v44 = vsub.f32 %v5895_v28, %v6409_v55 }
 0x3fa   :  { %10658 = vtanh.f32 %v5403_v32  ;;  %6297 = vmatmul.mubr.f32.vlgmr.msra.gmra.mxu0 %v13359_v13  ;;  %6182 = vmatpush1.msra.mxu1 %v13381_v31 }
 0x3fb   :  { %6334 = vmatprep.subr.mxu1 %v5942_v35  ;;  %6408 = vmatprep.subr.mxu0 %v6407_v19  ;;  %v6486_v61 = vsub.f32 %v5898_v14, %v6407_v19  ;;  %v6493_v9 = vand.u32 4294901760, %v6492_v44 }
 0x3fc   :  { %6215 = vmatprep.mubr.f32.mxu1 %v10735_v45  ;;  %6410 = vmatpush1.msra.mxu0 %v6409_v55 }
 0x3fd   :  { %6443 = vmatprep.mubr.f32.mxu0 %v10735_v45  ;;  %6219 = vmatmul.mubr.f32.vlgmr.msra.gmra.mxu1 %v13374_v41  ;;  %v6487_v27 = vand.u32 4294901760, %v6486_v61  ;;  %v6494_v54 = vsub.f32 %v6492_v44, %v6493_v9 }
 0x3fe   :  { %6336 = vmatpush1.msra.mxu1 %v13381_v31  ;;  %6449 = vmatmul.mubr.f32.vlgmr.msra.gmra.mxu0 %v13390_v20 }
 0x3ff   :  { %6569 = vmatprep.subr.mxu0 %v6486_v61  ;;  %6369 = vmatprep.mubr.f32.mxu1 %v10735_v45  ;;  %v6488_v49 = vsub.f32 %v6486_v61, %v6487_v27  ;;  %v6495_v58 = vand.u32 4294901760, %v6494_v54 }
 0x400   :  { %6572 = vmatpush1.msra.mxu0 %v6492_v44  ;;  %6605 = vmatprep.mubr.f32.mxu0 %v10735_v45 }
 0x401   :  { %6723 = vmatprep.subr.mxu0 %v6487_v27  ;;  %6371 = vmatmul.mubr.f32.vlgmr.msra.gmra.mxu1 %v13359_v13  ;;  %v6489_v56 = vand.u32 4294901760, %v6488_v49 }
 0x402   :  { %6608 = vmatmul.mubr.f32.vlgmr.msra.gmra.mxu0 %v13368_v25  ;;  %6529 = vmatprep.mubr.f32.mxu1 %v10735_v45 }
 0x403   :  { %6727 = vmatpush1.msra.mxu0 %v6493_v9  ;;  %6490 = vmatprep.subr.mxu1 %v6489_v56 }
 0x404   :  { %6496 = vmatpush1.msra.mxu1 %v6495_v58  ;;  %6760 = vmatprep.mubr.f32.mxu0 %v10735_v45  ;;  %v9800_v58 = vld [vmem:[%s13565_s1 + $0x30] sm:$0xff]  ;;  %s10737_s1 = smov [#allocation2]  }
 0x405   :  { %v10657_v12 = vpop.eup %10656  ;;  %6531 = vmatmul.mubr.f32.vlgmr.msra.gmra.mxu1 %v13359_v13  ;;  %6645 = vmatprep.subr.mxu1 %v6407_v19  ;;  %s9787_s28 = sshll.u32 %s10737_s1, 4  ;;  %s9788_s28 = int_to_ptr.vmem [resolvable:$true] %s9787_s28 }
 0x406   :  { %6647 = vmatpush1.msra.mxu1 %v6409_v55  ;;  %6680 = vmatprep.mubr.f32.mxu1 %v10735_v45  ;;  %v5901_v4 = vsel %vm5887_vm4, %v10657_v12, 0  ;;  %s10712_s29 = scalar_lea.vmem %s9788_s28, 128  ;;  %p10717_p1 = scmp.lt.s32.totalorder %s9788_s28, %s9788_s28 }
 0x407   :  { %v10659_v46 = vpop.eup %10658  ;;  %6799 = vmatprep.subr.mxu1 %v6407_v19  ;;  %6762 = vmatmul.mubr.f32.vlgmr.msra.gmra.mxu0 %v13359_v13  ;;  %v6874_v6 = vand.u32 4294901760, %v5901_v4  ;;  %p10713_p0 = scmp.ne.s32.totalorder %s9788_s28, %s10712_s29  ;;  %p10718_p2 = scmp.lt.s32.totalorder %s10712_s29, %s10712_s29 }
 0x408   :  { %v5904_v57 = vsel %vm5887_vm4, %v10659_v46, 0  ;;  %6908 = vmatprep.mubr.f32.mxu0 %v10735_v45  ;;  %7782 = vperm.xlu1 %10631, %v9801_v5  }
 0x409   :  { %6684 = vmatmul.mubr.f32.vlgmr.msra.gmra.mxu1 %v13374_v41  ;;  %v6872_v8 = vand.u32 4294901760, %v5904_v57  ;;  %v6957_v3 = vsub.f32 %v5901_v4, %v6874_v6  ;;  %p10719_p3 = por %p10718_p2, %p10717_p1 }
 0x40a   :  { %6801 = vmatpush1.msra.mxu1 %v6409_v55  ;;  %6834 = vmatprep.mubr.f32.mxu1 %v10735_v45 }
 0x40b   :  { %6873 = vmatprep.subr.mxu0 %v6872_v8  ;;  %v6951_v0 = vsub.f32 %v5904_v57, %v6872_v8  ;;  %v6958_v53 = vand.u32 4294901760, %v6957_v3  ;;  %p10720_p4 = pnand %p10719_p3, %p10713_p0 }
 0x40c   :  { %6875 = vmatpush1.msra.mxu0 %v6874_v6 }
 0x40d   :  { %6836 = vmatmul.mubr.f32.vlgmr.msra.gmra.mxu1 %v13359_v13  ;;  %6914 = vmatmul.mubr.f32.vlgmr.msra.gmra.mxu0 %v13390_v20  ;;  %v6952_v30 = vand.u32 4294901760, %v6951_v0  ;;  %v6959_v63 = vsub.f32 %v6957_v3, %v6958_v53 }
 0x40e   :  { %7034 = vmatprep.subr.mxu0 %v6951_v0  ;;  %7070 = vmatprep.mubr.f32.mxu0 %v10735_v45 }
 0x40f   :  { %7037 = vmatpush1.msra.mxu0 %v6957_v3  ;;  %v6953_v52 = vsub.f32 %v6951_v0, %v6952_v30  ;;  %6994 = vmatprep.mubr.f32.mxu1 %v10735_v45  ;;  %v6960_v42 = vand.u32 4294901760, %v6959_v63 }
 0x410   :  { %7188 = vmatprep.subr.mxu0 %v6952_v30 }
 0x411   :  { %7073 = vmatmul.mubr.f32.vlgmr.msra.gmra.mxu0 %v13368_v25  ;;  %v6954_v31 = vand.u32 4294901760, %v6953_v52 }
 0x412   :  { %7192 = vmatpush1.msra.mxu0 %v6958_v53  ;;  %7225 = vmatprep.mubr.f32.mxu0 %v10735_v45  ;;  %v7787_v53 = vsel %vm7785_vm5, %v9800_v58, 0 }
 0x413   :  { %6955 = vmatprep.subr.mxu1 %v6954_v31 }
 0x414   :  { %6961 = vmatpush1.msra.mxu1 %v6960_v42 }
 0x415   :  { %6996 = vmatmul.mubr.f32.vlgmr.msra.gmra.mxu1 %v13359_v13  ;;  %7110 = vmatprep.subr.mxu1 %v6872_v8 }
 0x416   :  { %7112 = vmatpush1.msra.mxu1 %v6874_v6  ;;  %7145 = vmatprep.mubr.f32.mxu1 %v10735_v45 }
 0x417   :  { %7264 = vmatprep.subr.mxu1 %v6872_v8  ;;  %7227 = vmatmul.mubr.f32.vlgmr.msra.gmra.mxu0 %v13359_v13 }
 0x418   :  { %7373 = vmatprep.mubr.f32.mxu0 %v10735_v45 }
 0x419   :  { %7149 = vmatmul.mubr.f32.vlgmr.msra.gmra.mxu1 %v13374_v41 }
 0x41a   :  { %7266 = vmatpush1.msra.mxu1 %v6874_v6  ;;  %7299 = vmatprep.mubr.f32.mxu1 %v10735_v45 }
 0x41d   :  { %7301 = vmatmul.mubr.f32.vlgmr.msra.gmra.mxu1 %v13359_v13 }
 0x41e   :  { %7459 = vmatprep.mubr.f32.mxu1 %v10735_v45 }
 0x4a5   :  { %v5478_v24 = vpop.f32.mrf.mxu0 }
 0x4a6   :  { %v5479_v39 = vadd.f32 %v5478_v24, %v13351_v34  ;;  %v13456_v24 = vand.u32 4294901760, %v7787_v53 }
 0x4a7   :  { %v5480_v38 = vpop.f32.mrf.mxu0 }
 0x4a8   :  { %v5481_v22 = vadd.f32 %v5480_v38, %v13351_v34 }
 0x4a9   :  { %v5637_v35 = vpop.f32.mrf.mxu0 }
 0x4ab   :  { %v5639_v15 = vpop.f32.mrf.mxu0 }
 0x4ad   :  { %v5560_v26 = vpop.f32.mrf.mxu1 }
 0x4ae   :  { %v5561_v10 = vadd.f32 %v5560_v26, %v5479_v39  ;;  %v5791_v60 = vpop.f32.mrf.mxu0 }
 0x4af   :  { %v5562_v2 = vpop.f32.mrf.mxu1 }
 0x4b0   :  { %v5638_v50 = vadd.f32 %v5637_v35, %v5561_v10  ;;  %v5563_v18 = vadd.f32 %v5562_v2, %v5481_v22  ;;  %v5793_v16 = vpop.f32.mrf.mxu0 }
 0x4b1   :  { %v5713_v33 = vpop.f32.mrf.mxu1 }
 0x4b2   :  { %v5640_v21 = vadd.f32 %v5639_v15, %v5563_v18  ;;  %v5714_v40 = vadd.f32 %v5713_v33, %v5638_v50  ;;  %v5985_v1 = vpop.f32.mrf.mxu0  ;;  %v13464_v33 = vsub.f32 %v7787_v53, %v13456_v24 }
 0x4b3   :  { %v5715_v62 = vpop.f32.mrf.mxu1  ;;  %v5986_v34 = vadd.f32 %v5985_v1, %v13447_v17 }
 0x4b4   :  { %v5792_v59 = vadd.f32 %v5791_v60, %v5714_v40  ;;  %v5716_v7 = vadd.f32 %v5715_v62, %v5640_v21  ;;  %v5987_v37 = vpop.f32.mrf.mxu0 }
 0x4b5   :  { %v5865_v36 = vpop.f32.mrf.mxu1  ;;  %v5988_v28 = vadd.f32 %v5987_v37, %v13447_v17 }
 0x4b6   :  { %v5794_v47 = vadd.f32 %v5793_v16, %v5716_v7  ;;  %v5866_v29 = vadd.f32 %v5865_v36, %v5792_v59  ;;  %v6144_v43 = vpop.f32.mrf.mxu0 }
 0x4b7   :  { %v5867_v51 = vpop.f32.mrf.mxu1 }
 0x4b8   :  { %10660 = vtanh.f32 %v5866_v29  ;;  %v5868_v48 = vadd.f32 %v5867_v51, %v5794_v47  ;;  %v6146_v23 = vpop.f32.mrf.mxu0 }
 0x4b9   :  { %v6067_v11 = vpop.f32.mrf.mxu1 }
 0x4ba   :  { %10662 = vtanh.f32 %v5868_v48  ;;  %v6068_v55 = vadd.f32 %v6067_v11, %v5986_v34  ;;  %v6298_v32 = vpop.f32.mrf.mxu0 }
 0x4bb   :  { %v6069_v14 = vpop.f32.mrf.mxu1 }
 0x4bc   :  { %v6070_v19 = vadd.f32 %v6069_v14, %v5988_v28  ;;  %v6145_v44 = vadd.f32 %v6144_v43, %v6068_v55  ;;  %v6300_v61 = vpop.f32.mrf.mxu0  ;;  %v13469_v43 = vand.u32 4294901760, %v13464_v33 }
 0x4bd   :  { %v6220_v9 = vpop.f32.mrf.mxu1 }
 0x4be   :  { %v6147_v27 = vadd.f32 %v6146_v23, %v6070_v19  ;;  %v6221_v54 = vadd.f32 %v6220_v9, %v6145_v44  ;;  %v6450_v49 = vpop.f32.mrf.mxu0  ;;  %v7884_v44 = vsub.f32 %v13464_v33, %v13469_v43 }
 0x4bf   :  { %v6222_v56 = vpop.f32.mrf.mxu1  ;;  %v6451_v3 = vadd.f32 %v6450_v49, %v13447_v17 }
 0x4c0   :  { %v6223_v12 = vadd.f32 %v6222_v56, %v6147_v27  ;;  %v6299_v4 = vadd.f32 %v6298_v32, %v6221_v54  ;;  %v6452_v46 = vpop.f32.mrf.mxu0 }
 0x4c1   :  { %v6372_v6 = vpop.f32.mrf.mxu1  ;;  %v6453_v52 = vadd.f32 %v6452_v46, %v13447_v17 }
 0x4c2   :  { %v6301_v57 = vadd.f32 %v6300_v61, %v6223_v12  ;;  %v6373_v8 = vadd.f32 %v6372_v6, %v6299_v4  ;;  %v6609_v0 = vpop.f32.mrf.mxu0 }
 0x4c3   :  { %v6374_v30 = vpop.f32.mrf.mxu1 }
 0x4c4   :  { %10664 = vtanh.f32 %v6373_v8  ;;  %v6375_v63 = vadd.f32 %v6374_v30, %v6301_v57  ;;  %v6611_v31 = vpop.f32.mrf.mxu0  ;;  %v13488_v57 = vand.u32 4294901760, %v7884_v44 }
 0x4c5   :  { %v10661_v42 = vpop.eup %10660  ;;  %v6532_v5 = vpop.f32.mrf.mxu1 }
 0x4c6   :  { %10666 = vtanh.f32 %v6375_v63  ;;  %v6533_v38 = vadd.f32 %v6532_v5, %v6451_v3  ;;  %v5907_v35 = vsel %vm5887_vm4, %v10661_v42, 0 }
 0x4c7   :  { %v10663_v15 = vpop.eup %10662  ;;  %v6534_v39 = vpop.f32.mrf.mxu1  ;;  %v13459_v22 = vand.u32 4294901760, %v5907_v35 }
 0x4c8   :  { %v6763_v26 = vpop.f32.mrf.mxu0  ;;  %v6535_v10 = vadd.f32 %v6534_v39, %v6453_v52  ;;  %v6610_v60 = vadd.f32 %v6609_v0, %v6533_v38  ;;  %v5910_v2 = vsel %vm5887_vm4, %v10663_v15, 0 }
 0x4c9   :  { %v6685_v50 = vpop.f32.mrf.mxu1  ;;  %v7337_v18 = vand.u32 4294901760, %v5910_v2  ;;  %v7422_v16 = vsub.f32 %v5907_v35, %v13459_v22 }
 0x4ca   :  { %v6612_v21 = vadd.f32 %v6611_v31, %v6535_v10  ;;  %v6686_v40 = vadd.f32 %v6685_v50, %v6610_v60  ;;  %v6765_v62 = vpop.f32.mrf.mxu0 }
 0x4cb   :  { %v6687_v1 = vpop.f32.mrf.mxu1  ;;  %7338 = vmatprep.subr.mxu0 %v7337_v18  ;;  %v7416_v59 = vsub.f32 %v5910_v2, %v7337_v18  ;;  %v7423_v7 = vand.u32 4294901760, %v7422_v16 }
 0x4cc   :  { %v6688_v37 = vadd.f32 %v6687_v1, %v6612_v21  ;;  %v6764_v36 = vadd.f32 %v6763_v26, %v6686_v40  ;;  %7340 = vmatpush1.msra.mxu0 %v13459_v22 }
 0x4cd   :  { %v6837_v47 = vpop.f32.mrf.mxu1  ;;  %7379 = vmatmul.mubr.f32.vlgmr.msra.gmra.mxu0 %v13390_v20  ;;  %7499 = vmatprep.subr.mxu0 %v7416_v59  ;;  %v7417_v29 = vand.u32 4294901760, %v7416_v59  ;;  %v6915_v34 = vpop.f32.mrf.mxu0  ;;  %v7424_v28 = vsub.f32 %v7422_v16, %v7423_v7 }
 0x4ce   :  { %v6766_v51 = vadd.f32 %v6765_v62, %v6688_v37  ;;  %v6838_v48 = vadd.f32 %v6837_v47, %v6764_v36  ;;  %7502 = vmatpush1.msra.mxu0 %v7422_v16  ;;  %7535 = vmatprep.mubr.f32.mxu0 %v10735_v45  ;;  %v6916_v61 = vadd.f32 %v6915_v34, %v13447_v17 }
 0x4cf   :  { %v6839_v23 = vpop.f32.mrf.mxu1  ;;  %7653 = vmatprep.subr.mxu0 %v7417_v29  ;;  %v7418_v11 = vsub.f32 %v7416_v59, %v7417_v29  ;;  %v6917_v55 = vpop.f32.mrf.mxu0  ;;  %v7425_v9 = vand.u32 4294901760, %v7424_v28 }
 0x4d0   :  { %10668 = vtanh.f32 %v6838_v48  ;;  %v6840_v32 = vadd.f32 %v6839_v23, %v6766_v51 }
 0x4d1   :  { %v10665_v20 = vpop.eup %10664  ;;  %7538 = vmatmul.mubr.f32.vlgmr.msra.gmra.mxu0 %v13368_v25  ;;  %v7419_v14 = vand.u32 4294901760, %v7418_v11  ;;  %v7074_v19 = vpop.f32.mrf.mxu0  ;;  %v6918_v25 = vadd.f32 %v6917_v55, %v13447_v17 }
 0x4d2   :  { %10670 = vtanh.f32 %v6840_v32  ;;  %7657 = vmatpush1.msra.mxu0 %v7423_v7  ;;  %7690 = vmatprep.mubr.f32.mxu0 %v10735_v45  ;;  %v7791_v27 = vsel %vm7789_vm6, %v10665_v20, 0 }
 0x4d3   :  { %v10667_v54 = vpop.eup %10666  ;;  %7420 = vmatprep.subr.mxu1 %v7419_v14  ;;  %v13478_v49 = vand.u32 4294901760, %v7791_v27  ;;  %v7076_v56 = vpop.f32.mrf.mxu0 }
 0x4d4   :  { %7426 = vmatpush1.msra.mxu1 %v7425_v9  ;;  %v7794_v58 = vsel %vm7789_vm6, %v10667_v54, 0 }
 0x4d5   :  { %v6997_v12 = vpop.f32.mrf.mxu1  ;;  %7461 = vmatmul.mubr.f32.vlgmr.msra.gmra.mxu1 %v13359_v13  ;;  %7575 = vmatprep.subr.mxu1 %v7337_v18  ;;  %v13483_v4 = vand.u32 4294901760, %v7794_v58  ;;  %v7929_v46 = vsub.f32 %v7791_v27, %v13478_v49 }
 0x4d6   :  { %v6998_v6 = vadd.f32 %v6997_v12, %v6916_v61  ;;  %7692 = vmatmul.mubr.f32.vlgmr.msra.gmra.mxu0 %v13359_v13  ;;  %7577 = vmatpush1.msra.mxu1 %v13459_v22 }
 0x4d7   :  { %v6999_v8 = vpop.f32.mrf.mxu1  ;;  %7729 = vmatprep.subr.mxu1 %v7337_v18  ;;  %7845 = vmatprep.subr.mxu0 %v13483_v4  ;;  %v7228_v3 = vpop.f32.mrf.mxu0  ;;  %v7923_v0 = vsub.f32 %v7794_v58, %v13483_v4  ;;  %v7930_v53 = vand.u32 4294901760, %v7929_v46 }
 0x4d8   :  { %v7000_v30 = vadd.f32 %v6999_v8, %v6918_v25  ;;  %v7075_v63 = vadd.f32 %v7074_v19, %v6998_v6  ;;  %7610 = vmatprep.mubr.f32.mxu1 %v10735_v45  ;;  %7847 = vmatpush1.msra.mxu0 %v13478_v49 }
 0x4d9   :  { %7880 = vmatprep.mubr.f32.mxu0 %v10735_v45  ;;  %v7150_v52 = vpop.f32.mrf.mxu1  ;;  %7614 = vmatmul.mubr.f32.vlgmr.msra.gmra.mxu1 %v13374_v41  ;;  %v7924_v31 = vand.u32 4294901760, %v7923_v0  ;;  %v7931_v42 = vsub.f32 %v7929_v46, %v7930_v53  ;;  %v7230_v15 = vpop.f32.mrf.mxu0 }
 0x4da   :  { %v7077_v5 = vadd.f32 %v7076_v56, %v7000_v30  ;;  %v7151_v38 = vadd.f32 %v7150_v52, %v7075_v63  ;;  %7731 = vmatpush1.msra.mxu1 %v13459_v22  ;;  %7886 = vmatmul.mubr.f32.vlgmr.msra.gmra.mxu0 %v13488_v57 }
 0x4db   :  { %v7152_v35 = vpop.f32.mrf.mxu1  ;;  %8006 = vmatprep.subr.mxu0 %v7923_v0  ;;  %7764 = vmatprep.mubr.f32.mxu1 %v10735_v45  ;;  %v7925_v39 = vsub.f32 %v7923_v0, %v7924_v31  ;;  %v7932_v41 = vand.u32 4294901760, %v7931_v42 }
 0x4dc   :  { %v7153_v26 = vadd.f32 %v7152_v35, %v7077_v5  ;;  %v7229_v10 = vadd.f32 %v7228_v3, %v7151_v38  ;;  %8009 = vmatpush1.msra.mxu0 %v7929_v46  ;;  %8042 = vmatprep.mubr.f32.mxu0 %v10735_v45 }
 0x4dd   :  { %v10669_v60 = vpop.eup %10668  ;;  %v7302_v2 = vpop.f32.mrf.mxu1  ;;  %7766 = vmatmul.mubr.f32.vlgmr.msra.gmra.mxu1 %v13359_v13  ;;  %v7926_v50 = vand.u32 4294901760, %v7925_v39  ;;  %8160 = vmatprep.subr.mxu0 %v7924_v31 }
 0x4de   :  { %v7231_v22 = vadd.f32 %v7230_v15, %v7153_v26  ;;  %v7303_v18 = vadd.f32 %v7302_v2, %v7229_v10  ;;  %8045 = vmatmul.mubr.f32.vlgmr.msra.gmra.mxu0 %v13464_v33  ;;  %7966 = vmatprep.mubr.f32.mxu1 %v10735_v45  ;;  %v7797_v16 = vsel %vm7789_vm6, %v10669_v60, 0 }
 0x4df   :  { %v10671_v21 = vpop.eup %10670  ;;  %v7304_v40 = vpop.f32.mrf.mxu1  ;;  %7927 = vmatprep.subr.mxu1 %v7926_v50  ;;  %8164 = vmatpush1.msra.mxu0 %v7930_v53  ;;  %v8311_v1 = vand.u32 4294901760, %v7797_v16 }
 0x4e0   :  { %10672 = vtanh.f32 %v7303_v18  ;;  %v7305_v62 = vadd.f32 %v7304_v40, %v7231_v22  ;;  %7933 = vmatpush1.msra.mxu1 %v7932_v41  ;;  %8197 = vmatprep.mubr.f32.mxu0 %v10735_v45  ;;  %v7800_v13 = vsel %vm7789_vm6, %v10671_v21, 0 }
 0x4e1   :  { %7968 = vmatmul.mubr.f32.vlgmr.msra.gmra.mxu1 %v13456_v24  ;;  %8082 = vmatprep.subr.mxu1 %v13483_v4  ;;  %v8309_v59 = vand.u32 4294901760, %v7800_v13  ;;  %v8394_v7 = vsub.f32 %v7797_v16, %v8311_v1 }
 0x4e2   :  { %10674 = vtanh.f32 %v7305_v62  ;;  %8199 = vmatmul.mubr.f32.vlgmr.msra.gmra.mxu0 %v13456_v24  ;;  %8084 = vmatpush1.msra.mxu1 %v13478_v49 }
 0x4e3   :  { %8310 = vmatprep.subr.mxu0 %v8309_v59  ;;  %8117 = vmatprep.mubr.f32.mxu1 %v10735_v45  ;;  %v8388_v37 = vsub.f32 %v7800_v13, %v8309_v59  ;;  %v8395_v36 = vand.u32 4294901760, %v8394_v7 }
 0x4e4   :  { %8312 = vmatpush1.msra.mxu0 %v8311_v1  ;;  %8345 = vmatprep.mubr.f32.mxu0 %v10735_v45 }
 0x4e5   :  { %8121 = vmatmul.mubr.f32.vlgmr.msra.gmra.mxu1 %v13469_v43  ;;  %8236 = vmatprep.subr.mxu1 %v13483_v4  ;;  %v8389_v47 = vand.u32 4294901760, %v8388_v37  ;;  %v8396_v29 = vsub.f32 %v8394_v7, %v8395_v36 }
 0x4e6   :  { %8351 = vmatmul.mubr.f32.vlgmr.msra.gmra.mxu0 %v13488_v57  ;;  %8238 = vmatpush1.msra.mxu1 %v13478_v49 }
 0x4e7   :  { %8271 = vmatprep.mubr.f32.mxu1 %v10735_v45  ;;  %v8390_v34 = vsub.f32 %v8388_v37, %v8389_v47  ;;  %8471 = vmatprep.subr.mxu0 %v8388_v37  ;;  %v8397_v51 = vand.u32 4294901760, %v8396_v29 }
 0x4e8   :  { %8474 = vmatpush1.msra.mxu0 %v8394_v7  ;;  %8507 = vmatprep.mubr.f32.mxu0 %v10735_v45 }
 0x4e9   :  { %8273 = vmatmul.mubr.f32.vlgmr.msra.gmra.mxu1 %v13456_v24  ;;  %v8391_v48 = vand.u32 4294901760, %v8390_v34  ;;  %8625 = vmatprep.subr.mxu0 %v8389_v47 }
 0x4ea   :  { %8431 = vmatprep.mubr.f32.mxu1 %v10735_v45  ;;  %8510 = vmatmul.mubr.f32.vlgmr.msra.gmra.mxu0 %v13464_v33 }
 0x4eb   :  { %8392 = vmatprep.subr.mxu1 %v8391_v48  ;;  %8629 = vmatpush1.msra.mxu0 %v8395_v36 }
 0x4ec   :  { %8398 = vmatpush1.msra.mxu1 %v8397_v51  ;;  %8662 = vmatprep.mubr.f32.mxu0 %v10735_v45 }
 0x4ed   :  { %v10673_v28 = vpop.eup %10672  ;;  %8433 = vmatmul.mubr.f32.vlgmr.msra.gmra.mxu1 %v13456_v24  ;;  %8547 = vmatprep.subr.mxu1 %v8309_v59 }
 0x4ee   :  { %8549 = vmatpush1.msra.mxu1 %v8311_v1  ;;  %8582 = vmatprep.mubr.f32.mxu1 %v10735_v45  ;;  %v7803_v23 = vsel %vm7789_vm6, %v10673_v28, 0 }
 0x4ef   :  { %v10675_v11 = vpop.eup %10674  ;;  %8664 = vmatmul.mubr.f32.vlgmr.msra.gmra.mxu0 %v13456_v24  ;;  %8701 = vmatprep.subr.mxu1 %v8309_v59  ;;  %v8776_v55 = vand.u32 4294901760, %v7803_v23 }
 0x4f0   :  { %v7806_v32 = vsel %vm7789_vm6, %v10675_v11, 0  ;;  %8810 = vmatprep.mubr.f32.mxu0 %v10735_v45 }
 0x4f1   :  { %8586 = vmatmul.mubr.f32.vlgmr.msra.gmra.mxu1 %v13469_v43  ;;  %v8774_v20 = vand.u32 4294901760, %v7806_v32  ;;  %v8859_v14 = vsub.f32 %v7803_v23, %v8776_v55 }
 0x4f2   :  { %8703 = vmatpush1.msra.mxu1 %v8311_v1  ;;  %8736 = vmatprep.mubr.f32.mxu1 %v10735_v45 }
 0x4f3   :  { %8775 = vmatprep.subr.mxu0 %v8774_v20  ;;  %v8853_v19 = vsub.f32 %v7806_v32, %v8774_v20  ;;  %v8860_v44 = vand.u32 4294901760, %v8859_v14 }
 0x4f4   :  { %8777 = vmatpush1.msra.mxu0 %v8776_v55 }
 0x4f5   :  { %8738 = vmatmul.mubr.f32.vlgmr.msra.gmra.mxu1 %v13456_v24  ;;  %8816 = vmatmul.mubr.f32.vlgmr.msra.gmra.mxu0 %v13488_v57  ;;  %v8854_v61 = vand.u32 4294901760, %v8853_v19  ;;  %v8861_v9 = vsub.f32 %v8859_v14, %v8860_v44 }
 0x4f6   :  { %8896 = vmatprep.mubr.f32.mxu1 %v10735_v45  ;;  %8936 = vmatprep.subr.mxu0 %v8853_v19 }
 0x4f7   :  { %v8855_v27 = vsub.f32 %v8853_v19, %v8854_v61  ;;  %8939 = vmatpush1.msra.mxu0 %v8859_v14  ;;  %8972 = vmatprep.mubr.f32.mxu0 %v10735_v45  ;;  %v8862_v54 = vand.u32 4294901760, %v8861_v9 }
 0x4f8   :  { %9090 = vmatprep.subr.mxu0 %v8854_v61 }
 0x4f9   :  { %v8856_v49 = vand.u32 4294901760, %v8855_v27  ;;  %8975 = vmatmul.mubr.f32.vlgmr.msra.gmra.mxu0 %v13464_v33 }
 0x4fa   :  { %9094 = vmatpush1.msra.mxu0 %v8860_v44  ;;  %9127 = vmatprep.mubr.f32.mxu0 %v10735_v45 }
 0x4fb   :  { %8857 = vmatprep.subr.mxu1 %v8856_v49  ;;  %v7783_v49 = vpop.permute.xlu1 %7782 }
 0x4fc   :  { %8863 = vmatpush1.msra.mxu1 %v8862_v54 }
 0x4fd   :  { %8898 = vmatmul.mubr.f32.vlgmr.msra.gmra.mxu1 %v13456_v24  ;;  %9012 = vmatprep.subr.mxu1 %v8774_v20 }
 0x4fe   :  { %9014 = vmatpush1.msra.mxu1 %v8776_v55  ;;  %9047 = vmatprep.mubr.f32.mxu1 %v10735_v45 }
 0x4ff   :  { %9129 = vmatmul.mubr.f32.vlgmr.msra.gmra.mxu0 %v13456_v24  ;;  %9166 = vmatprep.subr.mxu1 %v8774_v20 }
 0x500   :  { %9275 = vmatprep.mubr.f32.mxu0 %v10735_v45 }
 0x501   :  { %9051 = vmatmul.mubr.f32.vlgmr.msra.gmra.mxu1 %v13469_v43 }
 0x502   :  { %9168 = vmatpush1.msra.mxu1 %v8776_v55  ;;  %9201 = vmatprep.mubr.f32.mxu1 %v10735_v45 }
 0x505   :  { %9203 = vmatmul.mubr.f32.vlgmr.msra.gmra.mxu1 %v13456_v24 }
 0x506   :  { %9361 = vmatprep.mubr.f32.mxu1 %v10735_v45 }
 0x58d   :  { %v7380_v56 = vpop.f32.mrf.mxu0 }
 0x58e   :  { %v7381_v12 = vadd.f32 %v7380_v56, %v13447_v17 }
 0x58f   :  { %v7382_v25 = vpop.f32.mrf.mxu0 }
 0x590   :  { %v7383_v6 = vadd.f32 %v7382_v25, %v13447_v17 }
 0x591   :  { %v7539_v58 = vpop.f32.mrf.mxu0 }
 0x593   :  { %v7541_v4 = vpop.f32.mrf.mxu0 }
 0x595   :  { %v7462_v46 = vpop.f32.mrf.mxu1 }
 0x596   :  { %v7463_v8 = vadd.f32 %v7462_v46, %v7381_v12  ;;  %v7693_v30 = vpop.f32.mrf.mxu0 }
 0x597   :  { %v7464_v3 = vpop.f32.mrf.mxu1 }
 0x598   :  { %v7465_v0 = vadd.f32 %v7464_v3, %v7383_v6  ;;  %v7540_v53 = vadd.f32 %v7539_v58, %v7463_v8  ;;  %v7695_v35 = vpop.f32.mrf.mxu0 }
 0x599   :  { %v7615_v63 = vpop.f32.mrf.mxu1 }
 0x59a   :  { %v7616_v52 = vadd.f32 %v7615_v63, %v7540_v53  ;;  %v7542_v31 = vadd.f32 %v7541_v4, %v7465_v0 }
 0x59b   :  { %v7617_v42 = vpop.f32.mrf.mxu1 }
 0x59c   :  { %v7618_v5 = vadd.f32 %v7617_v42, %v7542_v31  ;;  %v7694_v38 = vadd.f32 %v7693_v30, %v7616_v52 }
 0x59d   :  { %v7767_v15 = vpop.f32.mrf.mxu1 }
 0x59e   :  { %v7768_v39 = vadd.f32 %v7767_v15, %v7694_v38  ;;  %v7696_v26 = vadd.f32 %v7695_v35, %v7618_v5 }
 0x59f   :  { %v7769_v10 = vpop.f32.mrf.mxu1 }
 0x5a0   :  { %10676 = vtanh.f32 %v7768_v39  ;;  %v7770_v41 = vadd.f32 %v7769_v10, %v7696_v26 }
 0x5a1   :  { %v7969_v37 = vpop.f32.mrf.mxu1 }
 0x5a2   :  { %10678 = vtanh.f32 %v7770_v41 }
 0x5a3   :  { %v7971_v47 = vpop.f32.mrf.mxu1 }
 0x5a5   :  { %v8122_v34 = vpop.f32.mrf.mxu1 }
 0x5a7   :  { %v8124_v48 = vpop.f32.mrf.mxu1 }
 0x5a9   :  { %v13558_v23 = vpop.f32.mrf.mxu1 }
 0x5ab   :  { %v8276_v55 = vpop.f32.mrf.mxu1 }
 0x5ad   :  { %v10677_v17 = vpop.eup %10676  ;;  %v8434_v32 = vpop.f32.mrf.mxu1 }
 0x5ae   :  { %v7809_v60 = vsel %vm7789_vm6, %v10677_v17, 0 }
 0x5af   :  { %v10679_v2 = vpop.eup %10678  ;;  %v9241_v50 = vand.u32 4294901760, %v7809_v60 }
 0x5b0   :  { %v7812_v22 = vsel %vm7789_vm6, %v10679_v2, 0 }
 0x5b1   :  { %v9239_v18 = vand.u32 4294901760, %v7812_v22  ;;  %v9324_v16 = vsub.f32 %v7809_v60, %v9241_v50 }
 0x5b3   :  { %9240 = vmatprep.subr.mxu0 %v9239_v18  ;;  %v9318_v21 = vsub.f32 %v7812_v22, %v9239_v18  ;;  %v9325_v40 = vand.u32 4294901760, %v9324_v16 }
 0x5b4   :  { %9242 = vmatpush1.msra.mxu0 %v9241_v50 }
 0x5b5   :  { %9281 = vmatmul.mubr.f32.vlgmr.msra.gmra.mxu0 %v13488_v57  ;;  %9401 = vmatprep.subr.mxu0 %v9318_v21  ;;  %v9319_v1 = vand.u32 4294901760, %v9318_v21  ;;  %v9326_v62 = vsub.f32 %v9324_v16, %v9325_v40 }
 0x5b6   :  { %9404 = vmatpush1.msra.mxu0 %v9324_v16  ;;  %9437 = vmatprep.mubr.f32.mxu0 %v10735_v45 }
 0x5b7   :  { %9555 = vmatprep.subr.mxu0 %v9319_v1  ;;  %v9320_v13 = vsub.f32 %v9318_v21, %v9319_v1  ;;  %v9327_v7 = vand.u32 4294901760, %v9326_v62 }
 0x5b9   :  { %9440 = vmatmul.mubr.f32.vlgmr.msra.gmra.mxu0 %v13464_v33  ;;  %v9321_v59 = vand.u32 4294901760, %v9320_v13  ;;  %v7887_v33 = vpop.f32.mrf.mxu0 }
 0x5ba   :  { %9559 = vmatpush1.msra.mxu0 %v9325_v40  ;;  %9592 = vmatprep.mubr.f32.mxu0 %v10735_v45  ;;  %v7888_v8 = vadd.f32 %v7887_v33, %v7783_v49 }
 0x5bb   :  { %9322 = vmatprep.subr.mxu1 %v9321_v59  ;;  %v7889_v57 = vpop.f32.mrf.mxu0 }
 0x5bc   :  { %9328 = vmatpush1.msra.mxu1 %v9327_v7  ;;  %v7890_v12 = vadd.f32 %v7889_v57, %v7783_v49  ;;  %v7970_v63 = vadd.f32 %v7969_v37, %v7888_v8 }
 0x5bd   :  { %9363 = vmatmul.mubr.f32.vlgmr.msra.gmra.mxu1 %v13456_v24  ;;  %9477 = vmatprep.subr.mxu1 %v9239_v18  ;;  %v8046_v36 = vpop.f32.mrf.mxu0 }
 0x5be   :  { %9479 = vmatpush1.msra.mxu1 %v9241_v50  ;;  %9512 = vmatprep.mubr.f32.mxu1 %v10735_v45  ;;  %v7972_v3 = vadd.f32 %v7971_v47, %v7890_v12  ;;  %v8047_v26 = vadd.f32 %v8046_v36, %v7970_v63 }
 0x5bf   :  { %9631 = vmatprep.subr.mxu1 %v9239_v18  ;;  %9594 = vmatmul.mubr.f32.vlgmr.msra.gmra.mxu0 %v13456_v24  ;;  %v8048_v29 = vpop.f32.mrf.mxu0 }
 0x5c0   :  { %v8049_v38 = vadd.f32 %v8048_v29, %v7972_v3  ;;  %v8123_v18 = vadd.f32 %v8122_v34, %v8047_v26 }
 0x5c1   :  { %9516 = vmatmul.mubr.f32.vlgmr.msra.gmra.mxu1 %v13469_v43  ;;  %v8200_v51 = vpop.f32.mrf.mxu0 }
 0x5c2   :  { %9633 = vmatpush1.msra.mxu1 %v9241_v50  ;;  %9666 = vmatprep.mubr.f32.mxu1 %v10735_v45  ;;  %v8436_v45 = vpop.f32.mrf.mxu1  ;;  %v8125_v60 = vadd.f32 %v8124_v48, %v8049_v38  ;;  %v8201_v33 = vadd.f32 %v8200_v51, %v8123_v18 }
 0x5c3   :  { %v8202_v28 = vpop.f32.mrf.mxu0 }
 0x5c4   :  { %v8203_v1 = vadd.f32 %v8202_v28, %v8125_v60 }
 0x5c5   :  { %9668 = vmatmul.mubr.f32.vlgmr.msra.gmra.mxu1 %v13456_v24  ;;  %v8352_v11 = vpop.f32.mrf.mxu0  ;;  %v8587_v24 = vpop.f32.mrf.mxu1 }
 0x5c6   :  { %v8353_v46 = vadd.f32 %v8352_v11, %v7783_v49  ;;  %v8277_v47 = vadd.f32 %v8276_v55, %v8203_v1  ;;  %v9737_v1 = vlaneseq }
 0x5c7   :  { %v8354_v43 = vpop.f32.mrf.mxu0  ;;  %v8589_v44 = vpop.f32.mrf.mxu1 }
 0x5c8   :  { %v8355_v58 = vadd.f32 %v8354_v43, %v7783_v49  ;;  %v8435_v53 = vadd.f32 %v8434_v32, %v8353_v46  ;;  %v8275_v32 = vadd.f32 %v13558_v23, %v8201_v33 }
 0x5c9   :  { %v8511_v20 = vpop.f32.mrf.mxu0  ;;  %v8739_v9 = vpop.f32.mrf.mxu1 }
 0x5ca   :  { %v8437_v6 = vadd.f32 %v8436_v45, %v8355_v58  ;;  %v8512_v15 = vadd.f32 %v8511_v20, %v8435_v53 }
 0x5cb   :  { %v8513_v14 = vpop.f32.mrf.mxu0  ;;  %v8741_v54 = vpop.f32.mrf.mxu1 }
 0x5cc   :  { %v8514_v31 = vadd.f32 %v8513_v14, %v8437_v6  ;;  %v8588_v50 = vadd.f32 %v8587_v24, %v8512_v15  ;;  %v9803_v14 = vmul.f32 -1.442695, %v8277_v47 }
 0x5cd   :  { %v8665_v19 = vpop.f32.mrf.mxu0  ;;  %v8899_v25 = vpop.f32.mrf.mxu1 }
 0x5ce   :  { %v8590_v41 = vadd.f32 %v8589_v44, %v8514_v31  ;;  %v8666_v59 = vadd.f32 %v8665_v19, %v8588_v50 }
 0x5cf   :  { %v8667_v61 = vpop.f32.mrf.mxu0  ;;  %v8901_v0 = vpop.f32.mrf.mxu1 }
 0x5d0   :  { %v8668_v21 = vadd.f32 %v8667_v61, %v8590_v41  ;;  %v8740_v48 = vadd.f32 %v8739_v9, %v8666_v59 }
 0x5d1   :  { %v8817_v27 = vpop.f32.mrf.mxu0  ;;  %v9052_v35 = vpop.f32.mrf.mxu1 }
 0x5d2   :  { %v8818_v42 = vadd.f32 %v8817_v27, %v7783_v49  ;;  %v8742_v37 = vadd.f32 %v8741_v54, %v8668_v21  ;;  %v9804_v44 = vmul.f32 -1.442695, %v8740_v48  ;;  %v9802_v27 = vmul.f32 -1.442695, %v8275_v32 }
 0x5d3   :  { %v8819_v56 = vpop.f32.mrf.mxu0  ;;  %v9054_v2 = vpop.f32.mrf.mxu1  ;;  %v10736_v21 = vmov 1966171168  }
 0x5d4   :  { %v8820_v30 = vadd.f32 %v8819_v56, %v7783_v49  ;;  %v8900_v39 = vadd.f32 %v8899_v25, %v8818_v42  ;;  %v9805_v34 = vmul.f32 -1.442695, %v8742_v37 }
 0x5d5   :  { %v8976_v4 = vpop.f32.mrf.mxu0  ;;  %v9204_v62 = vpop.f32.mrf.mxu1 }
 0x5d6   :  { %v8902_v5 = vadd.f32 %v8901_v0, %v8820_v30  ;;  %v8977_v22 = vadd.f32 %v8976_v4, %v8900_v39  ;;  %10680 = vpow2.f32 %v9805_v34 }
 0x5d7   :  { %v8978_v52 = vpop.f32.mrf.mxu0  ;;  %v9206_v29 = vpop.f32.mrf.mxu1  ;;  %10682 = vpow2.f32 %v9803_v14 }
 0x5d8   :  { %v8979_v17 = vadd.f32 %v8978_v52, %v8902_v5  ;;  %v9053_v7 = vadd.f32 %v9052_v35, %v8977_v22  ;;  %10684 = vpow2.f32 %v9804_v44 }
 0x5d9   :  { %v9130_v10 = vpop.f32.mrf.mxu0  ;;  %10686 = vpow2.f32 %v9802_v27 }
 0x5da   :  { %v9055_v40 = vadd.f32 %v9054_v2, %v8979_v17  ;;  %v9131_v43 = vadd.f32 %v9130_v10, %v9053_v7  ;;  %v9738_v7 = vshrl.u32 %v9737_v1, 7 }
 0x5db   :  { %v9132_v16 = vpop.f32.mrf.mxu0 }
 0x5dc   :  { %v9133_v36 = vadd.f32 %v9132_v16, %v9055_v40  ;;  %v9205_v19 = vadd.f32 %v9204_v62, %v9131_v43  ;;  %v9735_v40 = vunpack.c.l.s4 %v10736_v21 }
 0x5de   :  { %v9207_v20 = vadd.f32 %v9206_v29, %v9133_v36  ;;  %v9806_v23 = vmul.f32 -1.442695, %v9205_v19  ;;  %v9736_v59 = vunpack.c.0.s8 %v9735_v40 }
 0x5e0   :  { %v9807_v55 = vmul.f32 -1.442695, %v9207_v20  ;;  %v9739_v29 = vsub.s32 %v9736_v59, %v9738_v7 }
 0x5e2   :  { %10688 = vpow2.f32 %v9807_v55 }
 0x5e3   :  { %10690 = vpow2.f32 %v9806_v23  ;;  %v10681_v42 = vpop.eup %10680 }
 0x5e4   :  { %v10683_v5 = vpop.eup %10682  ;;  %v9701_v15 = vadd.f32 1.0, %v10681_v42 }
 0x5e5   :  { %v10685_v38 = vpop.eup %10684  ;;  %v9699_v26 = vadd.f32 1.0, %v10683_v5 }
 0x5e6   :  { %v10687_v35 = vpop.eup %10686  ;;  %v9700_v10 = vadd.f32 1.0, %v10685_v38 }
 0x5e7   :  { %v9698_v17 = vadd.f32 1.0, %v10687_v35 }
 0x5ef   :  { %v10689_v39 = vpop.eup %10688 }
 0x5f0   :  { %v10691_v41 = vpop.eup %10690  ;;  %v9703_v60 = vadd.f32 1.0, %v10689_v39 }
 0x5f1   :  { %v9702_v2 = vadd.f32 1.0, %v10691_v41 }
 0x675   :  { %v9282_v13 = vpop.f32.mrf.mxu0 }
 0x676   :  { %v9283_v45 = vadd.f32 %v9282_v13, %v7783_v49 }
 0x677   :  { %v9284_v57 = vpop.f32.mrf.mxu0 }
 0x678   :  { %v9285_v61 = vadd.f32 %v9284_v57, %v7783_v49 }
 0x679   :  { %v9441_v11 = vpop.f32.mrf.mxu0 }
 0x67b   :  { %v9443_v24 = vpop.f32.mrf.mxu0 }
 0x67d   :  { %v9364_v28 = vpop.f32.mrf.mxu1 }
 0x67e   :  { %v9365_v51 = vadd.f32 %v9364_v28, %v9283_v45 }
 0x67f   :  { %v9366_v54 = vpop.f32.mrf.mxu1  ;;  %v9595_v58 = vpop.f32.mrf.mxu0 }
 0x680   :  { %v9367_v56 = vadd.f32 %v9366_v54, %v9285_v61  ;;  %v9442_v25 = vadd.f32 %v9441_v11, %v9365_v51 }
 0x681   :  { %v9517_v9 = vpop.f32.mrf.mxu1  ;;  %v9597_v49 = vpop.f32.mrf.mxu0 }
 0x682   :  { %v9444_v12 = vadd.f32 %v9443_v24, %v9367_v56  ;;  %v9518_v4 = vadd.f32 %v9517_v9, %v9442_v25 }
 0x683   :  { %v9519_v46 = vpop.f32.mrf.mxu1 }
 0x684   :  { %v9520_v6 = vadd.f32 %v9519_v46, %v9444_v12  ;;  %v9596_v8 = vadd.f32 %v9595_v58, %v9518_v4 }
 0x685   :  { %v9669_v3 = vpop.f32.mrf.mxu1 }
 0x686   :  { %v9598_v0 = vadd.f32 %v9597_v49, %v9520_v6  ;;  %v9670_v53 = vadd.f32 %v9669_v3, %v9596_v8 }
 0x687   :  { %v9671_v30 = vpop.f32.mrf.mxu1 }
 0x688   :  { %v9808_v63 = vmul.f32 -1.442695, %v9670_v53  ;;  %v9672_v52 = vadd.f32 %v9671_v30, %v9598_v0 }
 0x68a   :  { %10692 = vpow2.f32 %v9808_v63  ;;  %v9809_v31 = vmul.f32 -1.442695, %v9672_v52 }
 0x68c   :  { %10694 = vpow2.f32 %v9809_v31 }
 0x68d   :  { %10696 = vrcp.f32 %v9701_v15 }
 0x68e   :  { %10698 = vrcp.f32 %v9699_v26 }
 0x68f   :  { %10700 = vrcp.f32 %v9700_v10 }
 0x690   :  { %10702 = vrcp.f32 %v9698_v17 }
 0x691   :  { %10704 = vrcp.f32 %v9703_v60 }
 0x692   :  { %10706 = vrcp.f32 %v9702_v2 }
 0x697   :  { %v10693_v50 = vpop.eup %10692 }
 0x698   :  { %v9704_v22 = vadd.f32 1.0, %v10693_v50 }
 0x699   :  { %v10695_v18 = vpop.eup %10694 }
 0x69a   :  { %v9705_v16 = vadd.f32 1.0, %v10695_v18  ;;  %10708 = vrcp.f32 %v9704_v22  ;;  %v10697_v62 = vpop.eup %10696 }
 0x69b   :  { %v10699_v13 = vpop.eup %10698 }
 0x69c   :  { %10710 = vrcp.f32 %v9705_v16  ;;  %v10701_v33 = vpop.eup %10700 }
 0x69d   :  { %v10703_v57 = vpop.eup %10702  ;;  %v9731_v37 = vcombine.low %v10701_v33, %v10697_v62 }
 0x69e   :  { %v10705_v36 = vpop.eup %10704  ;;  %v9730_v47 = vcombine.low %v10703_v57, %v10699_v13 }
 0x69f   :  { %v10707_v11 = vpop.eup %10706  ;;  %v9747_v32 = vrot.slane %v9731_v37, %v9739_v29 }
 0x6a0   :  { %v9732_v43 = vcombine.low %v10707_v11, %v10705_v36  ;;  %v9740_v45 = vrot.slane %v9730_v47, %v9739_v29 }
 0x6a2   :  { %v9754_v14 = vrot.slane %v9732_v43, %v9739_v29  ;;  %v9762_v24 = vcombine.low %v9740_v45, %v9747_v32 }
 0x6a4   :  { %v9770_v19 = vrot.slane %v9762_v24, %v9739_v29 }
 0x6a7   :  { %v10709_v48 = vpop.eup %10708 }
 0x6a9   :  { %v10711_v34 = vpop.eup %10710 }
 0x6aa   :  { %v9733_v20 = vcombine.low %v10709_v48, %v10711_v34 }
 0x6ac   :  { %v9761_v28 = vrot.slane %v9733_v20, %v9739_v29 }
 0x6ae   :  { %v9763_v44 = vcombine.low %v9754_v14, %v9761_v28 }
 0x6b0   :  { %v9777_v61 = vrot.slane %v9763_v44, %v9739_v29 }
 0x6b2   :  { %v9778_v51 = vcombine.low %v9770_v19, %v9777_v61 }
 0x6b4   :  { %9780 = vst [vmem:[#allocation2] sm:$0xff] %v9778_v51 }
 0x6b5   :  { %10723 = shalt.err (!%p10720_p4)
}
 0x6b6   :  { %9790 = dma.vmem_to_hbm [thread:$0]  %s9788_s28, 128, %s13566_s2, [#allocation3]  }
 0x6b7   :  { %10732 = dma.done.wait [#allocation3], 128  }
 0x6b8   :  { %10733 = vsyncadd [#allocation3], 4294967168 }
 0x6b9   :  { %9794 = vsyncpa [#allocation3], 1 }

</bundles_post_ra>
